<compile_context>
chip_gen: v5e
topology: v5e:2x2
jax: 0.10.0
libtpu: 0.0.40
codegen_flags: <defaults>
</compile_context>

<pallas_src>
import functools

import numpy as np
import jax
import jax.numpy as jnp
from jax import lax
from jax.experimental import pallas as pl
from jax.experimental.pallas import tpu as pltpu

KERNEL_SIZES = (40, 20, 10)
KMAX = max(KERNEL_SIZES)            # 40 taps on the shared im2col shift grid
PAD_LEFT = (KMAX - 1) // 2          # 19 (PyTorch 'same', stride=1: left = (k-1)//2)
PAD_RIGHT = KMAX - 1 - PAD_LEFT     # 20

# MXU operand dtype: bf16 operands, f32 accumulation (preferred_element_type).
# ~2-3x MXU throughput on v6e/v7x and half the im2col-stack VMEM / store bytes.
MXU_DTYPE = jnp.bfloat16

INNER_LANE_TARGET = 512             # lanes per inner compute sub-tile (register budget)
MAX_LANES_PER_STEP = 4096           # lanes per grid step (DMA block), VMEM permitting


def _same_pad(k):
    total = k - 1
    left = total // 2
    return left, total - left


def _round_up(x, m):
    return (x + m - 1) // m * m


# ---------------------------------------------------------------------------
# fused kernel: all `depth` InceptionModules for one block of batch elements
# ---------------------------------------------------------------------------
def _inception_block_kernel(x_ref, *rest, L, slot, n_modules, c_out,
                            inner_slots, n_inner):
    """x_ref     : (C_in, nb*slot)        activations, zeros outside the data span
       rest      : 3*n_modules weight refs (wb, wc, wm per module),
                   o_ref (nb, 4*c_out, slot), stack_ref (KMAX*c_out, inner_lanes)
    """
    w_refs = rest[:3 * n_modules]
    o_ref = rest[3 * n_modules]
    stack_ref = rest[3 * n_modules + 1]

    f32 = jnp.float32
    inner_lanes = inner_slots * slot
    neg_inf = jnp.float32(-jnp.inf)

    # Positional masks computed in-kernel (replaces the old `pos` input buffer):
    # position of every lane relative to the start of the real data in its slot.
    pos = lax.broadcasted_iota(jnp.int32, (1, inner_lanes), 1) % slot - PAD_LEFT
    valid_f = ((pos >= 0) & (pos < L)).astype(f32)            # 1.0 on real samples
    left_neg = jnp.where(pos == 0, neg_inf, 0.0).astype(f32)  # -inf at sequence start
    right_neg = jnp.where(pos == L - 1, neg_inf, 0.0).astype(f32)

    def compute_tile(t):
        start = t * inner_lanes
        if not isinstance(start, int):
            start = pl.multiple_of(start, 128)
        act = x_ref[:, pl.ds(start, inner_lanes)].astype(f32)  # (C_in_d, inner_lanes)
        n = inner_lanes

        for d in range(n_modules):
            wb = w_refs[3 * d + 0][...]                        # (C_out, C_in_d)
            wc = w_refs[3 * d + 1][...]                        # (3*C_out, KMAX*C_out)
            wm = w_refs[3 * d + 2][...]                        # (C_out, C_in_d)

            # ---- bottleneck 1x1 conv (bias=False): one channel matmul on the MXU
            xb = jnp.dot(wb, act.astype(wb.dtype), preferred_element_type=f32)

            # ---- im2col stack of all KMAX shifts of xb (XLU rolls -> bf16 VMEM scratch).
            #      Slot padding (>=19 zeros left / >=20 right per sequence) guarantees
            #      valid lanes never read across a sequence boundary; roll wrap-around
            #      only lands on pad lanes, which are masked / discarded.
            #      Two adjacent taps per store -> full packed (2*c_out)-row bf16 slabs,
            #      halving the vst count on the store-slot-bound path.
            for p in range(0, KMAX, 2):
                parts = []
                for q in (p, p + 1):
                    s = q - PAD_LEFT                           # tap offset in [-19, 20]
                    parts.append(xb if s == 0
                                 else pltpu.roll(xb, shift=(-s) % n, axis=1))
                stack_ref[p * c_out:(p + 2) * c_out, :] = (
                    jnp.concatenate(parts, axis=0).astype(stack_ref.dtype))

            # ---- all three 'same' convs (k=40/20/10) as ONE MXU matmul,
            #      contraction dim = KMAX*C_out (weights pre-packed per tap in wrapper)
            c3 = jnp.dot(wc, stack_ref[...], preferred_element_type=f32)  # (3*C_out, n)

            # ---- MaxPool1d(3, stride=1, padding=1) on the module input, then 1x1 conv
            x_prev = pltpu.roll(act, shift=1, axis=1) + left_neg     # x[t-1], -inf at edge
            x_next = pltpu.roll(act, shift=n - 1, axis=1) + right_neg  # x[t+1], -inf at edge
            mp = jnp.maximum(jnp.maximum(act, x_prev), x_next)
            cm = jnp.dot(wm, mp.astype(wm.dtype), preferred_element_type=f32)  # (C_out, n)

            y = jnp.concatenate([c3, cm], axis=0)                      # (4*C_out, n)
            if d + 1 < n_modules:
                # concat -> ReLU -> re-zero pad lanes so the next module's convolutions
                # see correct 'same' zero padding again (keep the * valid_f re-zero!).
                act = jnp.maximum(y, 0.0) * valid_f
            else:
                # final module: ReLU, then one lane-dense (4*C_out, slot) slab per batch
                # element straight into the (nb, 4*C_out, slot) output block.
                yr = jnp.maximum(y, 0.0).astype(o_ref.dtype)
                for b in range(inner_slots):
                    o_ref[t * inner_slots + b, :, :] = yr[:, b * slot:(b + 1) * slot]

    if n_inner == 1:
        compute_tile(0)                      # fully static indexing
    else:
        pl.loop(0, n_inner)(compute_tile)    # bounded register working set per sub-tile


# ---------------------------------------------------------------------------
# generation-aware sizing
# ---------------------------------------------------------------------------
def _device_info():
    """(vmem_limit_bytes, n_tensorcores) with conservative fallbacks."""
    vmem_limit = 64 * 1024 * 1024      # safe on v5e/v6e (128 MiB physical VMEM)
    num_tc = 1
    try:
        kind = jax.devices()[0].device_kind.lower()
    except Exception:
        kind = ""
    if "v7" in kind or "7x" in kind:
        vmem_limit = 48 * 1024 * 1024  # v7x: 64 MiB physical -> leave headroom
        num_tc = 2                     # 2 TensorCores per chip
    elif "v4" in kind or "v5p" in kind or "v5 p" in kind:
        num_tc = 2                     # megacore generations
    return vmem_limit, num_tc


def _choose_tiling(B, slot, c_in, c_out, weight_bytes, vmem_budget_bytes, num_tc):
    """Pick (nb slots per grid step, inner_slots per compute sub-tile)."""
    out_c = 4 * c_out
    act_itemsize = 4                                   # f32 activations / outputs
    inner_slots = max(1, INNER_LANE_TARGET // slot)    # ~512-lane compute sub-tiles

    # VMEM per lane of the double-buffered per-grid-step input/output blocks,
    # plus fixed cost of resident weights (x2 pipeline buffers) and the bf16 stack.
    per_lane = (c_in + out_c) * act_itemsize * 2
    stack_bytes = (KMAX * c_out * np.dtype(MXU_DTYPE).itemsize
                   * min(inner_slots, max(B, 1)) * slot)
    fixed = 2 * weight_bytes + stack_bytes
    avail = max(vmem_budget_bytes - fixed, slot * per_lane)
    max_lanes = min(avail // per_lane, MAX_LANES_PER_STEP)

    nb = max(1, min(B, int(max_lanes // slot)))
    if num_tc >= 2 and B >= 2:
        nb = min(nb, max(1, B // 2))   # keep >= 2 grid steps only when there are 2 TCs
    # largest divisor of B not exceeding nb (exact grid; degrades to 1 only for prime B,
    # which is a perf-only concern).
    while B % nb != 0:
        nb -= 1
    inner_slots = min(inner_slots, nb)
    while nb % inner_slots != 0:
        inner_slots -= 1
    return nb, inner_slots


# ---------------------------------------------------------------------------
# wrapper
# ---------------------------------------------------------------------------
def inception_block_forward(x, packed_params):
    """x: (B, C_in, L) -> (B, 4*C_out, L).  packed_params: list of (wb, wc, wm)."""
    B, C_in, L = x.shape
    c_out = packed_params[0][0].shape[0]
    n_modules = len(packed_params)
    out_c = 4 * c_out
    assert c_out % 8 == 0, "pad C_out to a multiple of 8 for sublane-aligned stores"

    # Lane-dense slot layout: [PAD_LEFT zeros | L samples | zeros], slot % 128 == 0.
    slot = _round_up(L + KMAX - 1, 128)
    assert slot >= L + KMAX - 1 and slot % 128 == 0  # rolls must stay slot-local

    # Transpose first so the flattening reshape to (C_in, B*slot) is free (row-major).
    xt = jnp.transpose(x, (1, 0, 2))                                  # (C_in, B, L)
    xp = jnp.zeros((C_in, B, slot), x.dtype).at[:, :, PAD_LEFT:PAD_LEFT + L].set(xt)
    x_flat = xp.reshape(C_in, B * slot)

    weight_args, weight_bytes = [], 0
    for wb, wc, wm in packed_params:
        for w in (wb, wc, wm):
            weight_args.append(w)
            weight_bytes += int(w.size) * w.dtype.itemsize

    vmem_limit, num_tc = _device_info()
    nb, inner_slots = _choose_tiling(B, slot, C_in, c_out, weight_bytes,
                                     vmem_limit // 2, num_tc)
    n_lanes = nb * slot
    n_inner = nb // inner_slots

    in_specs = [pl.BlockSpec((C_in, n_lanes), lambda i: (0, i))]       # activations
    # Weights: constant index_map -> fetched once and resident across grid steps.
    # (At large C_out, pl.Buffered(1) on these specs would also drop the second
    #  pipeline buffer; skipped here since the packed weights are tiny.)
    for w in weight_args:
        in_specs.append(pl.BlockSpec(w.shape, lambda i: (0, 0)))

    kernel = functools.partial(
        _inception_block_kernel, L=L, slot=slot, n_modules=n_modules,
        c_out=c_out, inner_slots=inner_slots, n_inner=n_inner)

    out_padded = pl.pallas_call(
        kernel,
        out_shape=jax.ShapeDtypeStruct((B, out_c, slot), x.dtype),
        grid_spec=pltpu.PrefetchScalarGridSpec(
            num_scalar_prefetch=0,
            grid=(B // nb,),
            in_specs=in_specs,
            out_specs=pl.BlockSpec((nb, out_c, slot), lambda i: (i, 0, 0)),
            scratch_shapes=[pltpu.VMEM((KMAX * c_out, inner_slots * slot), MXU_DTYPE)],
        ),
        compiler_params=pltpu.CompilerParams(
            dimension_semantics=("parallel",),
            vmem_limit_bytes=vmem_limit,
        ),
    )(x_flat, *weight_args)

    # Only slice off the pad columns; no reshape/transpose HBM round trip.
    return out_padded[:, :, PAD_LEFT:PAD_LEFT + L]


# ---------------------------------------------------------------------------
# one-time weight packing (im2col fold), done OUTSIDE the per-call path
# ---------------------------------------------------------------------------
def pack_module_params(raw):
    """raw: (wb, w1, w2, w3, wm), wb/wm (C_out, C_in), w_k (K, C_out, C_out)
       -> (wb, wc, wm) with wc the (3*C_out, KMAX*C_out) per-tap packed conv weight."""
    wb, w1, w2, w3, wm = raw
    c_out = wb.shape[0]
    wc = jnp.zeros((3 * c_out, KMAX * c_out), jnp.float32)
    for b, w in enumerate((w1, w2, w3)):
        k = w.shape[0]
        left, _ = _same_pad(k)
        for j in range(k):
            p = j - left + PAD_LEFT            # column block on the KMAX shift grid
            wc = wc.at[b * c_out:(b + 1) * c_out,
                       p * c_out:(p + 1) * c_out].set(w[j])
    return (wb.astype(MXU_DTYPE), wc.astype(MXU_DTYPE), wm.astype(MXU_DTYPE))


# ---------------------------------------------------------------------------
# deterministic parameter init (Conv1d-style, bias=False)
# ---------------------------------------------------------------------------
def _conv_w(key, c_out, c_in, k):
    fan_in = c_in * k
    bound = 1.0 / np.sqrt(fan_in)
    return jax.random.uniform(key, (k, c_out, c_in), jnp.float32, -bound, bound)


def init_inception_module(key, c_in, c_out):
    ks = jax.random.split(key, 5)
    wb = _conv_w(ks[0], c_out, c_in, 1)[0]               # (C_out, C_in)
    w1 = _conv_w(ks[1], c_out, c_out, KERNEL_SIZES[0])
    w2 = _conv_w(ks[2], c_out, c_out, KERNEL_SIZES[1])
    w3 = _conv_w(ks[3], c_out, c_out, KERNEL_SIZES[2])
    wm = _conv_w(ks[4], c_out, c_in, 1)[0]               # (C_out, C_in)
    return (wb, w1, w2, w3, wm)


def init_inception_block(key, c_in, c_out, depth=3):
    keys = jax.random.split(key, depth)
    params = []
    for d in range(depth):
        ci = c_in if d == 0 else c_out * 4
        params.append(init_inception_module(keys[d], ci, c_out))
    return params


# ---------------------------------------------------------------------------
# pure-JAX f32 reference (consumes the RAW params, independent of the packing)
# ---------------------------------------------------------------------------
def _ref_conv1d_same(x, w_koi):
    k = w_koi.shape[0]
    w = jnp.transpose(w_koi, (1, 2, 0))                  # (C_out, C_in, K)
    left, right = _same_pad(k)
    return lax.conv_general_dilated(
        x, w, window_strides=(1,), padding=[(left, right)],
        dimension_numbers=('NCH', 'OIH', 'NCH'))


def _ref_module(x, params):
    wb, w1, w2, w3, wm = params
    xb = jnp.einsum('oi,bil->bol', wb, x)
    c1 = _ref_conv1d_same(xb, w1)
    c2 = _ref_conv1d_same(xb, w2)
    c3 = _ref_conv1d_same(xb, w3)
    mp = lax.reduce_window(x, -jnp.inf, lax.max,
                           (1, 1, 3), (1, 1, 1),
                           [(0, 0), (0, 0), (1, 1)])
    cm = jnp.einsum('oi,bil->bol', wm, mp)
    return jax.nn.relu(jnp.concatenate([c1, c2, c3, cm], axis=1))


def _ref_block(x, params):
    for p in params:
        x = _ref_module(x, p)
    return x


if __name__ == "__main__":
    key = jax.random.PRNGKey(0)
    kx, kp = jax.random.split(key)

    B, C_in, L = 2, 4, 64
    C_out = 8                                  # each module outputs 4*C_out = 32 channels
    x = jax.random.normal(kx, (B, C_in, L), jnp.float32)

    raw_params = init_inception_block(kp, C_in, C_out, depth=3)
    packed_params = [pack_module_params(p) for p in raw_params]   # one-time repack

    fwd = jax.jit(lambda xx: inception_block_forward(xx, packed_params))
    out = jax.block_until_ready(fwd(x))

    ref = _ref_block(x, raw_params)
    assert out.shape == (B, 4 * C_out, L), out.shape
    max_err = float(jnp.max(jnp.abs(out - ref)))
    # bf16 MXU operands with f32 accumulation over a 320-deep contraction, 3 modules
    # deep -> tolerance loosened vs the pure-f32 version (per review guidance).
    assert jnp.allclose(out, ref, atol=5e-2, rtol=5e-2), f"max_err={max_err}"

    print("KERNEL_OK")
</pallas_src>

<mosaic_0001>
module attributes {stable_mosaic.version = 11 : i64} {
  func.func @_inception_block_kernel(%arg0: i32, %arg1: memref<4x256xf32, #tpu.memory_space<vmem>>, %arg2: memref<8x4xbf16, #tpu.memory_space<vmem>>, %arg3: memref<24x320xbf16, #tpu.memory_space<vmem>>, %arg4: memref<8x4xbf16, #tpu.memory_space<vmem>>, %arg5: memref<8x32xbf16, #tpu.memory_space<vmem>>, %arg6: memref<24x320xbf16, #tpu.memory_space<vmem>>, %arg7: memref<8x32xbf16, #tpu.memory_space<vmem>>, %arg8: memref<8x32xbf16, #tpu.memory_space<vmem>>, %arg9: memref<24x320xbf16, #tpu.memory_space<vmem>>, %arg10: memref<8x32xbf16, #tpu.memory_space<vmem>>, %arg11: memref<2x32x128xf32, #tpu.memory_space<vmem>>, %arg12: memref<320x256xbf16, #tpu.memory_space<vmem>>) attributes {dimension_semantics = [#tpu.dimension_semantics<parallel>], iteration_bounds = array<i64: 1>, scalar_prefetch = 0 : i64, scratch_operands = 1 : i64, tpu.core_type = #tpu.core_type<tc>, window_params = [{transform_indices = @transform_0, window_bounds = array<i64: 4, 256>}, {pipeline_mode = #tpu.pipeline_mode<synchronous>, transform_indices = @transform_1, window_bounds = array<i64: 8, 4>}, {pipeline_mode = #tpu.pipeline_mode<synchronous>, transform_indices = @transform_2, window_bounds = array<i64: 24, 320>}, {pipeline_mode = #tpu.pipeline_mode<synchronous>, transform_indices = @transform_3, window_bounds = array<i64: 8, 4>}, {pipeline_mode = #tpu.pipeline_mode<synchronous>, transform_indices = @transform_4, window_bounds = array<i64: 8, 32>}, {pipeline_mode = #tpu.pipeline_mode<synchronous>, transform_indices = @transform_5, window_bounds = array<i64: 24, 320>}, {pipeline_mode = #tpu.pipeline_mode<synchronous>, transform_indices = @transform_6, window_bounds = array<i64: 8, 32>}, {pipeline_mode = #tpu.pipeline_mode<synchronous>, transform_indices = @transform_7, window_bounds = array<i64: 8, 32>}, {pipeline_mode = #tpu.pipeline_mode<synchronous>, transform_indices = @transform_8, window_bounds = array<i64: 24, 320>}, {pipeline_mode = #tpu.pipeline_mode<synchronous>, transform_indices = @transform_9, window_bounds = array<i64: 8, 32>}, {transform_indices = @transform_10, window_bounds = array<i64: 2, 32, 128>}]} {
    %0 = tpu.iota {dimensions = array<i32: 1>} : vector<1x256xi32>
    %c128_i32 = arith.constant 128 : i32
    %c0_i32 = arith.constant 0 : i32
    %1 = arith.cmpi eq, %c128_i32, %c0_i32 : i32
    %c1_i32 = arith.constant 1 : i32
    %2 = arith.select %1, %c1_i32, %c128_i32 : i32
    %3 = vector.broadcast %2 : i32 to vector<1x256xi32>
    %4 = arith.remsi %0, %3 : vector<1x256xi32>
    %c0_i32_0 = arith.constant 0 : i32
    %5 = vector.broadcast %c0_i32_0 : i32 to vector<1x256xi32>
    %6 = arith.cmpi ne, %4, %5 : vector<1x256xi32>
    %c0_i32_1 = arith.constant 0 : i32
    %7 = vector.broadcast %c0_i32_1 : i32 to vector<1x256xi32>
    %8 = arith.cmpi slt, %4, %7 : vector<1x256xi32>
    %c0_i32_2 = arith.constant 0 : i32
    %9 = arith.cmpi slt, %2, %c0_i32_2 : i32
    %10 = vector.broadcast %9 : i1 to vector<1x256xi1>
    %11 = vector.broadcast %10 : vector<1x256xi1> to vector<1x256xi1>
    %12 = arith.xori %8, %11 : vector<1x256xi1>
    %13 = arith.andi %12, %6 : vector<1x256xi1>
    %14 = vector.broadcast %2 : i32 to vector<1x256xi32>
    %15 = arith.addi %4, %14 : vector<1x256xi32>
    %16 = arith.select %13, %15, %4 : vector<1x256xi1>, vector<1x256xi32>
    %c19_i32 = arith.constant 19 : i32
    %17 = vector.broadcast %c19_i32 : i32 to vector<1x256xi32>
    %18 = arith.subi %16, %17 : vector<1x256xi32>
    %c0_i32_3 = arith.constant 0 : i32
    %19 = vector.broadcast %c0_i32_3 : i32 to vector<1x256xi32>
    %20 = arith.cmpi sge, %18, %19 : vector<1x256xi32>
    %c64_i32 = arith.constant 64 : i32
    %21 = vector.broadcast %c64_i32 : i32 to vector<1x256xi32>
    %22 = arith.cmpi slt, %18, %21 : vector<1x256xi32>
    %23 = arith.andi %20, %22 : vector<1x256xi1>
    %24 = arith.extui %23 : vector<1x256xi1> to vector<1x256xi32>
    %25 = arith.sitofp %24 : vector<1x256xi32> to vector<1x256xf32>
    %c0_i32_4 = arith.constant 0 : i32
    %26 = vector.broadcast %c0_i32_4 : i32 to vector<1x256xi32>
    %27 = arith.cmpi eq, %18, %26 : vector<1x256xi32>
    %cst = arith.constant 0xFF800000 : f32
    %cst_5 = arith.constant 0.000000e+00 : f32
    %28 = vector.broadcast %cst : f32 to vector<1x256xf32>
    %29 = vector.broadcast %cst_5 : f32 to vector<1x256xf32>
    %30 = arith.select %27, %28, %29 : vector<1x256xi1>, vector<1x256xf32>
    %c63_i32 = arith.constant 63 : i32
    %31 = vector.broadcast %c63_i32 : i32 to vector<1x256xi32>
    %32 = arith.cmpi eq, %18, %31 : vector<1x256xi32>
    %cst_6 = arith.constant 0xFF800000 : f32
    %cst_7 = arith.constant 0.000000e+00 : f32
    %33 = vector.broadcast %cst_6 : f32 to vector<1x256xf32>
    %34 = vector.broadcast %cst_7 : f32 to vector<1x256xf32>
    %35 = arith.select %32, %33, %34 : vector<1x256xi1>, vector<1x256xf32>
    %c0 = arith.constant 0 : index
    %c0_8 = arith.constant 0 : index
    %36 = vector.load %arg1[%c0, %c0_8] : memref<4x256xf32, #tpu.memory_space<vmem>>, vector<4x256xf32>
    %c0_9 = arith.constant 0 : index
    %c0_10 = arith.constant 0 : index
    %37 = vector.load %arg2[%c0_9, %c0_10] : memref<8x4xbf16, #tpu.memory_space<vmem>>, vector<8x4xbf16>
    %c0_11 = arith.constant 0 : index
    %c0_12 = arith.constant 0 : index
    %38 = vector.load %arg3[%c0_11, %c0_12] : memref<24x320xbf16, #tpu.memory_space<vmem>>, vector<24x320xbf16>
    %c0_13 = arith.constant 0 : index
    %c0_14 = arith.constant 0 : index
    %39 = vector.load %arg4[%c0_13, %c0_14] : memref<8x4xbf16, #tpu.memory_space<vmem>>, vector<8x4xbf16>
    %40 = arith.truncf %36 : vector<4x256xf32> to vector<4x256xbf16>
    %cst_15 = arith.constant dense<0.000000e+00> : vector<8x256xf32>
    %41 = tpu.matmul %37, %40, %cst_15 {dimension_numbers = #tpu.dot_dimension_numbers<[1], [0], [0], [1], [0, 0, 1, 1], [], []>} : vector<8x4xbf16>, vector<4x256xbf16>, vector<8x256xf32> -> vector<8x256xf32>
    %c19_i32_16 = arith.constant 19 : i32
    %42 = tpu.dynamic_rotate %41 by %c19_i32_16 dim 1 : vector<8x256xf32>, i32 -> vector<8x256xf32>
    %c18_i32 = arith.constant 18 : i32
    %43 = tpu.dynamic_rotate %41 by %c18_i32 dim 1 : vector<8x256xf32>, i32 -> vector<8x256xf32>
    %44 = tpu.concatenate %42, %43 in 0 : vector<8x256xf32>, vector<8x256xf32> -> vector<16x256xf32>
    %45 = arith.truncf %44 : vector<16x256xf32> to vector<16x256xbf16>
    %c0_17 = arith.constant 0 : index
    %c0_18 = arith.constant 0 : index
    %46 = vector.load %arg12[%c0_17, %c0_18] : memref<320x256xbf16, #tpu.memory_space<vmem>>, vector<16x256xbf16>
    tpu.vector_store %arg12[%c0_17, %c0_18], %45 {strides = array<i32>} : memref<320x256xbf16, #tpu.memory_space<vmem>>, vector<16x256xbf16>,
    %c17_i32 = arith.constant 17 : i32
    %47 = tpu.dynamic_rotate %41 by %c17_i32 dim 1 : vector<8x256xf32>, i32 -> vector<8x256xf32>
    %c16_i32 = arith.constant 16 : i32
    %48 = tpu.dynamic_rotate %41 by %c16_i32 dim 1 : vector<8x256xf32>, i32 -> vector<8x256xf32>
    %49 = tpu.concatenate %47, %48 in 0 : vector<8x256xf32>, vector<8x256xf32> -> vector<16x256xf32>
    %50 = arith.truncf %49 : vector<16x256xf32> to vector<16x256xbf16>
    %c16 = arith.constant 16 : index
    %c0_19 = arith.constant 0 : index
    %51 = vector.load %arg12[%c16, %c0_19] : memref<320x256xbf16, #tpu.memory_space<vmem>>, vector<16x256xbf16>
    tpu.vector_store %arg12[%c16, %c0_19], %50 {strides = array<i32>} : memref<320x256xbf16, #tpu.memory_space<vmem>>, vector<16x256xbf16>,
    %c15_i32 = arith.constant 15 : i32
    %52 = tpu.dynamic_rotate %41 by %c15_i32 dim 1 : vector<8x256xf32>, i32 -> vector<8x256xf32>
    %c14_i32 = arith.constant 14 : i32
    %53 = tpu.dynamic_rotate %41 by %c14_i32 dim 1 : vector<8x256xf32>, i32 -> vector<8x256xf32>
    %54 = tpu.concatenate %52, %53 in 0 : vector<8x256xf32>, vector<8x256xf32> -> vector<16x256xf32>
    %55 = arith.truncf %54 : vector<16x256xf32> to vector<16x256xbf16>
    %c32 = arith.constant 32 : index
    %c0_20 = arith.constant 0 : index
    %56 = vector.load %arg12[%c32, %c0_20] : memref<320x256xbf16, #tpu.memory_space<vmem>>, vector<16x256xbf16>
    tpu.vector_store %arg12[%c32, %c0_20], %55 {strides = array<i32>} : memref<320x256xbf16, #tpu.memory_space<vmem>>, vector<16x256xbf16>,
    %c13_i32 = arith.constant 13 : i32
    %57 = tpu.dynamic_rotate %41 by %c13_i32 dim 1 : vector<8x256xf32>, i32 -> vector<8x256xf32>
    %c12_i32 = arith.constant 12 : i32
    %58 = tpu.dynamic_rotate %41 by %c12_i32 dim 1 : vector<8x256xf32>, i32 -> vector<8x256xf32>
    %59 = tpu.concatenate %57, %58 in 0 : vector<8x256xf32>, vector<8x256xf32> -> vector<16x256xf32>
    %60 = arith.truncf %59 : vector<16x256xf32> to vector<16x256xbf16>
    %c48 = arith.constant 48 : index
    %c0_21 = arith.constant 0 : index
    %61 = vector.load %arg12[%c48, %c0_21] : memref<320x256xbf16, #tpu.memory_space<vmem>>, vector<16x256xbf16>
    tpu.vector_store %arg12[%c48, %c0_21], %60 {strides = array<i32>} : memref<320x256xbf16, #tpu.memory_space<vmem>>, vector<16x256xbf16>,
    %c11_i32 = arith.constant 11 : i32
    %62 = tpu.dynamic_rotate %41 by %c11_i32 dim 1 : vector<8x256xf32>, i32 -> vector<8x256xf32>
    %c10_i32 = arith.constant 10 : i32
    %63 = tpu.dynamic_rotate %41 by %c10_i32 dim 1 : vector<8x256xf32>, i32 -> vector<8x256xf32>
    %64 = tpu.concatenate %62, %63 in 0 : vector<8x256xf32>, vector<8x256xf32> -> vector<16x256xf32>
    %65 = arith.truncf %64 : vector<16x256xf32> to vector<16x256xbf16>
    %c64 = arith.constant 64 : index
    %c0_22 = arith.constant 0 : index
    %66 = vector.load %arg12[%c64, %c0_22] : memref<320x256xbf16, #tpu.memory_space<vmem>>, vector<16x256xbf16>
    tpu.vector_store %arg12[%c64, %c0_22], %65 {strides = array<i32>} : memref<320x256xbf16, #tpu.memory_space<vmem>>, vector<16x256xbf16>,
    %c9_i32 = arith.constant 9 : i32
    %67 = tpu.dynamic_rotate %41 by %c9_i32 dim 1 : vector<8x256xf32>, i32 -> vector<8x256xf32>
    %c8_i32 = arith.constant 8 : i32
    %68 = tpu.dynamic_rotate %41 by %c8_i32 dim 1 : vector<8x256xf32>, i32 -> vector<8x256xf32>
    %69 = tpu.concatenate %67, %68 in 0 : vector<8x256xf32>, vector<8x256xf32> -> vector<16x256xf32>
    %70 = arith.truncf %69 : vector<16x256xf32> to vector<16x256xbf16>
    %c80 = arith.constant 80 : index
    %c0_23 = arith.constant 0 : index
    %71 = vector.load %arg12[%c80, %c0_23] : memref<320x256xbf16, #tpu.memory_space<vmem>>, vector<16x256xbf16>
    tpu.vector_store %arg12[%c80, %c0_23], %70 {strides = array<i32>} : memref<320x256xbf16, #tpu.memory_space<vmem>>, vector<16x256xbf16>,
    %c7_i32 = arith.constant 7 : i32
    %72 = tpu.dynamic_rotate %41 by %c7_i32 dim 1 : vector<8x256xf32>, i32 -> vector<8x256xf32>
    %c6_i32 = arith.constant 6 : i32
    %73 = tpu.dynamic_rotate %41 by %c6_i32 dim 1 : vector<8x256xf32>, i32 -> vector<8x256xf32>
    %74 = tpu.concatenate %72, %73 in 0 : vector<8x256xf32>, vector<8x256xf32> -> vector<16x256xf32>
    %75 = arith.truncf %74 : vector<16x256xf32> to vector<16x256xbf16>
    %c96 = arith.constant 96 : index
    %c0_24 = arith.constant 0 : index
    %76 = vector.load %arg12[%c96, %c0_24] : memref<320x256xbf16, #tpu.memory_space<vmem>>, vector<16x256xbf16>
    tpu.vector_store %arg12[%c96, %c0_24], %75 {strides = array<i32>} : memref<320x256xbf16, #tpu.memory_space<vmem>>, vector<16x256xbf16>,
    %c5_i32 = arith.constant 5 : i32
    %77 = tpu.dynamic_rotate %41 by %c5_i32 dim 1 : vector<8x256xf32>, i32 -> vector<8x256xf32>
    %c4_i32 = arith.constant 4 : i32
    %78 = tpu.dynamic_rotate %41 by %c4_i32 dim 1 : vector<8x256xf32>, i32 -> vector<8x256xf32>
    %79 = tpu.concatenate %77, %78 in 0 : vector<8x256xf32>, vector<8x256xf32> -> vector<16x256xf32>
    %80 = arith.truncf %79 : vector<16x256xf32> to vector<16x256xbf16>
    %c112 = arith.constant 112 : index
    %c0_25 = arith.constant 0 : index
    %81 = vector.load %arg12[%c112, %c0_25] : memref<320x256xbf16, #tpu.memory_space<vmem>>, vector<16x256xbf16>
    tpu.vector_store %arg12[%c112, %c0_25], %80 {strides = array<i32>} : memref<320x256xbf16, #tpu.memory_space<vmem>>, vector<16x256xbf16>,
    %c3_i32 = arith.constant 3 : i32
    %82 = tpu.dynamic_rotate %41 by %c3_i32 dim 1 : vector<8x256xf32>, i32 -> vector<8x256xf32>
    %c2_i32 = arith.constant 2 : i32
    %83 = tpu.dynamic_rotate %41 by %c2_i32 dim 1 : vector<8x256xf32>, i32 -> vector<8x256xf32>
    %84 = tpu.concatenate %82, %83 in 0 : vector<8x256xf32>, vector<8x256xf32> -> vector<16x256xf32>
    %85 = arith.truncf %84 : vector<16x256xf32> to vector<16x256xbf16>
    %c128 = arith.constant 128 : index
    %c0_26 = arith.constant 0 : index
    %86 = vector.load %arg12[%c128, %c0_26] : memref<320x256xbf16, #tpu.memory_space<vmem>>, vector<16x256xbf16>
    tpu.vector_store %arg12[%c128, %c0_26], %85 {strides = array<i32>} : memref<320x256xbf16, #tpu.memory_space<vmem>>, vector<16x256xbf16>,
    %c1_i32_27 = arith.constant 1 : i32
    %87 = tpu.dynamic_rotate %41 by %c1_i32_27 dim 1 : vector<8x256xf32>, i32 -> vector<8x256xf32>
    %88 = tpu.concatenate %87, %41 in 0 : vector<8x256xf32>, vector<8x256xf32> -> vector<16x256xf32>
    %89 = arith.truncf %88 : vector<16x256xf32> to vector<16x256xbf16>
    %c144 = arith.constant 144 : index
    %c0_28 = arith.constant 0 : index
    %90 = vector.load %arg12[%c144, %c0_28] : memref<320x256xbf16, #tpu.memory_space<vmem>>, vector<16x256xbf16>
    tpu.vector_store %arg12[%c144, %c0_28], %89 {strides = array<i32>} : memref<320x256xbf16, #tpu.memory_space<vmem>>, vector<16x256xbf16>,
    %c255_i32 = arith.constant 255 : i32
    %91 = tpu.dynamic_rotate %41 by %c255_i32 dim 1 : vector<8x256xf32>, i32 -> vector<8x256xf32>
    %c254_i32 = arith.constant 254 : i32
    %92 = tpu.dynamic_rotate %41 by %c254_i32 dim 1 : vector<8x256xf32>, i32 -> vector<8x256xf32>
    %93 = tpu.concatenate %91, %92 in 0 : vector<8x256xf32>, vector<8x256xf32> -> vector<16x256xf32>
    %94 = arith.truncf %93 : vector<16x256xf32> to vector<16x256xbf16>
    %c160 = arith.constant 160 : index
    %c0_29 = arith.constant 0 : index
    %95 = vector.load %arg12[%c160, %c0_29] : memref<320x256xbf16, #tpu.memory_space<vmem>>, vector<16x256xbf16>
    tpu.vector_store %arg12[%c160, %c0_29], %94 {strides = array<i32>} : memref<320x256xbf16, #tpu.memory_space<vmem>>, vector<16x256xbf16>,
    %c253_i32 = arith.constant 253 : i32
    %96 = tpu.dynamic_rotate %41 by %c253_i32 dim 1 : vector<8x256xf32>, i32 -> vector<8x256xf32>
    %c252_i32 = arith.constant 252 : i32
    %97 = tpu.dynamic_rotate %41 by %c252_i32 dim 1 : vector<8x256xf32>, i32 -> vector<8x256xf32>
    %98 = tpu.concatenate %96, %97 in 0 : vector<8x256xf32>, vector<8x256xf32> -> vector<16x256xf32>
    %99 = arith.truncf %98 : vector<16x256xf32> to vector<16x256xbf16>
    %c176 = arith.constant 176 : index
    %c0_30 = arith.constant 0 : index
    %100 = vector.load %arg12[%c176, %c0_30] : memref<320x256xbf16, #tpu.memory_space<vmem>>, vector<16x256xbf16>
    tpu.vector_store %arg12[%c176, %c0_30], %99 {strides = array<i32>} : memref<320x256xbf16, #tpu.memory_space<vmem>>, vector<16x256xbf16>,
    %c251_i32 = arith.constant 251 : i32
    %101 = tpu.dynamic_rotate %41 by %c251_i32 dim 1 : vector<8x256xf32>, i32 -> vector<8x256xf32>
    %c250_i32 = arith.constant 250 : i32
    %102 = tpu.dynamic_rotate %41 by %c250_i32 dim 1 : vector<8x256xf32>, i32 -> vector<8x256xf32>
    %103 = tpu.concatenate %101, %102 in 0 : vector<8x256xf32>, vector<8x256xf32> -> vector<16x256xf32>
    %104 = arith.truncf %103 : vector<16x256xf32> to vector<16x256xbf16>
    %c192 = arith.constant 192 : index
    %c0_31 = arith.constant 0 : index
    %105 = vector.load %arg12[%c192, %c0_31] : memref<320x256xbf16, #tpu.memory_space<vmem>>, vector<16x256xbf16>
    tpu.vector_store %arg12[%c192, %c0_31], %104 {strides = array<i32>} : memref<320x256xbf16, #tpu.memory_space<vmem>>, vector<16x256xbf16>,
    %c249_i32 = arith.constant 249 : i32
    %106 = tpu.dynamic_rotate %41 by %c249_i32 dim 1 : vector<8x256xf32>, i32 -> vector<8x256xf32>
    %c248_i32 = arith.constant 248 : i32
    %107 = tpu.dynamic_rotate %41 by %c248_i32 dim 1 : vector<8x256xf32>, i32 -> vector<8x256xf32>
    %108 = tpu.concatenate %106, %107 in 0 : vector<8x256xf32>, vector<8x256xf32> -> vector<16x256xf32>
    %109 = arith.truncf %108 : vector<16x256xf32> to vector<16x256xbf16>
    %c208 = arith.constant 208 : index
    %c0_32 = arith.constant 0 : index
    %110 = vector.load %arg12[%c208, %c0_32] : memref<320x256xbf16, #tpu.memory_space<vmem>>, vector<16x256xbf16>
    tpu.vector_store %arg12[%c208, %c0_32], %109 {strides = array<i32>} : memref<320x256xbf16, #tpu.memory_space<vmem>>, vector<16x256xbf16>,
    %c247_i32 = arith.constant 247 : i32
    %111 = tpu.dynamic_rotate %41 by %c247_i32 dim 1 : vector<8x256xf32>, i32 -> vector<8x256xf32>
    %c246_i32 = arith.constant 246 : i32
    %112 = tpu.dynamic_rotate %41 by %c246_i32 dim 1 : vector<8x256xf32>, i32 -> vector<8x256xf32>
    %113 = tpu.concatenate %111, %112 in 0 : vector<8x256xf32>, vector<8x256xf32> -> vector<16x256xf32>
    %114 = arith.truncf %113 : vector<16x256xf32> to vector<16x256xbf16>
    %c224 = arith.constant 224 : index
    %c0_33 = arith.constant 0 : index
    %115 = vector.load %arg12[%c224, %c0_33] : memref<320x256xbf16, #tpu.memory_space<vmem>>, vector<16x256xbf16>
    tpu.vector_store %arg12[%c224, %c0_33], %114 {strides = array<i32>} : memref<320x256xbf16, #tpu.memory_space<vmem>>, vector<16x256xbf16>,
    %c245_i32 = arith.constant 245 : i32
    %116 = tpu.dynamic_rotate %41 by %c245_i32 dim 1 : vector<8x256xf32>, i32 -> vector<8x256xf32>
    %c244_i32 = arith.constant 244 : i32
    %117 = tpu.dynamic_rotate %41 by %c244_i32 dim 1 : vector<8x256xf32>, i32 -> vector<8x256xf32>
    %118 = tpu.concatenate %116, %117 in 0 : vector<8x256xf32>, vector<8x256xf32> -> vector<16x256xf32>
    %119 = arith.truncf %118 : vector<16x256xf32> to vector<16x256xbf16>
    %c240 = arith.constant 240 : index
    %c0_34 = arith.constant 0 : index
    %120 = vector.load %arg12[%c240, %c0_34] : memref<320x256xbf16, #tpu.memory_space<vmem>>, vector<16x256xbf16>
    tpu.vector_store %arg12[%c240, %c0_34], %119 {strides = array<i32>} : memref<320x256xbf16, #tpu.memory_space<vmem>>, vector<16x256xbf16>,
    %c243_i32 = arith.constant 243 : i32
    %121 = tpu.dynamic_rotate %41 by %c243_i32 dim 1 : vector<8x256xf32>, i32 -> vector<8x256xf32>
    %c242_i32 = arith.constant 242 : i32
    %122 = tpu.dynamic_rotate %41 by %c242_i32 dim 1 : vector<8x256xf32>, i32 -> vector<8x256xf32>
    %123 = tpu.concatenate %121, %122 in 0 : vector<8x256xf32>, vector<8x256xf32> -> vector<16x256xf32>
    %124 = arith.truncf %123 : vector<16x256xf32> to vector<16x256xbf16>
    %c256 = arith.constant 256 : index
    %c0_35 = arith.constant 0 : index
    %125 = vector.load %arg12[%c256, %c0_35] : memref<320x256xbf16, #tpu.memory_space<vmem>>, vector<16x256xbf16>
    tpu.vector_store %arg12[%c256, %c0_35], %124 {strides = array<i32>} : memref<320x256xbf16, #tpu.memory_space<vmem>>, vector<16x256xbf16>,
    %c241_i32 = arith.constant 241 : i32
    %126 = tpu.dynamic_rotate %41 by %c241_i32 dim 1 : vector<8x256xf32>, i32 -> vector<8x256xf32>
    %c240_i32 = arith.constant 240 : i32
    %127 = tpu.dynamic_rotate %41 by %c240_i32 dim 1 : vector<8x256xf32>, i32 -> vector<8x256xf32>
    %128 = tpu.concatenate %126, %127 in 0 : vector<8x256xf32>, vector<8x256xf32> -> vector<16x256xf32>
    %129 = arith.truncf %128 : vector<16x256xf32> to vector<16x256xbf16>
    %c272 = arith.constant 272 : index
    %c0_36 = arith.constant 0 : index
    %130 = vector.load %arg12[%c272, %c0_36] : memref<320x256xbf16, #tpu.memory_space<vmem>>, vector<16x256xbf16>
    tpu.vector_store %arg12[%c272, %c0_36], %129 {strides = array<i32>} : memref<320x256xbf16, #tpu.memory_space<vmem>>, vector<16x256xbf16>,
    %c239_i32 = arith.constant 239 : i32
    %131 = tpu.dynamic_rotate %41 by %c239_i32 dim 1 : vector<8x256xf32>, i32 -> vector<8x256xf32>
    %c238_i32 = arith.constant 238 : i32
    %132 = tpu.dynamic_rotate %41 by %c238_i32 dim 1 : vector<8x256xf32>, i32 -> vector<8x256xf32>
    %133 = tpu.concatenate %131, %132 in 0 : vector<8x256xf32>, vector<8x256xf32> -> vector<16x256xf32>
    %134 = arith.truncf %133 : vector<16x256xf32> to vector<16x256xbf16>
    %c288 = arith.constant 288 : index
    %c0_37 = arith.constant 0 : index
    %135 = vector.load %arg12[%c288, %c0_37] : memref<320x256xbf16, #tpu.memory_space<vmem>>, vector<16x256xbf16>
    tpu.vector_store %arg12[%c288, %c0_37], %134 {strides = array<i32>} : memref<320x256xbf16, #tpu.memory_space<vmem>>, vector<16x256xbf16>,
    %c237_i32 = arith.constant 237 : i32
    %136 = tpu.dynamic_rotate %41 by %c237_i32 dim 1 : vector<8x256xf32>, i32 -> vector<8x256xf32>
    %c236_i32 = arith.constant 236 : i32
    %137 = tpu.dynamic_rotate %41 by %c236_i32 dim 1 : vector<8x256xf32>, i32 -> vector<8x256xf32>
    %138 = tpu.concatenate %136, %137 in 0 : vector<8x256xf32>, vector<8x256xf32> -> vector<16x256xf32>
    %139 = arith.truncf %138 : vector<16x256xf32> to vector<16x256xbf16>
    %c304 = arith.constant 304 : index
    %c0_38 = arith.constant 0 : index
    %140 = vector.load %arg12[%c304, %c0_38] : memref<320x256xbf16, #tpu.memory_space<vmem>>, vector<16x256xbf16>
    tpu.vector_store %arg12[%c304, %c0_38], %139 {strides = array<i32>} : memref<320x256xbf16, #tpu.memory_space<vmem>>, vector<16x256xbf16>,
    %c0_39 = arith.constant 0 : index
    %c0_40 = arith.constant 0 : index
    %141 = vector.load %arg12[%c0_39, %c0_40] : memref<320x256xbf16, #tpu.memory_space<vmem>>, vector<320x256xbf16>
    %cst_41 = arith.constant dense<0.000000e+00> : vector<24x256xf32>
    %142 = tpu.matmul %38, %141, %cst_41 {dimension_numbers = #tpu.dot_dimension_numbers<[1], [0], [0], [1], [0, 0, 1, 1], [], []>} : vector<24x320xbf16>, vector<320x256xbf16>, vector<24x256xf32> -> vector<24x256xf32>
    %c1_i32_42 = arith.constant 1 : i32
    %143 = tpu.dynamic_rotate %36 by %c1_i32_42 dim 1 : vector<4x256xf32>, i32 -> vector<4x256xf32>
    %144 = vector.broadcast %30 : vector<1x256xf32> to vector<4x256xf32>
    %145 = arith.addf %143, %144 : vector<4x256xf32>
    %c255_i32_43 = arith.constant 255 : i32
    %146 = tpu.dynamic_rotate %36 by %c255_i32_43 dim 1 : vector<4x256xf32>, i32 -> vector<4x256xf32>
    %147 = vector.broadcast %35 : vector<1x256xf32> to vector<4x256xf32>
    %148 = arith.addf %146, %147 : vector<4x256xf32>
    %149 = arith.maximumf %36, %145 : vector<4x256xf32>
    %150 = arith.maximumf %149, %148 : vector<4x256xf32>
    %151 = arith.truncf %150 : vector<4x256xf32> to vector<4x256xbf16>
    %cst_44 = arith.constant dense<0.000000e+00> : vector<8x256xf32>
    %152 = tpu.matmul %39, %151, %cst_44 {dimension_numbers = #tpu.dot_dimension_numbers<[1], [0], [0], [1], [0, 0, 1, 1], [], []>} : vector<8x4xbf16>, vector<4x256xbf16>, vector<8x256xf32> -> vector<8x256xf32>
    %153 = tpu.concatenate %142, %152 in 0 : vector<24x256xf32>, vector<8x256xf32> -> vector<32x256xf32>
    %cst_45 = arith.constant 0.000000e+00 : f32
    %154 = vector.broadcast %cst_45 : f32 to vector<32x256xf32>
    %155 = arith.maximumf %153, %154 : vector<32x256xf32>
    %156 = vector.broadcast %25 : vector<1x256xf32> to vector<32x256xf32>
    %157 = arith.mulf %155, %156 : vector<32x256xf32>
    %c0_46 = arith.constant 0 : index
    %c0_47 = arith.constant 0 : index
    %158 = vector.load %arg5[%c0_46, %c0_47] : memref<8x32xbf16, #tpu.memory_space<vmem>>, vector<8x32xbf16>
    %c0_48 = arith.constant 0 : index
    %c0_49 = arith.constant 0 : index
    %159 = vector.load %arg6[%c0_48, %c0_49] : memref<24x320xbf16, #tpu.memory_space<vmem>>, vector<24x320xbf16>
    %c0_50 = arith.constant 0 : index
    %c0_51 = arith.constant 0 : index
    %160 = vector.load %arg7[%c0_50, %c0_51] : memref<8x32xbf16, #tpu.memory_space<vmem>>, vector<8x32xbf16>
    %161 = arith.truncf %157 : vector<32x256xf32> to vector<32x256xbf16>
    %cst_52 = arith.constant dense<0.000000e+00> : vector<8x256xf32>
    %162 = tpu.matmul %158, %161, %cst_52 {dimension_numbers = #tpu.dot_dimension_numbers<[1], [0], [0], [1], [0, 0, 1, 1], [], []>} : vector<8x32xbf16>, vector<32x256xbf16>, vector<8x256xf32> -> vector<8x256xf32>
    %c19_i32_53 = arith.constant 19 : i32
    %163 = tpu.dynamic_rotate %162 by %c19_i32_53 dim 1 : vector<8x256xf32>, i32 -> vector<8x256xf32>
    %c18_i32_54 = arith.constant 18 : i32
    %164 = tpu.dynamic_rotate %162 by %c18_i32_54 dim 1 : vector<8x256xf32>, i32 -> vector<8x256xf32>
    %165 = tpu.concatenate %163, %164 in 0 : vector<8x256xf32>, vector<8x256xf32> -> vector<16x256xf32>
    %166 = arith.truncf %165 : vector<16x256xf32> to vector<16x256xbf16>
    %c0_55 = arith.constant 0 : index
    %c0_56 = arith.constant 0 : index
    %167 = vector.load %arg12[%c0_55, %c0_56] : memref<320x256xbf16, #tpu.memory_space<vmem>>, vector<16x256xbf16>
    tpu.vector_store %arg12[%c0_55, %c0_56], %166 {strides = array<i32>} : memref<320x256xbf16, #tpu.memory_space<vmem>>, vector<16x256xbf16>,
    %c17_i32_57 = arith.constant 17 : i32
    %168 = tpu.dynamic_rotate %162 by %c17_i32_57 dim 1 : vector<8x256xf32>, i32 -> vector<8x256xf32>
    %c16_i32_58 = arith.constant 16 : i32
    %169 = tpu.dynamic_rotate %162 by %c16_i32_58 dim 1 : vector<8x256xf32>, i32 -> vector<8x256xf32>
    %170 = tpu.concatenate %168, %169 in 0 : vector<8x256xf32>, vector<8x256xf32> -> vector<16x256xf32>
    %171 = arith.truncf %170 : vector<16x256xf32> to vector<16x256xbf16>
    %c16_59 = arith.constant 16 : index
    %c0_60 = arith.constant 0 : index
    %172 = vector.load %arg12[%c16_59, %c0_60] : memref<320x256xbf16, #tpu.memory_space<vmem>>, vector<16x256xbf16>
    tpu.vector_store %arg12[%c16_59, %c0_60], %171 {strides = array<i32>} : memref<320x256xbf16, #tpu.memory_space<vmem>>, vector<16x256xbf16>,
    %c15_i32_61 = arith.constant 15 : i32
    %173 = tpu.dynamic_rotate %162 by %c15_i32_61 dim 1 : vector<8x256xf32>, i32 -> vector<8x256xf32>
    %c14_i32_62 = arith.constant 14 : i32
    %174 = tpu.dynamic_rotate %162 by %c14_i32_62 dim 1 : vector<8x256xf32>, i32 -> vector<8x256xf32>
    %175 = tpu.concatenate %173, %174 in 0 : vector<8x256xf32>, vector<8x256xf32> -> vector<16x256xf32>
    %176 = arith.truncf %175 : vector<16x256xf32> to vector<16x256xbf16>
    %c32_63 = arith.constant 32 : index
    %c0_64 = arith.constant 0 : index
    %177 = vector.load %arg12[%c32_63, %c0_64] : memref<320x256xbf16, #tpu.memory_space<vmem>>, vector<16x256xbf16>
    tpu.vector_store %arg12[%c32_63, %c0_64], %176 {strides = array<i32>} : memref<320x256xbf16, #tpu.memory_space<vmem>>, vector<16x256xbf16>,
    %c13_i32_65 = arith.constant 13 : i32
    %178 = tpu.dynamic_rotate %162 by %c13_i32_65 dim 1 : vector<8x256xf32>, i32 -> vector<8x256xf32>
    %c12_i32_66 = arith.constant 12 : i32
    %179 = tpu.dynamic_rotate %162 by %c12_i32_66 dim 1 : vector<8x256xf32>, i32 -> vector<8x256xf32>
    %180 = tpu.concatenate %178, %179 in 0 : vector<8x256xf32>, vector<8x256xf32> -> vector<16x256xf32>
    %181 = arith.truncf %180 : vector<16x256xf32> to vector<16x256xbf16>
    %c48_67 = arith.constant 48 : index
    %c0_68 = arith.constant 0 : index
    %182 = vector.load %arg12[%c48_67, %c0_68] : memref<320x256xbf16, #tpu.memory_space<vmem>>, vector<16x256xbf16>
    tpu.vector_store %arg12[%c48_67, %c0_68], %181 {strides = array<i32>} : memref<320x256xbf16, #tpu.memory_space<vmem>>, vector<16x256xbf16>,
    %c11_i32_69 = arith.constant 11 : i32
    %183 = tpu.dynamic_rotate %162 by %c11_i32_69 dim 1 : vector<8x256xf32>, i32 -> vector<8x256xf32>
    %c10_i32_70 = arith.constant 10 : i32
    %184 = tpu.dynamic_rotate %162 by %c10_i32_70 dim 1 : vector<8x256xf32>, i32 -> vector<8x256xf32>
    %185 = tpu.concatenate %183, %184 in 0 : vector<8x256xf32>, vector<8x256xf32> -> vector<16x256xf32>
    %186 = arith.truncf %185 : vector<16x256xf32> to vector<16x256xbf16>
    %c64_71 = arith.constant 64 : index
    %c0_72 = arith.constant 0 : index
    %187 = vector.load %arg12[%c64_71, %c0_72] : memref<320x256xbf16, #tpu.memory_space<vmem>>, vector<16x256xbf16>
    tpu.vector_store %arg12[%c64_71, %c0_72], %186 {strides = array<i32>} : memref<320x256xbf16, #tpu.memory_space<vmem>>, vector<16x256xbf16>,
    %c9_i32_73 = arith.constant 9 : i32
    %188 = tpu.dynamic_rotate %162 by %c9_i32_73 dim 1 : vector<8x256xf32>, i32 -> vector<8x256xf32>
    %c8_i32_74 = arith.constant 8 : i32
    %189 = tpu.dynamic_rotate %162 by %c8_i32_74 dim 1 : vector<8x256xf32>, i32 -> vector<8x256xf32>
    %190 = tpu.concatenate %188, %189 in 0 : vector<8x256xf32>, vector<8x256xf32> -> vector<16x256xf32>
    %191 = arith.truncf %190 : vector<16x256xf32> to vector<16x256xbf16>
    %c80_75 = arith.constant 80 : index
    %c0_76 = arith.constant 0 : index
    %192 = vector.load %arg12[%c80_75, %c0_76] : memref<320x256xbf16, #tpu.memory_space<vmem>>, vector<16x256xbf16>
    tpu.vector_store %arg12[%c80_75, %c0_76], %191 {strides = array<i32>} : memref<320x256xbf16, #tpu.memory_space<vmem>>, vector<16x256xbf16>,
    %c7_i32_77 = arith.constant 7 : i32
    %193 = tpu.dynamic_rotate %162 by %c7_i32_77 dim 1 : vector<8x256xf32>, i32 -> vector<8x256xf32>
    %c6_i32_78 = arith.constant 6 : i32
    %194 = tpu.dynamic_rotate %162 by %c6_i32_78 dim 1 : vector<8x256xf32>, i32 -> vector<8x256xf32>
    %195 = tpu.concatenate %193, %194 in 0 : vector<8x256xf32>, vector<8x256xf32> -> vector<16x256xf32>
    %196 = arith.truncf %195 : vector<16x256xf32> to vector<16x256xbf16>
    %c96_79 = arith.constant 96 : index
    %c0_80 = arith.constant 0 : index
    %197 = vector.load %arg12[%c96_79, %c0_80] : memref<320x256xbf16, #tpu.memory_space<vmem>>, vector<16x256xbf16>
    tpu.vector_store %arg12[%c96_79, %c0_80], %196 {strides = array<i32>} : memref<320x256xbf16, #tpu.memory_space<vmem>>, vector<16x256xbf16>,
    %c5_i32_81 = arith.constant 5 : i32
    %198 = tpu.dynamic_rotate %162 by %c5_i32_81 dim 1 : vector<8x256xf32>, i32 -> vector<8x256xf32>
    %c4_i32_82 = arith.constant 4 : i32
    %199 = tpu.dynamic_rotate %162 by %c4_i32_82 dim 1 : vector<8x256xf32>, i32 -> vector<8x256xf32>
    %200 = tpu.concatenate %198, %199 in 0 : vector<8x256xf32>, vector<8x256xf32> -> vector<16x256xf32>
    %201 = arith.truncf %200 : vector<16x256xf32> to vector<16x256xbf16>
    %c112_83 = arith.constant 112 : index
    %c0_84 = arith.constant 0 : index
    %202 = vector.load %arg12[%c112_83, %c0_84] : memref<320x256xbf16, #tpu.memory_space<vmem>>, vector<16x256xbf16>
    tpu.vector_store %arg12[%c112_83, %c0_84], %201 {strides = array<i32>} : memref<320x256xbf16, #tpu.memory_space<vmem>>, vector<16x256xbf16>,
    %c3_i32_85 = arith.constant 3 : i32
    %203 = tpu.dynamic_rotate %162 by %c3_i32_85 dim 1 : vector<8x256xf32>, i32 -> vector<8x256xf32>
    %c2_i32_86 = arith.constant 2 : i32
    %204 = tpu.dynamic_rotate %162 by %c2_i32_86 dim 1 : vector<8x256xf32>, i32 -> vector<8x256xf32>
    %205 = tpu.concatenate %203, %204 in 0 : vector<8x256xf32>, vector<8x256xf32> -> vector<16x256xf32>
    %206 = arith.truncf %205 : vector<16x256xf32> to vector<16x256xbf16>
    %c128_87 = arith.constant 128 : index
    %c0_88 = arith.constant 0 : index
    %207 = vector.load %arg12[%c128_87, %c0_88] : memref<320x256xbf16, #tpu.memory_space<vmem>>, vector<16x256xbf16>
    tpu.vector_store %arg12[%c128_87, %c0_88], %206 {strides = array<i32>} : memref<320x256xbf16, #tpu.memory_space<vmem>>, vector<16x256xbf16>,
    %c1_i32_89 = arith.constant 1 : i32
    %208 = tpu.dynamic_rotate %162 by %c1_i32_89 dim 1 : vector<8x256xf32>, i32 -> vector<8x256xf32>
    %209 = tpu.concatenate %208, %162 in 0 : vector<8x256xf32>, vector<8x256xf32> -> vector<16x256xf32>
    %210 = arith.truncf %209 : vector<16x256xf32> to vector<16x256xbf16>
    %c144_90 = arith.constant 144 : index
    %c0_91 = arith.constant 0 : index
    %211 = vector.load %arg12[%c144_90, %c0_91] : memref<320x256xbf16, #tpu.memory_space<vmem>>, vector<16x256xbf16>
    tpu.vector_store %arg12[%c144_90, %c0_91], %210 {strides = array<i32>} : memref<320x256xbf16, #tpu.memory_space<vmem>>, vector<16x256xbf16>,
    %c255_i32_92 = arith.constant 255 : i32
    %212 = tpu.dynamic_rotate %162 by %c255_i32_92 dim 1 : vector<8x256xf32>, i32 -> vector<8x256xf32>
    %c254_i32_93 = arith.constant 254 : i32
    %213 = tpu.dynamic_rotate %162 by %c254_i32_93 dim 1 : vector<8x256xf32>, i32 -> vector<8x256xf32>
    %214 = tpu.concatenate %212, %213 in 0 : vector<8x256xf32>, vector<8x256xf32> -> vector<16x256xf32>
    %215 = arith.truncf %214 : vector<16x256xf32> to vector<16x256xbf16>
    %c160_94 = arith.constant 160 : index
    %c0_95 = arith.constant 0 : index
    %216 = vector.load %arg12[%c160_94, %c0_95] : memref<320x256xbf16, #tpu.memory_space<vmem>>, vector<16x256xbf16>
    tpu.vector_store %arg12[%c160_94, %c0_95], %215 {strides = array<i32>} : memref<320x256xbf16, #tpu.memory_space<vmem>>, vector<16x256xbf16>,
    %c253_i32_96 = arith.constant 253 : i32
    %217 = tpu.dynamic_rotate %162 by %c253_i32_96 dim 1 : vector<8x256xf32>, i32 -> vector<8x256xf32>
    %c252_i32_97 = arith.constant 252 : i32
    %218 = tpu.dynamic_rotate %162 by %c252_i32_97 dim 1 : vector<8x256xf32>, i32 -> vector<8x256xf32>
    %219 = tpu.concatenate %217, %218 in 0 : vector<8x256xf32>, vector<8x256xf32> -> vector<16x256xf32>
    %220 = arith.truncf %219 : vector<16x256xf32> to vector<16x256xbf16>
    %c176_98 = arith.constant 176 : index
    %c0_99 = arith.constant 0 : index
    %221 = vector.load %arg12[%c176_98, %c0_99] : memref<320x256xbf16, #tpu.memory_space<vmem>>, vector<16x256xbf16>
    tpu.vector_store %arg12[%c176_98, %c0_99], %220 {strides = array<i32>} : memref<320x256xbf16, #tpu.memory_space<vmem>>, vector<16x256xbf16>,
    %c251_i32_100 = arith.constant 251 : i32
    %222 = tpu.dynamic_rotate %162 by %c251_i32_100 dim 1 : vector<8x256xf32>, i32 -> vector<8x256xf32>
    %c250_i32_101 = arith.constant 250 : i32
    %223 = tpu.dynamic_rotate %162 by %c250_i32_101 dim 1 : vector<8x256xf32>, i32 -> vector<8x256xf32>
    %224 = tpu.concatenate %222, %223 in 0 : vector<8x256xf32>, vector<8x256xf32> -> vector<16x256xf32>
    %225 = arith.truncf %224 : vector<16x256xf32> to vector<16x256xbf16>
    %c192_102 = arith.constant 192 : index
    %c0_103 = arith.constant 0 : index
    %226 = vector.load %arg12[%c192_102, %c0_103] : memref<320x256xbf16, #tpu.memory_space<vmem>>, vector<16x256xbf16>
    tpu.vector_store %arg12[%c192_102, %c0_103], %225 {strides = array<i32>} : memref<320x256xbf16, #tpu.memory_space<vmem>>, vector<16x256xbf16>,
    %c249_i32_104 = arith.constant 249 : i32
    %227 = tpu.dynamic_rotate %162 by %c249_i32_104 dim 1 : vector<8x256xf32>, i32 -> vector<8x256xf32>
    %c248_i32_105 = arith.constant 248 : i32
    %228 = tpu.dynamic_rotate %162 by %c248_i32_105 dim 1 : vector<8x256xf32>, i32 -> vector<8x256xf32>
    %229 = tpu.concatenate %227, %228 in 0 : vector<8x256xf32>, vector<8x256xf32> -> vector<16x256xf32>
    %230 = arith.truncf %229 : vector<16x256xf32> to vector<16x256xbf16>
    %c208_106 = arith.constant 208 : index
    %c0_107 = arith.constant 0 : index
    %231 = vector.load %arg12[%c208_106, %c0_107] : memref<320x256xbf16, #tpu.memory_space<vmem>>, vector<16x256xbf16>
    tpu.vector_store %arg12[%c208_106, %c0_107], %230 {strides = array<i32>} : memref<320x256xbf16, #tpu.memory_space<vmem>>, vector<16x256xbf16>,
    %c247_i32_108 = arith.constant 247 : i32
    %232 = tpu.dynamic_rotate %162 by %c247_i32_108 dim 1 : vector<8x256xf32>, i32 -> vector<8x256xf32>
    %c246_i32_109 = arith.constant 246 : i32
    %233 = tpu.dynamic_rotate %162 by %c246_i32_109 dim 1 : vector<8x256xf32>, i32 -> vector<8x256xf32>
    %234 = tpu.concatenate %232, %233 in 0 : vector<8x256xf32>, vector<8x256xf32> -> vector<16x256xf32>
    %235 = arith.truncf %234 : vector<16x256xf32> to vector<16x256xbf16>
    %c224_110 = arith.constant 224 : index
    %c0_111 = arith.constant 0 : index
    %236 = vector.load %arg12[%c224_110, %c0_111] : memref<320x256xbf16, #tpu.memory_space<vmem>>, vector<16x256xbf16>
    tpu.vector_store %arg12[%c224_110, %c0_111], %235 {strides = array<i32>} : memref<320x256xbf16, #tpu.memory_space<vmem>>, vector<16x256xbf16>,
    %c245_i32_112 = arith.constant 245 : i32
    %237 = tpu.dynamic_rotate %162 by %c245_i32_112 dim 1 : vector<8x256xf32>, i32 -> vector<8x256xf32>
    %c244_i32_113 = arith.constant 244 : i32
    %238 = tpu.dynamic_rotate %162 by %c244_i32_113 dim 1 : vector<8x256xf32>, i32 -> vector<8x256xf32>
    %239 = tpu.concatenate %237, %238 in 0 : vector<8x256xf32>, vector<8x256xf32> -> vector<16x256xf32>
    %240 = arith.truncf %239 : vector<16x256xf32> to vector<16x256xbf16>
    %c240_114 = arith.constant 240 : index
    %c0_115 = arith.constant 0 : index
    %241 = vector.load %arg12[%c240_114, %c0_115] : memref<320x256xbf16, #tpu.memory_space<vmem>>, vector<16x256xbf16>
    tpu.vector_store %arg12[%c240_114, %c0_115], %240 {strides = array<i32>} : memref<320x256xbf16, #tpu.memory_space<vmem>>, vector<16x256xbf16>,
    %c243_i32_116 = arith.constant 243 : i32
    %242 = tpu.dynamic_rotate %162 by %c243_i32_116 dim 1 : vector<8x256xf32>, i32 -> vector<8x256xf32>
    %c242_i32_117 = arith.constant 242 : i32
    %243 = tpu.dynamic_rotate %162 by %c242_i32_117 dim 1 : vector<8x256xf32>, i32 -> vector<8x256xf32>
    %244 = tpu.concatenate %242, %243 in 0 : vector<8x256xf32>, vector<8x256xf32> -> vector<16x256xf32>
    %245 = arith.truncf %244 : vector<16x256xf32> to vector<16x256xbf16>
    %c256_118 = arith.constant 256 : index
    %c0_119 = arith.constant 0 : index
    %246 = vector.load %arg12[%c256_118, %c0_119] : memref<320x256xbf16, #tpu.memory_space<vmem>>, vector<16x256xbf16>
    tpu.vector_store %arg12[%c256_118, %c0_119], %245 {strides = array<i32>} : memref<320x256xbf16, #tpu.memory_space<vmem>>, vector<16x256xbf16>,
    %c241_i32_120 = arith.constant 241 : i32
    %247 = tpu.dynamic_rotate %162 by %c241_i32_120 dim 1 : vector<8x256xf32>, i32 -> vector<8x256xf32>
    %c240_i32_121 = arith.constant 240 : i32
    %248 = tpu.dynamic_rotate %162 by %c240_i32_121 dim 1 : vector<8x256xf32>, i32 -> vector<8x256xf32>
    %249 = tpu.concatenate %247, %248 in 0 : vector<8x256xf32>, vector<8x256xf32> -> vector<16x256xf32>
    %250 = arith.truncf %249 : vector<16x256xf32> to vector<16x256xbf16>
    %c272_122 = arith.constant 272 : index
    %c0_123 = arith.constant 0 : index
    %251 = vector.load %arg12[%c272_122, %c0_123] : memref<320x256xbf16, #tpu.memory_space<vmem>>, vector<16x256xbf16>
    tpu.vector_store %arg12[%c272_122, %c0_123], %250 {strides = array<i32>} : memref<320x256xbf16, #tpu.memory_space<vmem>>, vector<16x256xbf16>,
    %c239_i32_124 = arith.constant 239 : i32
    %252 = tpu.dynamic_rotate %162 by %c239_i32_124 dim 1 : vector<8x256xf32>, i32 -> vector<8x256xf32>
    %c238_i32_125 = arith.constant 238 : i32
    %253 = tpu.dynamic_rotate %162 by %c238_i32_125 dim 1 : vector<8x256xf32>, i32 -> vector<8x256xf32>
    %254 = tpu.concatenate %252, %253 in 0 : vector<8x256xf32>, vector<8x256xf32> -> vector<16x256xf32>
    %255 = arith.truncf %254 : vector<16x256xf32> to vector<16x256xbf16>
    %c288_126 = arith.constant 288 : index
    %c0_127 = arith.constant 0 : index
    %256 = vector.load %arg12[%c288_126, %c0_127] : memref<320x256xbf16, #tpu.memory_space<vmem>>, vector<16x256xbf16>
    tpu.vector_store %arg12[%c288_126, %c0_127], %255 {strides = array<i32>} : memref<320x256xbf16, #tpu.memory_space<vmem>>, vector<16x256xbf16>,
    %c237_i32_128 = arith.constant 237 : i32
    %257 = tpu.dynamic_rotate %162 by %c237_i32_128 dim 1 : vector<8x256xf32>, i32 -> vector<8x256xf32>
    %c236_i32_129 = arith.constant 236 : i32
    %258 = tpu.dynamic_rotate %162 by %c236_i32_129 dim 1 : vector<8x256xf32>, i32 -> vector<8x256xf32>
    %259 = tpu.concatenate %257, %258 in 0 : vector<8x256xf32>, vector<8x256xf32> -> vector<16x256xf32>
    %260 = arith.truncf %259 : vector<16x256xf32> to vector<16x256xbf16>
    %c304_130 = arith.constant 304 : index
    %c0_131 = arith.constant 0 : index
    %261 = vector.load %arg12[%c304_130, %c0_131] : memref<320x256xbf16, #tpu.memory_space<vmem>>, vector<16x256xbf16>
    tpu.vector_store %arg12[%c304_130, %c0_131], %260 {strides = array<i32>} : memref<320x256xbf16, #tpu.memory_space<vmem>>, vector<16x256xbf16>,
    %c0_132 = arith.constant 0 : index
    %c0_133 = arith.constant 0 : index
    %262 = vector.load %arg12[%c0_132, %c0_133] : memref<320x256xbf16, #tpu.memory_space<vmem>>, vector<320x256xbf16>
    %cst_134 = arith.constant dense<0.000000e+00> : vector<24x256xf32>
    %263 = tpu.matmul %159, %262, %cst_134 {dimension_numbers = #tpu.dot_dimension_numbers<[1], [0], [0], [1], [0, 0, 1, 1], [], []>} : vector<24x320xbf16>, vector<320x256xbf16>, vector<24x256xf32> -> vector<24x256xf32>
    %c1_i32_135 = arith.constant 1 : i32
    %264 = tpu.dynamic_rotate %157 by %c1_i32_135 dim 1 : vector<32x256xf32>, i32 -> vector<32x256xf32>
    %265 = vector.broadcast %30 : vector<1x256xf32> to vector<32x256xf32>
    %266 = arith.addf %264, %265 : vector<32x256xf32>
    %c255_i32_136 = arith.constant 255 : i32
    %267 = tpu.dynamic_rotate %157 by %c255_i32_136 dim 1 : vector<32x256xf32>, i32 -> vector<32x256xf32>
    %268 = vector.broadcast %35 : vector<1x256xf32> to vector<32x256xf32>
    %269 = arith.addf %267, %268 : vector<32x256xf32>
    %270 = arith.maximumf %157, %266 : vector<32x256xf32>
    %271 = arith.maximumf %270, %269 : vector<32x256xf32>
    %272 = arith.truncf %271 : vector<32x256xf32> to vector<32x256xbf16>
    %cst_137 = arith.constant dense<0.000000e+00> : vector<8x256xf32>
    %273 = tpu.matmul %160, %272, %cst_137 {dimension_numbers = #tpu.dot_dimension_numbers<[1], [0], [0], [1], [0, 0, 1, 1], [], []>} : vector<8x32xbf16>, vector<32x256xbf16>, vector<8x256xf32> -> vector<8x256xf32>
    %274 = tpu.concatenate %263, %273 in 0 : vector<24x256xf32>, vector<8x256xf32> -> vector<32x256xf32>
    %cst_138 = arith.constant 0.000000e+00 : f32
    %275 = vector.broadcast %cst_138 : f32 to vector<32x256xf32>
    %276 = arith.maximumf %274, %275 : vector<32x256xf32>
    %277 = vector.broadcast %25 : vector<1x256xf32> to vector<32x256xf32>
    %278 = arith.mulf %276, %277 : vector<32x256xf32>
    %c0_139 = arith.constant 0 : index
    %c0_140 = arith.constant 0 : index
    %279 = vector.load %arg8[%c0_139, %c0_140] : memref<8x32xbf16, #tpu.memory_space<vmem>>, vector<8x32xbf16>
    %c0_141 = arith.constant 0 : index
    %c0_142 = arith.constant 0 : index
    %280 = vector.load %arg9[%c0_141, %c0_142] : memref<24x320xbf16, #tpu.memory_space<vmem>>, vector<24x320xbf16>
    %c0_143 = arith.constant 0 : index
    %c0_144 = arith.constant 0 : index
    %281 = vector.load %arg10[%c0_143, %c0_144] : memref<8x32xbf16, #tpu.memory_space<vmem>>, vector<8x32xbf16>
    %282 = arith.truncf %278 : vector<32x256xf32> to vector<32x256xbf16>
    %cst_145 = arith.constant dense<0.000000e+00> : vector<8x256xf32>
    %283 = tpu.matmul %279, %282, %cst_145 {dimension_numbers = #tpu.dot_dimension_numbers<[1], [0], [0], [1], [0, 0, 1, 1], [], []>} : vector<8x32xbf16>, vector<32x256xbf16>, vector<8x256xf32> -> vector<8x256xf32>
    %c19_i32_146 = arith.constant 19 : i32
    %284 = tpu.dynamic_rotate %283 by %c19_i32_146 dim 1 : vector<8x256xf32>, i32 -> vector<8x256xf32>
    %c18_i32_147 = arith.constant 18 : i32
    %285 = tpu.dynamic_rotate %283 by %c18_i32_147 dim 1 : vector<8x256xf32>, i32 -> vector<8x256xf32>
    %286 = tpu.concatenate %284, %285 in 0 : vector<8x256xf32>, vector<8x256xf32> -> vector<16x256xf32>
    %287 = arith.truncf %286 : vector<16x256xf32> to vector<16x256xbf16>
    %c0_148 = arith.constant 0 : index
    %c0_149 = arith.constant 0 : index
    %288 = vector.load %arg12[%c0_148, %c0_149] : memref<320x256xbf16, #tpu.memory_space<vmem>>, vector<16x256xbf16>
    tpu.vector_store %arg12[%c0_148, %c0_149], %287 {strides = array<i32>} : memref<320x256xbf16, #tpu.memory_space<vmem>>, vector<16x256xbf16>,
    %c17_i32_150 = arith.constant 17 : i32
    %289 = tpu.dynamic_rotate %283 by %c17_i32_150 dim 1 : vector<8x256xf32>, i32 -> vector<8x256xf32>
    %c16_i32_151 = arith.constant 16 : i32
    %290 = tpu.dynamic_rotate %283 by %c16_i32_151 dim 1 : vector<8x256xf32>, i32 -> vector<8x256xf32>
    %291 = tpu.concatenate %289, %290 in 0 : vector<8x256xf32>, vector<8x256xf32> -> vector<16x256xf32>
    %292 = arith.truncf %291 : vector<16x256xf32> to vector<16x256xbf16>
    %c16_152 = arith.constant 16 : index
    %c0_153 = arith.constant 0 : index
    %293 = vector.load %arg12[%c16_152, %c0_153] : memref<320x256xbf16, #tpu.memory_space<vmem>>, vector<16x256xbf16>
    tpu.vector_store %arg12[%c16_152, %c0_153], %292 {strides = array<i32>} : memref<320x256xbf16, #tpu.memory_space<vmem>>, vector<16x256xbf16>,
    %c15_i32_154 = arith.constant 15 : i32
    %294 = tpu.dynamic_rotate %283 by %c15_i32_154 dim 1 : vector<8x256xf32>, i32 -> vector<8x256xf32>
    %c14_i32_155 = arith.constant 14 : i32
    %295 = tpu.dynamic_rotate %283 by %c14_i32_155 dim 1 : vector<8x256xf32>, i32 -> vector<8x256xf32>
    %296 = tpu.concatenate %294, %295 in 0 : vector<8x256xf32>, vector<8x256xf32> -> vector<16x256xf32>
    %297 = arith.truncf %296 : vector<16x256xf32> to vector<16x256xbf16>
    %c32_156 = arith.constant 32 : index
    %c0_157 = arith.constant 0 : index
    %298 = vector.load %arg12[%c32_156, %c0_157] : memref<320x256xbf16, #tpu.memory_space<vmem>>, vector<16x256xbf16>
    tpu.vector_store %arg12[%c32_156, %c0_157], %297 {strides = array<i32>} : memref<320x256xbf16, #tpu.memory_space<vmem>>, vector<16x256xbf16>,
    %c13_i32_158 = arith.constant 13 : i32
    %299 = tpu.dynamic_rotate %283 by %c13_i32_158 dim 1 : vector<8x256xf32>, i32 -> vector<8x256xf32>
    %c12_i32_159 = arith.constant 12 : i32
    %300 = tpu.dynamic_rotate %283 by %c12_i32_159 dim 1 : vector<8x256xf32>, i32 -> vector<8x256xf32>
    %301 = tpu.concatenate %299, %300 in 0 : vector<8x256xf32>, vector<8x256xf32> -> vector<16x256xf32>
    %302 = arith.truncf %301 : vector<16x256xf32> to vector<16x256xbf16>
    %c48_160 = arith.constant 48 : index
    %c0_161 = arith.constant 0 : index
    %303 = vector.load %arg12[%c48_160, %c0_161] : memref<320x256xbf16, #tpu.memory_space<vmem>>, vector<16x256xbf16>
    tpu.vector_store %arg12[%c48_160, %c0_161], %302 {strides = array<i32>} : memref<320x256xbf16, #tpu.memory_space<vmem>>, vector<16x256xbf16>,
    %c11_i32_162 = arith.constant 11 : i32
    %304 = tpu.dynamic_rotate %283 by %c11_i32_162 dim 1 : vector<8x256xf32>, i32 -> vector<8x256xf32>
    %c10_i32_163 = arith.constant 10 : i32
    %305 = tpu.dynamic_rotate %283 by %c10_i32_163 dim 1 : vector<8x256xf32>, i32 -> vector<8x256xf32>
    %306 = tpu.concatenate %304, %305 in 0 : vector<8x256xf32>, vector<8x256xf32> -> vector<16x256xf32>
    %307 = arith.truncf %306 : vector<16x256xf32> to vector<16x256xbf16>
    %c64_164 = arith.constant 64 : index
    %c0_165 = arith.constant 0 : index
    %308 = vector.load %arg12[%c64_164, %c0_165] : memref<320x256xbf16, #tpu.memory_space<vmem>>, vector<16x256xbf16>
    tpu.vector_store %arg12[%c64_164, %c0_165], %307 {strides = array<i32>} : memref<320x256xbf16, #tpu.memory_space<vmem>>, vector<16x256xbf16>,
    %c9_i32_166 = arith.constant 9 : i32
    %309 = tpu.dynamic_rotate %283 by %c9_i32_166 dim 1 : vector<8x256xf32>, i32 -> vector<8x256xf32>
    %c8_i32_167 = arith.constant 8 : i32
    %310 = tpu.dynamic_rotate %283 by %c8_i32_167 dim 1 : vector<8x256xf32>, i32 -> vector<8x256xf32>
    %311 = tpu.concatenate %309, %310 in 0 : vector<8x256xf32>, vector<8x256xf32> -> vector<16x256xf32>
    %312 = arith.truncf %311 : vector<16x256xf32> to vector<16x256xbf16>
    %c80_168 = arith.constant 80 : index
    %c0_169 = arith.constant 0 : index
    %313 = vector.load %arg12[%c80_168, %c0_169] : memref<320x256xbf16, #tpu.memory_space<vmem>>, vector<16x256xbf16>
    tpu.vector_store %arg12[%c80_168, %c0_169], %312 {strides = array<i32>} : memref<320x256xbf16, #tpu.memory_space<vmem>>, vector<16x256xbf16>,
    %c7_i32_170 = arith.constant 7 : i32
    %314 = tpu.dynamic_rotate %283 by %c7_i32_170 dim 1 : vector<8x256xf32>, i32 -> vector<8x256xf32>
    %c6_i32_171 = arith.constant 6 : i32
    %315 = tpu.dynamic_rotate %283 by %c6_i32_171 dim 1 : vector<8x256xf32>, i32 -> vector<8x256xf32>
    %316 = tpu.concatenate %314, %315 in 0 : vector<8x256xf32>, vector<8x256xf32> -> vector<16x256xf32>
    %317 = arith.truncf %316 : vector<16x256xf32> to vector<16x256xbf16>
    %c96_172 = arith.constant 96 : index
    %c0_173 = arith.constant 0 : index
    %318 = vector.load %arg12[%c96_172, %c0_173] : memref<320x256xbf16, #tpu.memory_space<vmem>>, vector<16x256xbf16>
    tpu.vector_store %arg12[%c96_172, %c0_173], %317 {strides = array<i32>} : memref<320x256xbf16, #tpu.memory_space<vmem>>, vector<16x256xbf16>,
    %c5_i32_174 = arith.constant 5 : i32
    %319 = tpu.dynamic_rotate %283 by %c5_i32_174 dim 1 : vector<8x256xf32>, i32 -> vector<8x256xf32>
    %c4_i32_175 = arith.constant 4 : i32
    %320 = tpu.dynamic_rotate %283 by %c4_i32_175 dim 1 : vector<8x256xf32>, i32 -> vector<8x256xf32>
    %321 = tpu.concatenate %319, %320 in 0 : vector<8x256xf32>, vector<8x256xf32> -> vector<16x256xf32>
    %322 = arith.truncf %321 : vector<16x256xf32> to vector<16x256xbf16>
    %c112_176 = arith.constant 112 : index
    %c0_177 = arith.constant 0 : index
    %323 = vector.load %arg12[%c112_176, %c0_177] : memref<320x256xbf16, #tpu.memory_space<vmem>>, vector<16x256xbf16>
    tpu.vector_store %arg12[%c112_176, %c0_177], %322 {strides = array<i32>} : memref<320x256xbf16, #tpu.memory_space<vmem>>, vector<16x256xbf16>,
    %c3_i32_178 = arith.constant 3 : i32
    %324 = tpu.dynamic_rotate %283 by %c3_i32_178 dim 1 : vector<8x256xf32>, i32 -> vector<8x256xf32>
    %c2_i32_179 = arith.constant 2 : i32
    %325 = tpu.dynamic_rotate %283 by %c2_i32_179 dim 1 : vector<8x256xf32>, i32 -> vector<8x256xf32>
    %326 = tpu.concatenate %324, %325 in 0 : vector<8x256xf32>, vector<8x256xf32> -> vector<16x256xf32>
    %327 = arith.truncf %326 : vector<16x256xf32> to vector<16x256xbf16>
    %c128_180 = arith.constant 128 : index
    %c0_181 = arith.constant 0 : index
    %328 = vector.load %arg12[%c128_180, %c0_181] : memref<320x256xbf16, #tpu.memory_space<vmem>>, vector<16x256xbf16>
    tpu.vector_store %arg12[%c128_180, %c0_181], %327 {strides = array<i32>} : memref<320x256xbf16, #tpu.memory_space<vmem>>, vector<16x256xbf16>,
    %c1_i32_182 = arith.constant 1 : i32
    %329 = tpu.dynamic_rotate %283 by %c1_i32_182 dim 1 : vector<8x256xf32>, i32 -> vector<8x256xf32>
    %330 = tpu.concatenate %329, %283 in 0 : vector<8x256xf32>, vector<8x256xf32> -> vector<16x256xf32>
    %331 = arith.truncf %330 : vector<16x256xf32> to vector<16x256xbf16>
    %c144_183 = arith.constant 144 : index
    %c0_184 = arith.constant 0 : index
    %332 = vector.load %arg12[%c144_183, %c0_184] : memref<320x256xbf16, #tpu.memory_space<vmem>>, vector<16x256xbf16>
    tpu.vector_store %arg12[%c144_183, %c0_184], %331 {strides = array<i32>} : memref<320x256xbf16, #tpu.memory_space<vmem>>, vector<16x256xbf16>,
    %c255_i32_185 = arith.constant 255 : i32
    %333 = tpu.dynamic_rotate %283 by %c255_i32_185 dim 1 : vector<8x256xf32>, i32 -> vector<8x256xf32>
    %c254_i32_186 = arith.constant 254 : i32
    %334 = tpu.dynamic_rotate %283 by %c254_i32_186 dim 1 : vector<8x256xf32>, i32 -> vector<8x256xf32>
    %335 = tpu.concatenate %333, %334 in 0 : vector<8x256xf32>, vector<8x256xf32> -> vector<16x256xf32>
    %336 = arith.truncf %335 : vector<16x256xf32> to vector<16x256xbf16>
    %c160_187 = arith.constant 160 : index
    %c0_188 = arith.constant 0 : index
    %337 = vector.load %arg12[%c160_187, %c0_188] : memref<320x256xbf16, #tpu.memory_space<vmem>>, vector<16x256xbf16>
    tpu.vector_store %arg12[%c160_187, %c0_188], %336 {strides = array<i32>} : memref<320x256xbf16, #tpu.memory_space<vmem>>, vector<16x256xbf16>,
    %c253_i32_189 = arith.constant 253 : i32
    %338 = tpu.dynamic_rotate %283 by %c253_i32_189 dim 1 : vector<8x256xf32>, i32 -> vector<8x256xf32>
    %c252_i32_190 = arith.constant 252 : i32
    %339 = tpu.dynamic_rotate %283 by %c252_i32_190 dim 1 : vector<8x256xf32>, i32 -> vector<8x256xf32>
    %340 = tpu.concatenate %338, %339 in 0 : vector<8x256xf32>, vector<8x256xf32> -> vector<16x256xf32>
    %341 = arith.truncf %340 : vector<16x256xf32> to vector<16x256xbf16>
    %c176_191 = arith.constant 176 : index
    %c0_192 = arith.constant 0 : index
    %342 = vector.load %arg12[%c176_191, %c0_192] : memref<320x256xbf16, #tpu.memory_space<vmem>>, vector<16x256xbf16>
    tpu.vector_store %arg12[%c176_191, %c0_192], %341 {strides = array<i32>} : memref<320x256xbf16, #tpu.memory_space<vmem>>, vector<16x256xbf16>,
    %c251_i32_193 = arith.constant 251 : i32
    %343 = tpu.dynamic_rotate %283 by %c251_i32_193 dim 1 : vector<8x256xf32>, i32 -> vector<8x256xf32>
    %c250_i32_194 = arith.constant 250 : i32
    %344 = tpu.dynamic_rotate %283 by %c250_i32_194 dim 1 : vector<8x256xf32>, i32 -> vector<8x256xf32>
    %345 = tpu.concatenate %343, %344 in 0 : vector<8x256xf32>, vector<8x256xf32> -> vector<16x256xf32>
    %346 = arith.truncf %345 : vector<16x256xf32> to vector<16x256xbf16>
    %c192_195 = arith.constant 192 : index
    %c0_196 = arith.constant 0 : index
    %347 = vector.load %arg12[%c192_195, %c0_196] : memref<320x256xbf16, #tpu.memory_space<vmem>>, vector<16x256xbf16>
    tpu.vector_store %arg12[%c192_195, %c0_196], %346 {strides = array<i32>} : memref<320x256xbf16, #tpu.memory_space<vmem>>, vector<16x256xbf16>,
    %c249_i32_197 = arith.constant 249 : i32
    %348 = tpu.dynamic_rotate %283 by %c249_i32_197 dim 1 : vector<8x256xf32>, i32 -> vector<8x256xf32>
    %c248_i32_198 = arith.constant 248 : i32
    %349 = tpu.dynamic_rotate %283 by %c248_i32_198 dim 1 : vector<8x256xf32>, i32 -> vector<8x256xf32>
    %350 = tpu.concatenate %348, %349 in 0 : vector<8x256xf32>, vector<8x256xf32> -> vector<16x256xf32>
    %351 = arith.truncf %350 : vector<16x256xf32> to vector<16x256xbf16>
    %c208_199 = arith.constant 208 : index
    %c0_200 = arith.constant 0 : index
    %352 = vector.load %arg12[%c208_199, %c0_200] : memref<320x256xbf16, #tpu.memory_space<vmem>>, vector<16x256xbf16>
    tpu.vector_store %arg12[%c208_199, %c0_200], %351 {strides = array<i32>} : memref<320x256xbf16, #tpu.memory_space<vmem>>, vector<16x256xbf16>,
    %c247_i32_201 = arith.constant 247 : i32
    %353 = tpu.dynamic_rotate %283 by %c247_i32_201 dim 1 : vector<8x256xf32>, i32 -> vector<8x256xf32>
    %c246_i32_202 = arith.constant 246 : i32
    %354 = tpu.dynamic_rotate %283 by %c246_i32_202 dim 1 : vector<8x256xf32>, i32 -> vector<8x256xf32>
    %355 = tpu.concatenate %353, %354 in 0 : vector<8x256xf32>, vector<8x256xf32> -> vector<16x256xf32>
    %356 = arith.truncf %355 : vector<16x256xf32> to vector<16x256xbf16>
    %c224_203 = arith.constant 224 : index
    %c0_204 = arith.constant 0 : index
    %357 = vector.load %arg12[%c224_203, %c0_204] : memref<320x256xbf16, #tpu.memory_space<vmem>>, vector<16x256xbf16>
    tpu.vector_store %arg12[%c224_203, %c0_204], %356 {strides = array<i32>} : memref<320x256xbf16, #tpu.memory_space<vmem>>, vector<16x256xbf16>,
    %c245_i32_205 = arith.constant 245 : i32
    %358 = tpu.dynamic_rotate %283 by %c245_i32_205 dim 1 : vector<8x256xf32>, i32 -> vector<8x256xf32>
    %c244_i32_206 = arith.constant 244 : i32
    %359 = tpu.dynamic_rotate %283 by %c244_i32_206 dim 1 : vector<8x256xf32>, i32 -> vector<8x256xf32>
    %360 = tpu.concatenate %358, %359 in 0 : vector<8x256xf32>, vector<8x256xf32> -> vector<16x256xf32>
    %361 = arith.truncf %360 : vector<16x256xf32> to vector<16x256xbf16>
    %c240_207 = arith.constant 240 : index
    %c0_208 = arith.constant 0 : index
    %362 = vector.load %arg12[%c240_207, %c0_208] : memref<320x256xbf16, #tpu.memory_space<vmem>>, vector<16x256xbf16>
    tpu.vector_store %arg12[%c240_207, %c0_208], %361 {strides = array<i32>} : memref<320x256xbf16, #tpu.memory_space<vmem>>, vector<16x256xbf16>,
    %c243_i32_209 = arith.constant 243 : i32
    %363 = tpu.dynamic_rotate %283 by %c243_i32_209 dim 1 : vector<8x256xf32>, i32 -> vector<8x256xf32>
    %c242_i32_210 = arith.constant 242 : i32
    %364 = tpu.dynamic_rotate %283 by %c242_i32_210 dim 1 : vector<8x256xf32>, i32 -> vector<8x256xf32>
    %365 = tpu.concatenate %363, %364 in 0 : vector<8x256xf32>, vector<8x256xf32> -> vector<16x256xf32>
    %366 = arith.truncf %365 : vector<16x256xf32> to vector<16x256xbf16>
    %c256_211 = arith.constant 256 : index
    %c0_212 = arith.constant 0 : index
    %367 = vector.load %arg12[%c256_211, %c0_212] : memref<320x256xbf16, #tpu.memory_space<vmem>>, vector<16x256xbf16>
    tpu.vector_store %arg12[%c256_211, %c0_212], %366 {strides = array<i32>} : memref<320x256xbf16, #tpu.memory_space<vmem>>, vector<16x256xbf16>,
    %c241_i32_213 = arith.constant 241 : i32
    %368 = tpu.dynamic_rotate %283 by %c241_i32_213 dim 1 : vector<8x256xf32>, i32 -> vector<8x256xf32>
    %c240_i32_214 = arith.constant 240 : i32
    %369 = tpu.dynamic_rotate %283 by %c240_i32_214 dim 1 : vector<8x256xf32>, i32 -> vector<8x256xf32>
    %370 = tpu.concatenate %368, %369 in 0 : vector<8x256xf32>, vector<8x256xf32> -> vector<16x256xf32>
    %371 = arith.truncf %370 : vector<16x256xf32> to vector<16x256xbf16>
    %c272_215 = arith.constant 272 : index
    %c0_216 = arith.constant 0 : index
    %372 = vector.load %arg12[%c272_215, %c0_216] : memref<320x256xbf16, #tpu.memory_space<vmem>>, vector<16x256xbf16>
    tpu.vector_store %arg12[%c272_215, %c0_216], %371 {strides = array<i32>} : memref<320x256xbf16, #tpu.memory_space<vmem>>, vector<16x256xbf16>,
    %c239_i32_217 = arith.constant 239 : i32
    %373 = tpu.dynamic_rotate %283 by %c239_i32_217 dim 1 : vector<8x256xf32>, i32 -> vector<8x256xf32>
    %c238_i32_218 = arith.constant 238 : i32
    %374 = tpu.dynamic_rotate %283 by %c238_i32_218 dim 1 : vector<8x256xf32>, i32 -> vector<8x256xf32>
    %375 = tpu.concatenate %373, %374 in 0 : vector<8x256xf32>, vector<8x256xf32> -> vector<16x256xf32>
    %376 = arith.truncf %375 : vector<16x256xf32> to vector<16x256xbf16>
    %c288_219 = arith.constant 288 : index
    %c0_220 = arith.constant 0 : index
    %377 = vector.load %arg12[%c288_219, %c0_220] : memref<320x256xbf16, #tpu.memory_space<vmem>>, vector<16x256xbf16>
    tpu.vector_store %arg12[%c288_219, %c0_220], %376 {strides = array<i32>} : memref<320x256xbf16, #tpu.memory_space<vmem>>, vector<16x256xbf16>,
    %c237_i32_221 = arith.constant 237 : i32
    %378 = tpu.dynamic_rotate %283 by %c237_i32_221 dim 1 : vector<8x256xf32>, i32 -> vector<8x256xf32>
    %c236_i32_222 = arith.constant 236 : i32
    %379 = tpu.dynamic_rotate %283 by %c236_i32_222 dim 1 : vector<8x256xf32>, i32 -> vector<8x256xf32>
    %380 = tpu.concatenate %378, %379 in 0 : vector<8x256xf32>, vector<8x256xf32> -> vector<16x256xf32>
    %381 = arith.truncf %380 : vector<16x256xf32> to vector<16x256xbf16>
    %c304_223 = arith.constant 304 : index
    %c0_224 = arith.constant 0 : index
    %382 = vector.load %arg12[%c304_223, %c0_224] : memref<320x256xbf16, #tpu.memory_space<vmem>>, vector<16x256xbf16>
    tpu.vector_store %arg12[%c304_223, %c0_224], %381 {strides = array<i32>} : memref<320x256xbf16, #tpu.memory_space<vmem>>, vector<16x256xbf16>,
    %c0_225 = arith.constant 0 : index
    %c0_226 = arith.constant 0 : index
    %383 = vector.load %arg12[%c0_225, %c0_226] : memref<320x256xbf16, #tpu.memory_space<vmem>>, vector<320x256xbf16>
    %cst_227 = arith.constant dense<0.000000e+00> : vector<24x256xf32>
    %384 = tpu.matmul %280, %383, %cst_227 {dimension_numbers = #tpu.dot_dimension_numbers<[1], [0], [0], [1], [0, 0, 1, 1], [], []>} : vector<24x320xbf16>, vector<320x256xbf16>, vector<24x256xf32> -> vector<24x256xf32>
    %c1_i32_228 = arith.constant 1 : i32
    %385 = tpu.dynamic_rotate %278 by %c1_i32_228 dim 1 : vector<32x256xf32>, i32 -> vector<32x256xf32>
    %386 = vector.broadcast %30 : vector<1x256xf32> to vector<32x256xf32>
    %387 = arith.addf %385, %386 : vector<32x256xf32>
    %c255_i32_229 = arith.constant 255 : i32
    %388 = tpu.dynamic_rotate %278 by %c255_i32_229 dim 1 : vector<32x256xf32>, i32 -> vector<32x256xf32>
    %389 = vector.broadcast %35 : vector<1x256xf32> to vector<32x256xf32>
    %390 = arith.addf %388, %389 : vector<32x256xf32>
    %391 = arith.maximumf %278, %387 : vector<32x256xf32>
    %392 = arith.maximumf %391, %390 : vector<32x256xf32>
    %393 = arith.truncf %392 : vector<32x256xf32> to vector<32x256xbf16>
    %cst_230 = arith.constant dense<0.000000e+00> : vector<8x256xf32>
    %394 = tpu.matmul %281, %393, %cst_230 {dimension_numbers = #tpu.dot_dimension_numbers<[1], [0], [0], [1], [0, 0, 1, 1], [], []>} : vector<8x32xbf16>, vector<32x256xbf16>, vector<8x256xf32> -> vector<8x256xf32>
    %395 = tpu.concatenate %384, %394 in 0 : vector<24x256xf32>, vector<8x256xf32> -> vector<32x256xf32>
    %cst_231 = arith.constant 0.000000e+00 : f32
    %396 = vector.broadcast %cst_231 : f32 to vector<32x256xf32>
    %397 = arith.maximumf %395, %396 : vector<32x256xf32>
    %398 = vector.extract_strided_slice %397 {offsets = [0, 0], sizes = [32, 128], strides = [1, 1]} : vector<32x256xf32> to vector<32x128xf32>
    %c0_232 = arith.constant 0 : index
    %c0_233 = arith.constant 0 : index
    %c0_234 = arith.constant 0 : index
    %399 = vector.load %arg11[%c0_232, %c0_233, %c0_234] : memref<2x32x128xf32, #tpu.memory_space<vmem>>, vector<1x32x128xf32>
    %400 = vector.shape_cast %399 : vector<1x32x128xf32> to vector<32x128xf32>
    %401 = vector.shape_cast %398 : vector<32x128xf32> to vector<1x32x128xf32>
    tpu.vector_store %arg11[%c0_232, %c0_233, %c0_234], %401 {strides = array<i32>} : memref<2x32x128xf32, #tpu.memory_space<vmem>>, vector<1x32x128xf32>,
    %402 = vector.extract_strided_slice %397 {offsets = [0, 128], sizes = [32, 128], strides = [1, 1]} : vector<32x256xf32> to vector<32x128xf32>
    %c1 = arith.constant 1 : index
    %c0_235 = arith.constant 0 : index
    %c0_236 = arith.constant 0 : index
    %403 = vector.load %arg11[%c1, %c0_235, %c0_236] : memref<2x32x128xf32, #tpu.memory_space<vmem>>, vector<1x32x128xf32>
    %404 = vector.shape_cast %403 : vector<1x32x128xf32> to vector<32x128xf32>
    %405 = vector.shape_cast %402 : vector<32x128xf32> to vector<1x32x128xf32>
    tpu.vector_store %arg11[%c1, %c0_235, %c0_236], %405 {strides = array<i32>} : memref<2x32x128xf32, #tpu.memory_space<vmem>>, vector<1x32x128xf32>,
    return
  }
  func.func @transform_0(%arg0: i32) -> (i32, i32) {
    %c0_i32 = arith.constant 0 : i32
    %c0_i32_0 = arith.constant 0 : i32
    return %c0_i32, %arg0 : i32, i32
  }
  func.func @transform_1(%arg0: i32) -> (i32, i32) {
    %c0_i32 = arith.constant 0 : i32
    %c0_i32_0 = arith.constant 0 : i32
    %c0_i32_1 = arith.constant 0 : i32
    return %c0_i32, %c0_i32_0 : i32, i32
  }
  func.func @transform_2(%arg0: i32) -> (i32, i32) {
    %c0_i32 = arith.constant 0 : i32
    %c0_i32_0 = arith.constant 0 : i32
    %c0_i32_1 = arith.constant 0 : i32
    return %c0_i32, %c0_i32_0 : i32, i32
  }
  func.func @transform_3(%arg0: i32) -> (i32, i32) {
    %c0_i32 = arith.constant 0 : i32
    %c0_i32_0 = arith.constant 0 : i32
    %c0_i32_1 = arith.constant 0 : i32
    return %c0_i32, %c0_i32_0 : i32, i32
  }
  func.func @transform_4(%arg0: i32) -> (i32, i32) {
    %c0_i32 = arith.constant 0 : i32
    %c0_i32_0 = arith.constant 0 : i32
    %c0_i32_1 = arith.constant 0 : i32
    return %c0_i32, %c0_i32_0 : i32, i32
  }
  func.func @transform_5(%arg0: i32) -> (i32, i32) {
    %c0_i32 = arith.constant 0 : i32
    %c0_i32_0 = arith.constant 0 : i32
    %c0_i32_1 = arith.constant 0 : i32
    return %c0_i32, %c0_i32_0 : i32, i32
  }
  func.func @transform_6(%arg0: i32) -> (i32, i32) {
    %c0_i32 = arith.constant 0 : i32
    %c0_i32_0 = arith.constant 0 : i32
    %c0_i32_1 = arith.constant 0 : i32
    return %c0_i32, %c0_i32_0 : i32, i32
  }
  func.func @transform_7(%arg0: i32) -> (i32, i32) {
    %c0_i32 = arith.constant 0 : i32
    %c0_i32_0 = arith.constant 0 : i32
    %c0_i32_1 = arith.constant 0 : i32
    return %c0_i32, %c0_i32_0 : i32, i32
  }
  func.func @transform_8(%arg0: i32) -> (i32, i32) {
    %c0_i32 = arith.constant 0 : i32
    %c0_i32_0 = arith.constant 0 : i32
    %c0_i32_1 = arith.constant 0 : i32
    return %c0_i32, %c0_i32_0 : i32, i32
  }
  func.func @transform_9(%arg0: i32) -> (i32, i32) {
    %c0_i32 = arith.constant 0 : i32
    %c0_i32_0 = arith.constant 0 : i32
    %c0_i32_1 = arith.constant 0 : i32
    return %c0_i32, %c0_i32_0 : i32, i32
  }
  func.func @transform_10(%arg0: i32) -> (i32, i32, i32) {
    %c0_i32 = arith.constant 0 : i32
    %c0_i32_0 = arith.constant 0 : i32
    %c0_i32_1 = arith.constant 0 : i32
    return %arg0, %c0_i32, %c0_i32_0 : i32, i32, i32
  }
}

</mosaic_0001>

<bundles_post_ra>
// kernel: _lambda_.1
= control target key start
LH: loop header
LB: loop body
LE: loop exit
PB: predicated region body
PF: predicated region fallthrough
CT: control target
= control target key end

     0   :  { %15 = vsyncpa [#allocation4], 0  ;;  %s5418_s0 = inlined_call_operand.vmem [shape: f32[4,256], index: 0, kind: input, shape index: {}]   ;;  %s5419_s1 = inlined_call_operand.hbm [shape: bf16[8,4], index: 1, kind: input, shape index: {}]   ;;  %s5420_s2 = inlined_call_operand.hbm [shape: bf16[24,320], index: 2, kind: input, shape index: {}]   ;;  %s5421_s3 = inlined_call_operand.hbm [shape: bf16[8,4], index: 3, kind: input, shape index: {}]   ;;  %s5422_s4 = inlined_call_operand.vmem [shape: bf16[8,32], index: 4, kind: input, shape index: {}]   ;;  %s5423_s5 = inlined_call_operand.hbm [shape: bf16[24,320], index: 5, kind: input, shape index: {}]   ;;  %s5424_s6 = inlined_call_operand.vmem [shape: bf16[8,32], index: 6, kind: input, shape index: {}]   ;;  %s5425_s7 = inlined_call_operand.vmem [shape: bf16[8,32], index: 7, kind: input, shape index: {}]   ;;  %s5426_s8 = inlined_call_operand.hbm [shape: bf16[24,320], index: 8, kind: input, shape index: {}]   ;;  %s5427_s9 = inlined_call_operand.vmem [shape: bf16[8,32], index: 9, kind: input, shape index: {}]   ;;  %s5428_s10 = inlined_call_operand.vmem [shape: f32[2,32,128], index: 10, kind: output, shape index: {}]  }
   0x1   :  { %16 = vsyncpa [#allocation6], 0  ;;  %s35_s15 = sshll.u32 %s5420_s2, 4  ;;  %s36_s15 = int_to_ptr.hbm [resolvable:$true] %s35_s15 }
   0x2   :  { %17 = vsyncpa [#allocation9], 0  ;;  %s4211_s16 = smov [#allocation5]   ;;  %s61_s20 = sshll.u32 %s5423_s5, 4  ;;  %s62_s20 = int_to_ptr.hbm [resolvable:$true] %s61_s20 }
   0x3   :  { %s37_s17 = sshll.u32 %s4211_s16, 4  ;;  %s4212_s21 = smov 192   ;;  %s38_s17 = int_to_ptr.vmem [resolvable:$true] %s37_s17 }
   0x4   :  { %s4213_s22 = smov 12   ;;  %s4214_s23 = smov [#allocation8]  }
   0x5   :  { %43 = dma.hbm_to_vmem [thread:$0]  %s36_s15, 576, %s38_s17, [#allocation6], %s4212_s21, %s4212_s21, %s4213_s22  }
   0x6   :  { %s63_s24 = sshll.u32 %s4214_s23, 4  ;;  %s25_s2 = sshll.u32 %s5419_s1, 4  ;;  %s64_s24 = int_to_ptr.vmem [resolvable:$true] %s63_s24  ;;  %s26_s2 = int_to_ptr.hbm [resolvable:$true] %s25_s2 }
   0x7   :  { %69 = dma.hbm_to_vmem [thread:$0]  %s62_s20, 576, %s64_s24, [#allocation9], %s4212_s21, %s4212_s21, %s4213_s22  }
   0x8   :  { %s49_s29 = sshll.u32 %s5421_s3, 4  ;;  %s4215_s5 = smov [#allocation3]   ;;  %s50_s29 = int_to_ptr.hbm [resolvable:$true] %s49_s29 }
   0x9   :  { %s27_s30 = sshll.u32 %s4215_s5, 4  ;;  %s4216_s11 = smov [#allocation7]   ;;  %s28_s30 = int_to_ptr.vmem [resolvable:$true] %s27_s30 }
   0xa   :  { %30 = dma.hbm_to_vmem [thread:$0]  %s26_s2, 64, %s28_s30, [#allocation4]  }
   0xb   :  { %s51_s12 = sshll.u32 %s4216_s11, 4  ;;  %s78_s15 = sshll.u32 %s5426_s8, 4  ;;  %s52_s12 = int_to_ptr.vmem [resolvable:$true] %s51_s12  ;;  %s79_s15 = int_to_ptr.hbm [resolvable:$true] %s78_s15 }
   0xc   :  { %54 = dma.hbm_to_vmem [thread:$0]  %s50_s29, 64, %s52_s12, [#allocation6]  }
   0xd   :  { %s4217_s1 = smov [#allocation10]  }
   0xe   :  { %s80_s16 = sshll.u32 %s4217_s1, 4  ;;  %s81_s16 = int_to_ptr.vmem [resolvable:$true] %s80_s16 }
   0xf   :  { %86 = dma.hbm_to_vmem [thread:$0]  %s79_s15, 576, %s81_s16, [#allocation9], %s4212_s21, %s4212_s21, %s4213_s22  }
  0x10   :  { %4205 = dma.done.wait [#allocation4], 64  }
  0x11   :  { %4206 = vsyncadd [#allocation4], 4294967232 }
  0x12   :  { %4207 = dma.done.wait [#allocation6], 640  }
  0x13   :  { %4208 = vsyncadd [#allocation6], 4294966656 }
  0x14   :  { %4209 = dma.done.wait [#allocation9], 1152  }
  0x15   :  { %4210 = vsyncadd [#allocation9], 4294966144  ;;  %v4333_v0 = vld [vmem:[%s5418_s0] sm:$0xff]  ;;  %vm178_vm0 = vcmask 1041408   ;;  %v158_v7 = vld [vmem:[#allocation3] sm:$0xf]  ;;  %v110_v14 = vlaneseq }
  0x16   :  { %167 = vst [vmem:[#allocation1] ss:$2 sm:$0xff] %v4333_v0  ;;  %vm174_vm1 = vcmask 31744   ;;  %s4218_s0 = smov 9   ;;  %s4219_s8 = smov 7  }
  0x17   :  { %s4220_s18 = smov 5   ;;  %s4221_s19 = smov 8   ;;  %v4409_v15 = vand.u32 127, %v110_v14 }
  0x18   :  { %s4222_s20 = smov 6   ;;  %s4223_s21 = smov 4  }
  0x19   :  { %s5439_s23 = smov 117   ;;  %s5499_s24 = smov 10   ;;  %vm305_vm2 = vcmp.lt.s32.totalorder %v4409_v15, 9  ;;  %vm312_vm3 = vcmp.lt.s32.totalorder %v4409_v15, 8  ;;  %vm5456_vm4 = vcmp.lt.s32.totalorder %v4409_v15, 117  ;;  %vm5464_vm5 = vcmp.lt.s32.totalorder %v4409_v15, 12 }
  0x1a   :  { %s4226_s25 = smov 11   ;;  %s4227_s26 = smov 13   ;;  %vm323_vm6 = vcmp.lt.s32.totalorder %v4409_v15, 7  ;;  %vm341_vm7 = vcmp.lt.s32.totalorder %v4409_v15, 5  ;;  %vm5458_vm8 = vcmp.lt.s32.totalorder %v4409_v15, 15  ;;  %vm330_vm9 = vcmp.lt.s32.totalorder %v4409_v15, 6 }
  0x1b   :  { %s5441_s2 = smov 116   ;;  %s5497_s27 = smov 15   ;;  %vm348_vm10 = vcmp.lt.s32.totalorder %v4409_v15, 4  ;;  %vm5455_vm11 = vcmp.lt.s32.totalorder %v4409_v15, 120  ;;  %vm294_vm12 = vcmp.lt.s32.totalorder %v4409_v15, 10  ;;  %vm5467_vm13 = vcmp.lt.s32.totalorder %v4409_v15, 11 }
  0x1c   :  { %s5429_s28 = smov 118   ;;  %s5447_s29 = smov 119   ;;  %vm5468_vm14 = vcmp.lt.s32.totalorder %v4409_v15, 17  ;;  %vm5469_vm15 = vcmp.lt.s32.totalorder %v4409_v15, 13 }
  0x1d   :  { %v168_v1 = vld.sshfl [vmem:[#allocation1] sm:$0xff pattern:$0x75316420]  ;;  %v169_v2 = vld.sshfl [vmem:[#allocation1 + $0x8] sm:$0xff pattern:$0x75316420] }
  0x1e   :  { %v172_v3 = vpack.c.bf16 %v168_v1, %v168_v1  ;;  %v173_v4 = vpack.c.bf16 %v169_v2, %v169_v2  ;;  %944 = vst [vmem:[#allocation1] ss:$2 sm:$0xff] %v4333_v0  ;;  %s5437_s5 = smov 120   ;;  %s5435_s30 = smov 121  }
  0x1f   :  { %s5498_s11 = smov 14   ;;  %s5490_s12 = smov 17  }
  0x20   :  { %v180_v5 = vsel %vm178_vm0, %v172_v3, 0  ;;  %v183_v6 = vsel %vm178_vm0, %v173_v4, 0  ;;  %s5496_s13 = smov 108   ;;  %s5492_s14 = smov 109  }
  0x21   :  { %192 = vmatpush.bf16.msra.mxu0 %v180_v5  ;;  %205 = vmatpush.bf16.msra.mxu1 %v183_v6  ;;  %s5431_s15 = smov 122   ;;  %s5433_s1 = smov 123  }
  0x22   :  { %s5489_s16 = smov 16   ;;  %s4241_s3 = smov 19  }
  0x23   :  { %s5491_s17 = smov 110  }
  0x24   :  { %2781 = vmatmul.msk.bf16.vlgmr.msra.gmra.mxu0 %vm174_vm1, %v158_v7  ;;  %2782 = vmatmul.msk.bf16.vlgmr.msra.gmra.mxu1 %vm174_vm1, %v158_v7 }
  0x25   :  { %v945_v16 = vld.sshfl [vmem:[#allocation1] sm:$0xff pattern:$0x75316420]  ;;  %v946_v17 = vld.sshfl [vmem:[#allocation1 + $0x8] sm:$0xff pattern:$0x75316420] }
  0x26   :  { %957 = vst [vmem:[#allocation1] ss:$2 sm:$0xff] %v4333_v0 }
  0x2d   :  { %v959_v36 = vld.sshfl [vmem:[#allocation1 + $0x8] sm:$0xff pattern:$0x75316420]  ;;  %v958_v39 = vld.sshfl [vmem:[#allocation1] sm:$0xff pattern:$0x75316420] }
  0xa1   :  { %v194_v8 = vpop.f32.mrf.mxu0  ;;  %v207_v9 = vpop.f32.mrf.mxu1 }
  0xa2   :  { %v4341_v10 = vpack.i.bf16 %v207_v9, %v194_v8  ;;  %v381_v13 = vpack.c.bf16 %v207_v9, %v194_v8 }
  0xa4   :  { %3521 = vrot.lane.b32.xlu2 %v4341_v10, %s4218_s0  ;;  %3511 = vrot.lane.b32.xlu1 %v4341_v10, %s4219_s8  ;;  %383 = vst [vmem:[#allocation2 + $0x98] sm:$0xff] %v381_v13 }
  0xa5   :  { %3501 = vrot.lane.b32.xlu0 %v4341_v10, %s4220_s18 }
  0xa9   :  { %v196_v11 = vpop.f32.mrf.mxu0  ;;  %v209_v12 = vpop.f32.mrf.mxu1 }
  0xac   :  { %3526 = vrot.lane.b32.xlu2 %v4341_v10, %s4221_s19  ;;  %3516 = vrot.lane.b32.xlu1 %v4341_v10, %s4222_s20 }
  0xad   :  { %3506 = vrot.lane.b32.xlu0 %v4341_v10, %s4223_s21 }
  0xb4   :  { %3541 = vrot.lane.b32.xlu2 %v4341_v10, %s5439_s23  ;;  %3536 = vrot.lane.b32.xlu1 %v4341_v10, %s5499_s24  ;;  %s5493_s23 = smov 112  }
  0xb5   :  { %3531 = vrot.lane.b32.xlu0 %v4341_v10, %s4226_s25 }
  0xbc   :  { %3556 = vrot.lane.b32.xlu2 %v4341_v10, %s4213_s22  ;;  %3551 = vrot.lane.b32.xlu1 %v4341_v10, %s4227_s26 }
  0xbd   :  { %3546 = vrot.lane.b32.xlu0 %v4341_v10, %s5441_s2  ;;  %s5494_s2 = smov 113  }
  0xc4   :  { %3571 = vrot.lane.b32.xlu2 %v4341_v10, %s5497_s27  ;;  %3566 = vrot.lane.b32.xlu1 %v4341_v10, %s5429_s28  ;;  %s5488_s28 = smov 111  }
  0xc5   :  { %3561 = vrot.lane.b32.xlu0 %v4341_v10, %s5447_s29  ;;  %s5451_s29 = smov 126  }
  0xcc   :  { %3586 = vrot.lane.b32.xlu2 %v4341_v10, %s5437_s5  ;;  %3581 = vrot.lane.b32.xlu1 %v4341_v10, %s5435_s30  ;;  %s5449_s30 = smov 18   ;;  %s5503_s5 = smov 127  }
  0xcd   :  { %3576 = vrot.lane.b32.xlu0 %v4341_v10, %s5498_s11 }
  0xd4   :  { %3601 = vrot.lane.b32.xlu2 %v4341_v10, %s5490_s12  ;;  %3596 = vrot.lane.b32.xlu1 %v4341_v10, %s5496_s13 }
  0xd5   :  { %3591 = vrot.lane.b32.xlu0 %v4341_v10, %s5492_s14 }
  0xdc   :  { %3616 = vrot.lane.b32.xlu2 %v4341_v10, %s5431_s15  ;;  %3611 = vrot.lane.b32.xlu1 %v4341_v10, %s5433_s1  ;;  %s5443_s15 = smov 124   ;;  %s5445_s1 = smov 125  }
  0xdd   :  { %3606 = vrot.lane.b32.xlu0 %v4341_v10, %s5489_s16 }
  0xe4   :  { %3631 = vrot.lane.b32.xlu2 %v4341_v10, %s4241_s3  ;;  %3626 = vrot.lane.b32.xlu1 %v4341_v10, %s5491_s17 }
  0xe5   :  { %3621 = vrot.lane.b32.xlu0 %v4341_v10, %s5488_s28 }
  0xec   :  { %3646 = vrot.lane.b32.xlu2 %v4341_v10, %s5443_s15  ;;  %3641 = vrot.lane.b32.xlu1 %v4341_v10, %s5445_s1  ;;  %s5495_s15 = smov 114   ;;  %s5453_s1 = smov 115  }
  0xed   :  { %3636 = vrot.lane.b32.xlu0 %v4341_v10, %s5449_s30  ;;  %s5502_s30 = smov 2  }
  0xf4   :  { %3661 = vrot.lane.b32.xlu2 %v4341_v10, %s5503_s5  ;;  %3656 = vrot.lane.b32.xlu1 %v4341_v10, %s5493_s23 }
  0xf5   :  { %3651 = vrot.lane.b32.xlu0 %v4341_v10, %s5494_s2 }
  0xfc   :  { %3676 = vrot.lane.b32.xlu2 %v4341_v10, %s5495_s15  ;;  %3671 = vrot.lane.b32.xlu1 %v4341_v10, %s5453_s1  ;;  %s5484_s1 = smov 1  }
  0xfd   :  { %3666 = vrot.lane.b32.xlu0 %v4341_v10, %s5451_s29  ;;  %s5486_s29 = smov 3  }
  0xfe   :  { %v3522_v18 = vpop.permute.xlu2 %3521 }
  0xff   :  { %v3524_v19 = vunpack.i.h.bf16 %v3522_v18  ;;  %v3523_v20 = vunpack.i.l.bf16 %v3522_v18 }
 0x101   :  { %v306_v21 = vsel %vm305_vm2, %v3523_v20, %v3524_v19  ;;  %v307_v22 = vsel %vm305_vm2, %v3524_v19, %v3523_v20 }
 0x102   :  { %v315_v23 = vpack.c.bf16 %v306_v21, %v307_v22 }
 0x104   :  { %317 = vst [vmem:[#allocation2 + $0x50] sm:$0xff] %v315_v23  ;;  %3691 = vrot.lane.b32.xlu2 %v4341_v10, %s5502_s30  ;;  %3686 = vrot.lane.b32.xlu1 %v4341_v10, %s5486_s29  ;;  %s5506_s29 = smov 18  }
 0x105   :  { %3681 = vrot.lane.b32.xlu0 %v4341_v10, %s5484_s1 }
 0x106   :  { %v3527_v24 = vpop.permute.xlu2 %3526 }
 0x107   :  { %v3529_v25 = vunpack.i.h.bf16 %v3527_v24  ;;  %v3528_v26 = vunpack.i.l.bf16 %v3527_v24 }
 0x109   :  { %v313_v27 = vsel %vm312_vm3, %v3528_v26, %v3529_v25  ;;  %v314_v28 = vsel %vm312_vm3, %v3529_v25, %v3528_v26 }
 0x10a   :  { %v316_v29 = vpack.c.bf16 %v313_v27, %v314_v28 }
 0x10c   :  { %318 = vst [vmem:[#allocation2 + $0x58] sm:$0xff] %v316_v29  ;;  %951 = vrot.lane.b32.xlu1 %v946_v17, %s5484_s1  ;;  %962 = vrot.lane.b32.xlu2 %v958_v39, %s5503_s5 }
 0x10d   :  { %949 = vrot.lane.b32.xlu0 %v945_v16, %s5484_s1 }
 0x10e   :  { %v3542_v30 = vpop.permute.xlu2 %3541 }
 0x10f   :  { %v3544_v31 = vunpack.i.h.bf16 %v3542_v30  ;;  %v3543_v32 = vunpack.i.l.bf16 %v3542_v30 }
 0x111   :  { %v479_v33 = vsel %vm5456_vm4, %v3543_v32, %v3544_v31  ;;  %v480_v34 = vsel %vm5456_vm4, %v3544_v31, %v3543_v32  ;;  %vm5460_vm4 = vcmp.lt.s32.totalorder %v4409_v15, 122 }
 0x112   :  { %v488_v35 = vpack.c.bf16 %v480_v34, %v479_v33 }
 0x114   :  { %490 = vst [vmem:[#allocation2 + $0xf0] sm:$0xff] %v488_v35 }
 0x115   :  { %964 = vrot.lane.b32.xlu0 %v959_v36, %s5503_s5 }
 0x116   :  { %v3557_v37 = vpop.permute.xlu2 %3556  ;;  %v3512_v38 = vpop.permute.xlu1 %3511 }
 0x117   :  { %v3559_v40 = vunpack.i.h.bf16 %v3557_v37  ;;  %v3558_v41 = vunpack.i.l.bf16 %v3557_v37  ;;  %v3514_v42 = vunpack.i.h.bf16 %v3512_v38  ;;  %v3513_v43 = vunpack.i.l.bf16 %v3512_v38  ;;  %v3502_v44 = vpop.permute.xlu0 %3501 }
 0x118   :  { %v3504_v45 = vunpack.i.h.bf16 %v3502_v44  ;;  %v3503_v46 = vunpack.i.l.bf16 %v3502_v44 }
 0x119   :  { %v277_v47 = vsel %vm5464_vm5, %v3558_v41, %v3559_v40  ;;  %v278_v48 = vsel %vm5464_vm5, %v3559_v40, %v3558_v41  ;;  %v324_v49 = vsel %vm323_vm6, %v3513_v43, %v3514_v42  ;;  %v325_v50 = vsel %vm323_vm6, %v3514_v42, %v3513_v43 }
 0x11a   :  { %v280_v51 = vpack.c.bf16 %v277_v47, %v278_v48  ;;  %v333_v52 = vpack.c.bf16 %v324_v49, %v325_v50  ;;  %v342_v53 = vsel %vm341_vm7, %v3503_v46, %v3504_v45  ;;  %v343_v54 = vsel %vm341_vm7, %v3504_v45, %v3503_v46 }
 0x11b   :  { %v351_v55 = vpack.c.bf16 %v342_v53, %v343_v54  ;;  %vm5500_vm5 = vcmp.lt.s32.totalorder %v4409_v15, 109 }
 0x11c   :  { %282 = vst [vmem:[#allocation2 + $0x38] sm:$0xff] %v280_v51 }
 0x11d   :  { %335 = vst [vmem:[#allocation2 + $0x60] sm:$0xff] %v333_v52 }
 0x11e   :  { %353 = vst [vmem:[#allocation2 + $0x70] sm:$0xff] %v351_v55  ;;  %v3572_v56 = vpop.permute.xlu2 %3571  ;;  %v3517_v57 = vpop.permute.xlu1 %3516 }
 0x11f   :  { %v3574_v58 = vunpack.i.h.bf16 %v3572_v56  ;;  %v3573_v59 = vunpack.i.l.bf16 %v3572_v56  ;;  %v3519_v60 = vunpack.i.h.bf16 %v3517_v57  ;;  %v3518_v61 = vunpack.i.l.bf16 %v3517_v57  ;;  %v3507_v62 = vpop.permute.xlu0 %3506 }
 0x120   :  { %v3509_v63 = vunpack.i.h.bf16 %v3507_v62  ;;  %v3508_v1 = vunpack.i.l.bf16 %v3507_v62  ;;  %v3338_v62 = vld [vmem:[#allocation2 + $0x54] sm:$0xf] }
 0x121   :  { %v252_v2 = vsel %vm5458_vm8, %v3573_v59, %v3574_v58  ;;  %v253_v3 = vsel %vm5458_vm8, %v3574_v58, %v3573_v59  ;;  %v331_v4 = vsel %vm330_vm9, %v3518_v61, %v3519_v60  ;;  %v332_v5 = vsel %vm330_vm9, %v3519_v60, %v3518_v61  ;;  %v3339_v59 = vld [vmem:[#allocation2 + $0x54] sm:$0xf0]  ;;  %v2837_v61 = vld [vmem:[#allocation2 + $0x50] sm:$0xf] }
 0x122   :  { %v261_v6 = vpack.c.bf16 %v252_v2, %v253_v3  ;;  %v334_v7 = vpack.c.bf16 %v331_v4, %v332_v5  ;;  %v349_v8 = vsel %vm348_vm10, %v3508_v1, %v3509_v63  ;;  %v350_v9 = vsel %vm348_vm10, %v3509_v63, %v3508_v1  ;;  %v2839_v63 = vld [vmem:[#allocation2 + $0x58] sm:$0xf0] }
 0x123   :  { %v352_v10 = vpack.c.bf16 %v349_v8, %v350_v9  ;;  %v2838_v3 = vor.u32 %v3339_v59, %v2837_v61  ;;  %vm5461_vm8 = vcmp.lt.s32.totalorder %v4409_v15, 119  ;;  %v2842_v8 = vor.u32 %v3338_v62, %v2839_v63 }
 0x124   :  { %263 = vst [vmem:[#allocation2 + $0x20] sm:$0xff] %v261_v6  ;;  %v2845_v45 = vld [vmem:[#allocation2 + $0x60] sm:$0xf]  ;;  %v3340_v46 = vld [vmem:[#allocation2 + $0x64] sm:$0xf] }
 0x125   :  { %336 = vst [vmem:[#allocation2 + $0x68] sm:$0xff] %v334_v7  ;;  %v2853_v30 = vld [vmem:[#allocation2 + $0x70] sm:$0xf]  ;;  %v3342_v31 = vld [vmem:[#allocation2 + $0x74] sm:$0xf] }
 0x126   :  { %354 = vst [vmem:[#allocation2 + $0x78] sm:$0xff] %v352_v10  ;;  %v3587_v11 = vpop.permute.xlu2 %3586  ;;  %v3537_v12 = vpop.permute.xlu1 %3536 }
 0x127   :  { %v3589_v13 = vunpack.i.h.bf16 %v3587_v11  ;;  %v3588_v14 = vunpack.i.l.bf16 %v3587_v11  ;;  %v3539_v16 = vunpack.i.h.bf16 %v3537_v12  ;;  %v3538_v17 = vunpack.i.l.bf16 %v3537_v12  ;;  %v3532_v18 = vpop.permute.xlu0 %3531 }
 0x128   :  { %v3534_v19 = vunpack.i.h.bf16 %v3532_v18  ;;  %v3533_v20 = vunpack.i.l.bf16 %v3532_v18 }
 0x129   :  { %v450_v21 = vsel %vm5455_vm11, %v3588_v14, %v3589_v13  ;;  %v451_v22 = vsel %vm5455_vm11, %v3589_v13, %v3588_v14  ;;  %v295_v23 = vsel %vm294_vm12, %v3538_v17, %v3539_v16  ;;  %v296_v24 = vsel %vm294_vm12, %v3539_v16, %v3538_v17 }
 0x12a   :  { %v453_v25 = vpack.c.bf16 %v451_v22, %v450_v21  ;;  %v298_v26 = vpack.c.bf16 %v295_v23, %v296_v24  ;;  %v288_v27 = vsel %vm5467_vm13, %v3533_v20, %v3534_v19  ;;  %v289_v28 = vsel %vm5467_vm13, %v3534_v19, %v3533_v20 }
 0x12b   :  { %v297_v29 = vpack.c.bf16 %v288_v27, %v289_v28  ;;  %vm5457_vm11 = vcmp.lt.s32.totalorder %v4409_v15, 116  ;;  %v3335_v28 = vld [vmem:[#allocation2 + $0x34] sm:$0xf0]  ;;  %vm5473_vm13 = vcmp.lt.s32.totalorder %v4409_v15, 16 }
 0x12c   :  { %455 = vst [vmem:[#allocation2 + $0xd8] sm:$0xff] %v453_v25  ;;  %v3341_v32 = vld [vmem:[#allocation2 + $0x64] sm:$0xf0]  ;;  %v2847_v33 = vld [vmem:[#allocation2 + $0x68] sm:$0xf0] }
 0x12d   :  { %300 = vst [vmem:[#allocation2 + $0x48] sm:$0xff] %v298_v26  ;;  %v3343_v34 = vld [vmem:[#allocation2 + $0x74] sm:$0xf0]  ;;  %v2855_v35 = vld [vmem:[#allocation2 + $0x78] sm:$0xf0]  ;;  %v2846_v49 = vor.u32 %v3341_v32, %v2845_v45  ;;  %v2850_v50 = vor.u32 %v3340_v46, %v2847_v33 }
 0x12e   :  { %299 = vst [vmem:[#allocation2 + $0x40] sm:$0xff] %v297_v29  ;;  %v3602_v36 = vpop.permute.xlu2 %3601  ;;  %v3552_v37 = vpop.permute.xlu1 %3551  ;;  %v2854_v38 = vor.u32 %v3343_v34, %v2853_v30  ;;  %v2858_v39 = vor.u32 %v3342_v31, %v2855_v35  ;;  %v2823_v29 = vld [vmem:[#allocation2 + $0x38] sm:$0xf0]  ;;  %v2917_v33 = vld [vmem:[#allocation2 + $0xf0] sm:$0xf] }
 0x12f   :  { %v3604_v40 = vunpack.i.h.bf16 %v3602_v36  ;;  %v3603_v41 = vunpack.i.l.bf16 %v3602_v36  ;;  %v3554_v42 = vunpack.i.h.bf16 %v3552_v37  ;;  %v3553_v43 = vunpack.i.l.bf16 %v3552_v37  ;;  %v3547_v44 = vpop.permute.xlu0 %3546 }
 0x130   :  { %v3549_v47 = vunpack.i.h.bf16 %v3547_v44  ;;  %v3548_v48 = vunpack.i.l.bf16 %v3547_v44  ;;  %836 = vmatpush.bf16.msra.mxu2 %v2854_v38  ;;  %890 = vmatpush.bf16.msrb.mxu1 %v2858_v39 }
 0x131   :  { %v234_v51 = vsel %vm5468_vm14, %v3603_v41, %v3604_v40  ;;  %v235_v52 = vsel %vm5468_vm14, %v3604_v40, %v3603_v41  ;;  %v270_v53 = vsel %vm5469_vm15, %v3553_v43, %v3554_v42  ;;  %v271_v54 = vsel %vm5469_vm15, %v3554_v42, %v3553_v43 }
 0x132   :  { %v243_v55 = vpack.c.bf16 %v234_v51, %v235_v52  ;;  %v279_v56 = vpack.c.bf16 %v270_v53, %v271_v54  ;;  %v486_v57 = vsel %vm5457_vm11, %v3548_v48, %v3549_v47  ;;  %v487_v58 = vsel %vm5457_vm11, %v3549_v47, %v3548_v48 }
 0x133   :  { %v489_v60 = vpack.c.bf16 %v487_v58, %v486_v57  ;;  %vm5459_vm11 = vcmp.lt.s32.totalorder %v4409_v15, 118  ;;  %vm5471_vm14 = vcmp.lt.s32.totalorder %v4409_v15, 114  ;;  %vm5472_vm15 = vcmp.lt.s32.totalorder %v4409_v15, 110 }
 0x134   :  { %245 = vst [vmem:[#allocation2 + $0x10] sm:$0xff] %v243_v55  ;;  %837 = vmatpush.bf16.msra.mxu2 %v2846_v49  ;;  %891 = vmatpush.bf16.msrb.mxu1 %v2850_v50  ;;  %v3337_v1 = vld [vmem:[#allocation2 + $0x44] sm:$0xf0]  ;;  %v2831_v2 = vld [vmem:[#allocation2 + $0x48] sm:$0xf0] }
 0x135   :  { %281 = vst [vmem:[#allocation2 + $0x30] sm:$0xff] %v279_v56  ;;  %v2829_v4 = vld [vmem:[#allocation2 + $0x40] sm:$0xf]  ;;  %v3336_v5 = vld [vmem:[#allocation2 + $0x44] sm:$0xf] }
 0x136   :  { %491 = vst [vmem:[#allocation2 + $0xf8] sm:$0xff] %v489_v60  ;;  %v3617_v6 = vpop.permute.xlu2 %3616  ;;  %v3567_v7 = vpop.permute.xlu1 %3566  ;;  %v2830_v17 = vor.u32 %v3337_v1, %v2829_v4  ;;  %v2834_v18 = vor.u32 %v3336_v5, %v2831_v2 }
 0x137   :  { %v3619_v9 = vunpack.i.h.bf16 %v3617_v6  ;;  %v3618_v10 = vunpack.i.l.bf16 %v3617_v6  ;;  %v3569_v11 = vunpack.i.h.bf16 %v3567_v7  ;;  %v3568_v12 = vunpack.i.l.bf16 %v3567_v7  ;;  %v3562_v13 = vpop.permute.xlu0 %3561 }
 0x138   :  { %v3564_v14 = vunpack.i.h.bf16 %v3562_v13  ;;  %v3563_v16 = vunpack.i.l.bf16 %v3562_v13  ;;  %838 = vmatpush.bf16.msra.mxu2 %v2838_v3  ;;  %892 = vmatpush.bf16.msrb.mxu1 %v2842_v8  ;;  %v2813_v13 = vld [vmem:[#allocation2 + $0x20] sm:$0xf] }
 0x139   :  { %v432_v19 = vsel %vm5460_vm4, %v3618_v10, %v3619_v9  ;;  %v433_v20 = vsel %vm5460_vm4, %v3619_v9, %v3618_v10  ;;  %v468_v21 = vsel %vm5459_vm11, %v3568_v12, %v3569_v11  ;;  %v469_v22 = vsel %vm5459_vm11, %v3569_v11, %v3568_v12 }
 0x13a   :  { %v435_v23 = vpack.c.bf16 %v433_v20, %v432_v19  ;;  %v471_v24 = vpack.c.bf16 %v469_v22, %v468_v21  ;;  %v461_v25 = vsel %vm5461_vm8, %v3563_v16, %v3564_v14  ;;  %v462_v26 = vsel %vm5461_vm8, %v3564_v14, %v3563_v16  ;;  %v3332_v14 = vld [vmem:[#allocation2 + $0x24] sm:$0xf] }
 0x13b   :  { %v470_v27 = vpack.c.bf16 %v462_v26, %v461_v25  ;;  %vm5462_vm11 = vcmp.lt.s32.totalorder %v4409_v15, 19  ;;  %vm5463_vm4 = vcmp.lt.s32.totalorder %v4409_v15, 121  ;;  %vm5501_vm8 = vcmp.lt.s32.totalorder %v4409_v15, 14 }
 0x13c   :  { %437 = vst [vmem:[#allocation2 + $0xc8] sm:$0xff] %v435_v23  ;;  %839 = vmatpush.bf16.msra.mxu2 %v2830_v17  ;;  %893 = vmatpush.bf16.msrb.mxu1 %v2834_v18  ;;  %v2821_v30 = vld [vmem:[#allocation2 + $0x30] sm:$0xf]  ;;  %v3334_v31 = vld [vmem:[#allocation2 + $0x34] sm:$0xf] }
 0x13d   :  { %473 = vst [vmem:[#allocation2 + $0xe8] sm:$0xff] %v471_v24  ;;  %v2822_v32 = vor.u32 %v3335_v28, %v2821_v30  ;;  %v3359_v34 = vld [vmem:[#allocation2 + $0xf4] sm:$0xf0]  ;;  %v2826_v35 = vor.u32 %v3334_v31, %v2823_v29 }
 0x13e   :  { %472 = vst [vmem:[#allocation2 + $0xe0] sm:$0xff] %v470_v27  ;;  %v3632_v36 = vpop.permute.xlu2 %3631  ;;  %v3582_v37 = vpop.permute.xlu1 %3581  ;;  %v2918_v38 = vor.u32 %v3359_v34, %v2917_v33  ;;  %v3355_v17 = vld [vmem:[#allocation2 + $0xd4] sm:$0xf0] }
 0x13f   :  { %v3634_v39 = vunpack.i.h.bf16 %v3632_v36  ;;  %v3633_v40 = vunpack.i.l.bf16 %v3632_v36  ;;  %v3584_v41 = vunpack.i.h.bf16 %v3582_v37  ;;  %v3583_v42 = vunpack.i.l.bf16 %v3582_v37  ;;  %v3577_v43 = vpop.permute.xlu0 %3576 }
 0x140   :  { %v3579_v44 = vunpack.i.h.bf16 %v3577_v43  ;;  %v3578_v45 = vunpack.i.l.bf16 %v3577_v43  ;;  %840 = vmatpush.bf16.msra.mxu2 %v2822_v32  ;;  %854 = vmatpush.bf16.msra.mxu3 %v2918_v38 }
 0x141   :  { %v216_v46 = vsel %vm5462_vm11, %v3633_v40, %v3634_v39  ;;  %v217_v47 = vsel %vm5462_vm11, %v3634_v39, %v3633_v40  ;;  %v443_v48 = vsel %vm5463_vm4, %v3583_v42, %v3584_v41  ;;  %v444_v49 = vsel %vm5463_vm4, %v3584_v41, %v3583_v42  ;;  %894 = vmatpush.bf16.msrb.mxu1 %v2826_v35 }
 0x142   :  { %v225_v50 = vpack.c.bf16 %v216_v46, %v217_v47  ;;  %v452_v51 = vpack.c.bf16 %v444_v49, %v443_v48  ;;  %v259_v52 = vsel %vm5501_vm8, %v3578_v45, %v3579_v44  ;;  %v260_v53 = vsel %vm5501_vm8, %v3579_v44, %v3578_v45 }
 0x143   :  { %v262_v54 = vpack.c.bf16 %v259_v52, %v260_v53  ;;  %vm5465_vm11 = vcmp.lt.s32.totalorder %v4409_v15, 124  ;;  %vm5466_vm4 = vcmp.lt.s32.totalorder %v4409_v15, 108 }
 0x144   :  { %227 = vst [vmem:[#allocation2] sm:$0xff] %v225_v50  ;;  %v3357_v55 = vld [vmem:[#allocation2 + $0xe4] sm:$0xf0] }
 0x145   :  { %454 = vst [vmem:[#allocation2 + $0xd0] sm:$0xff] %v452_v51  ;;  %v2909_v56 = vld [vmem:[#allocation2 + $0xe0] sm:$0xf] }
 0x146   :  { %264 = vst [vmem:[#allocation2 + $0x28] sm:$0xff] %v262_v54  ;;  %v3647_v57 = vpop.permute.xlu2 %3646  ;;  %v3597_v58 = vpop.permute.xlu1 %3596  ;;  %v2910_v59 = vor.u32 %v3357_v55, %v2909_v56 }
 0x147   :  { %v3649_v60 = vunpack.i.h.bf16 %v3647_v57  ;;  %v3648_v61 = vunpack.i.l.bf16 %v3647_v57  ;;  %v3599_v62 = vunpack.i.h.bf16 %v3597_v58  ;;  %v3598_v63 = vunpack.i.l.bf16 %v3597_v58  ;;  %v3592_v1 = vpop.permute.xlu0 %3591 }
 0x148   :  { %v3594_v2 = vunpack.i.h.bf16 %v3592_v1  ;;  %v3593_v3 = vunpack.i.l.bf16 %v3592_v1  ;;  %855 = vmatpush.bf16.msra.mxu3 %v2910_v59 }
 0x149   :  { %v414_v4 = vsel %vm5465_vm11, %v3648_v61, %v3649_v60  ;;  %v415_v5 = vsel %vm5465_vm11, %v3649_v60, %v3648_v61  ;;  %v558_v6 = vsel %vm5466_vm4, %v3598_v63, %v3599_v62  ;;  %v559_v7 = vsel %vm5466_vm4, %v3599_v62, %v3598_v63  ;;  %v2805_v62 = vld [vmem:[#allocation2 + $0x10] sm:$0xf]  ;;  %v3330_v63 = vld [vmem:[#allocation2 + $0x14] sm:$0xf] }
 0x14a   :  { %v417_v8 = vpack.c.bf16 %v415_v5, %v414_v4  ;;  %v561_v9 = vpack.c.bf16 %v559_v7, %v558_v6  ;;  %v551_v10 = vsel %vm5500_vm5, %v3593_v3, %v3594_v2  ;;  %v552_v11 = vsel %vm5500_vm5, %v3594_v2, %v3593_v3  ;;  %v3353_v2 = vld [vmem:[#allocation2 + $0xc4] sm:$0xf0] }
 0x14b   :  { %v560_v12 = vpack.c.bf16 %v552_v11, %v551_v10  ;;  %vm388_vm11 = vcmp.lt.s32.totalorder %v4409_v15, 127  ;;  %vm5470_vm4 = vcmp.lt.s32.totalorder %v4409_v15, 123 }
 0x14c   :  { %419 = vst [vmem:[#allocation2 + $0xb8] sm:$0xff] %v417_v8  ;;  %v2901_v16 = vld [vmem:[#allocation2 + $0xd0] sm:$0xf] }
 0x14d   :  { %563 = vst [vmem:[#allocation2 + $0x138] sm:$0xff] %v561_v9  ;;  %v3333_v18 = vld [vmem:[#allocation2 + $0x24] sm:$0xf0]  ;;  %v2902_v19 = vor.u32 %v3355_v17, %v2901_v16  ;;  %v2815_v20 = vld [vmem:[#allocation2 + $0x28] sm:$0xf0] }
 0x14e   :  { %562 = vst [vmem:[#allocation2 + $0x130] sm:$0xff] %v560_v12  ;;  %v3662_v21 = vpop.permute.xlu2 %3661  ;;  %v3612_v22 = vpop.permute.xlu1 %3611  ;;  %v2814_v23 = vor.u32 %v3333_v18, %v2813_v13  ;;  %v2818_v24 = vor.u32 %v3332_v14, %v2815_v20 }
 0x14f   :  { %v3664_v25 = vunpack.i.h.bf16 %v3662_v21  ;;  %v3663_v26 = vunpack.i.l.bf16 %v3662_v21  ;;  %v3614_v27 = vunpack.i.h.bf16 %v3612_v22  ;;  %v3613_v28 = vunpack.i.l.bf16 %v3612_v22  ;;  %v3607_v29 = vpop.permute.xlu0 %3606  ;;  %856 = vmatpush.bf16.msra.mxu3 %v2902_v19 }
 0x150   :  { %v3609_v30 = vunpack.i.h.bf16 %v3607_v29  ;;  %v3608_v31 = vunpack.i.l.bf16 %v3607_v29  ;;  %841 = vmatpush.bf16.msra.mxu2 %v2814_v23  ;;  %895 = vmatpush.bf16.msrb.mxu1 %v2818_v24 }
 0x151   :  { %v389_v32 = vsel %vm388_vm11, %v3663_v26, %v3664_v25  ;;  %v390_v33 = vsel %vm388_vm11, %v3664_v25, %v3663_v26  ;;  %v425_v34 = vsel %vm5470_vm4, %v3613_v28, %v3614_v27  ;;  %v426_v35 = vsel %vm5470_vm4, %v3614_v27, %v3613_v28 }
 0x152   :  { %v398_v36 = vpack.c.bf16 %v390_v33, %v389_v32  ;;  %v434_v37 = vpack.c.bf16 %v426_v35, %v425_v34  ;;  %v241_v38 = vsel %vm5473_vm13, %v3608_v31, %v3609_v30  ;;  %v242_v39 = vsel %vm5473_vm13, %v3609_v30, %v3608_v31 }
 0x153   :  { %v244_v40 = vpack.c.bf16 %v241_v38, %v242_v39  ;;  %vm5477_vm4 = vcmp.lt.s32.totalorder %v4409_v15, 111  ;;  %vm5476_vm13 = vcmp.lt.s32.totalorder %v4409_v15, 18 }
 0x154   :  { %400 = vst [vmem:[#allocation2 + $0xa0] sm:$0xff] %v398_v36  ;;  %v3367_v41 = vld [vmem:[#allocation2 + $0x134] sm:$0xf0] }
 0x155   :  { %436 = vst [vmem:[#allocation2 + $0xc0] sm:$0xff] %v434_v37  ;;  %v2949_v42 = vld [vmem:[#allocation2 + $0x130] sm:$0xf] }
 0x156   :  { %246 = vst [vmem:[#allocation2 + $0x18] sm:$0xff] %v244_v40  ;;  %v3677_v43 = vpop.permute.xlu2 %3676  ;;  %v3627_v44 = vpop.permute.xlu1 %3626  ;;  %v2950_v45 = vor.u32 %v3367_v41, %v2949_v42  ;;  %v3351_v41 = vld [vmem:[#allocation2 + $0xb4] sm:$0xf0] }
 0x157   :  { %v3679_v46 = vunpack.i.h.bf16 %v3677_v43  ;;  %v3678_v47 = vunpack.i.l.bf16 %v3677_v43  ;;  %v3629_v48 = vunpack.i.h.bf16 %v3627_v44  ;;  %v3628_v49 = vunpack.i.l.bf16 %v3627_v44  ;;  %v3622_v50 = vpop.permute.xlu0 %3621  ;;  %v2797_v43 = vld [vmem:[#allocation2] sm:$0xf]  ;;  %v3328_v44 = vld [vmem:[#allocation2 + $0x4] sm:$0xf] }
 0x158   :  { %v3624_v51 = vunpack.i.h.bf16 %v3622_v50  ;;  %v3623_v52 = vunpack.i.l.bf16 %v3622_v50  ;;  %876 = vmatpush.bf16.msrb.mxu0 %v2950_v45  ;;  %v3366_v45 = vld [vmem:[#allocation2 + $0x134] sm:$0xf] }
 0x159   :  { %v504_v53 = vsel %vm5471_vm14, %v3678_v47, %v3679_v46  ;;  %v505_v54 = vsel %vm5471_vm14, %v3679_v46, %v3678_v47  ;;  %v540_v55 = vsel %vm5472_vm15, %v3628_v49, %v3629_v48  ;;  %v541_v56 = vsel %vm5472_vm15, %v3629_v48, %v3628_v49  ;;  %v2951_v46 = vld [vmem:[#allocation2 + $0x138] sm:$0xf0]  ;;  %v2785_v47 = vld [vmem:[#allocation5] sm:$0xf]  ;;  %v3326_v49 = vld [vmem:[#allocation5 + $0x8] sm:$0xf0] }
 0x15a   :  { %v507_v57 = vpack.c.bf16 %v505_v54, %v504_v53  ;;  %v543_v58 = vpack.c.bf16 %v541_v56, %v540_v55  ;;  %v533_v59 = vsel %vm5477_vm4, %v3623_v52, %v3624_v51  ;;  %v534_v60 = vsel %vm5477_vm4, %v3624_v51, %v3623_v52 }
 0x15b   :  { %v542_v61 = vpack.c.bf16 %v534_v60, %v533_v59  ;;  %vm5474_vm14 = vcmp.lt.s32.totalorder %v4409_v15, 2  ;;  %vm5475_vm15 = vcmp.lt.s32.totalorder %v4409_v15, 125  ;;  %vm5479_vm4 = vcmp.lt.s32.totalorder %v4409_v15, 126 }
 0x15c   :  { %509 = vst [vmem:[#allocation2 + $0x108] sm:$0xff] %v507_v57  ;;  %v2893_v1 = vld [vmem:[#allocation2 + $0xc0] sm:$0xf]  ;;  %v2954_v56 = vor.u32 %v3366_v45, %v2951_v46  ;;  %v2786_v60 = vor.u32 %v3326_v49, %v2785_v47  ;;  %v3356_v49 = vld [vmem:[#allocation2 + $0xe4] sm:$0xf] }
 0x15d   :  { %545 = vst [vmem:[#allocation2 + $0x128] sm:$0xff] %v543_v58  ;;  %v3331_v3 = vld [vmem:[#allocation2 + $0x14] sm:$0xf0]  ;;  %v2894_v4 = vor.u32 %v3353_v2, %v2893_v1  ;;  %v2807_v5 = vld [vmem:[#allocation2 + $0x18] sm:$0xf0] }
 0x15e   :  { %544 = vst [vmem:[#allocation2 + $0x120] sm:$0xff] %v542_v61  ;;  %v3692_v6 = vpop.permute.xlu2 %3691  ;;  %v3642_v7 = vpop.permute.xlu1 %3641  ;;  %v2806_v8 = vor.u32 %v3331_v3, %v2805_v62  ;;  %v2810_v9 = vor.u32 %v3330_v63, %v2807_v5  ;;  %v112_v61 = vadd.s32 128, %v4409_v15 }
 0x15f   :  { %v3694_v10 = vunpack.i.h.bf16 %v3692_v6  ;;  %v3693_v11 = vunpack.i.l.bf16 %v3692_v6  ;;  %v3644_v12 = vunpack.i.h.bf16 %v3642_v7  ;;  %v3643_v13 = vunpack.i.l.bf16 %v3642_v7  ;;  %v3637_v14 = vpop.permute.xlu0 %3636  ;;  %857 = vmatpush.bf16.msra.mxu3 %v2894_v4 }
 0x160   :  { %v3639_v16 = vunpack.i.h.bf16 %v3637_v14  ;;  %v3638_v17 = vunpack.i.l.bf16 %v3637_v14  ;;  %842 = vmatpush.bf16.msra.mxu2 %v2806_v8  ;;  %896 = vmatpush.bf16.msrb.mxu1 %v2810_v9 }
 0x161   :  { %v367_v18 = vsel %vm5474_vm14, %v3693_v11, %v3694_v10  ;;  %v368_v19 = vsel %vm5474_vm14, %v3694_v10, %v3693_v11  ;;  %v407_v20 = vsel %vm5475_vm15, %v3643_v13, %v3644_v12  ;;  %v408_v21 = vsel %vm5475_vm15, %v3644_v12, %v3643_v13 }
 0x162   :  { %v370_v22 = vpack.c.bf16 %v367_v18, %v368_v19  ;;  %v416_v23 = vpack.c.bf16 %v408_v21, %v407_v20  ;;  %v223_v24 = vsel %vm5476_vm13, %v3638_v17, %v3639_v16  ;;  %v224_v25 = vsel %vm5476_vm13, %v3639_v16, %v3638_v17 }
 0x163   :  { %v226_v26 = vpack.c.bf16 %v223_v24, %v224_v25  ;;  %vm5482_vm14 = vcmp.lt.s32.totalorder %v4409_v15, 112  ;;  %vm5478_vm15 = vcmp.lt.s32.totalorder %v4409_v15, 113  ;;  %vm5481_vm13 = vcmp.lt.s32.totalorder %v4409_v15, 115  ;;  %v4618_v25 = vld [vmem:[#allocation5 + $0x18] sm:$0xff] }
 0x164   :  { %372 = vst [vmem:[#allocation2 + $0x88] sm:$0xff] %v370_v22  ;;  %v3365_v27 = vld [vmem:[#allocation2 + $0x124] sm:$0xf0]  ;;  %v2943_v2 = vld [vmem:[#allocation2 + $0x128] sm:$0xf0]  ;;  %v124_v12 = vand.u32 127, %v112_v61 }
 0x165   :  { %418 = vst [vmem:[#allocation2 + $0xb0] sm:$0xff] %v416_v23  ;;  %v2941_v28 = vld [vmem:[#allocation2 + $0x120] sm:$0xf]  ;;  %v3364_v1 = vld [vmem:[#allocation2 + $0x124] sm:$0xf] }
 0x166   :  { %228 = vst [vmem:[#allocation2 + $0x8] sm:$0xff] %v226_v26  ;;  %v3657_v29 = vpop.permute.xlu1 %3656  ;;  %v2942_v30 = vor.u32 %v3365_v27, %v2941_v28  ;;  %v2946_v9 = vor.u32 %v3364_v1, %v2943_v2  ;;  %v4616_v22 = vadd.s32 4294967277, %v124_v12  ;;  %v2919_v28 = vld [vmem:[#allocation2 + $0xf8] sm:$0xf0]  ;;  %v3354_v61 = vld [vmem:[#allocation2 + $0xd4] sm:$0xf] }
 0x167   :  { %v3659_v31 = vunpack.i.h.bf16 %v3657_v29  ;;  %v3658_v32 = vunpack.i.l.bf16 %v3657_v29  ;;  %v3652_v33 = vpop.permute.xlu0 %3651  ;;  %v2793_v29 = vld [vmem:[#allocation5 + $0x8] sm:$0xf] }
 0x168   :  { %v3654_v34 = vunpack.i.h.bf16 %v3652_v33  ;;  %v3653_v35 = vunpack.i.l.bf16 %v3652_v33  ;;  %877 = vmatpush.bf16.msrb.mxu0 %v2942_v30  ;;  %v4625_v30 = vadd.s32 4294967277, %v4409_v15 }
 0x169   :  { %v522_v36 = vsel %vm5482_vm14, %v3658_v32, %v3659_v31  ;;  %v523_v37 = vsel %vm5482_vm14, %v3659_v31, %v3658_v32  ;;  %vm829_vm14 = vcmask 523264  }
 0x16a   :  { %v525_v38 = vpack.c.bf16 %v523_v37, %v522_v36  ;;  %v515_v39 = vsel %vm5478_vm15, %v3653_v35, %v3654_v34  ;;  %v516_v40 = vsel %vm5478_vm15, %v3654_v34, %v3653_v35  ;;  %vm5480_vm15 = vcmp.lt.s32.totalorder %v4409_v15, 3  ;;  %v3361_v34 = vld [vmem:[#allocation2 + $0x104] sm:$0xf0]  ;;  %v2927_v35 = vld [vmem:[#allocation2 + $0x108] sm:$0xf0] }
 0x16b   :  { %v524_v42 = vpack.c.bf16 %v516_v40, %v515_v39  ;;  %v3358_v36 = vld [vmem:[#allocation2 + $0xf4] sm:$0xf]  ;;  %v3327_v37 = vld [vmem:[#allocation5 + $0x10] sm:$0xf0] }
 0x16c   :  { %527 = vst [vmem:[#allocation2 + $0x118] sm:$0xff] %v525_v38  ;;  %v2885_v48 = vld [vmem:[#allocation2 + $0xb0] sm:$0xf]  ;;  %v2922_v47 = vor.u32 %v3358_v36, %v2919_v28 }
 0x16d   :  { %526 = vst [vmem:[#allocation2 + $0x110] sm:$0xff] %v524_v42  ;;  %v3329_v50 = vld [vmem:[#allocation2 + $0x4] sm:$0xf0]  ;;  %v2886_v51 = vor.u32 %v3351_v41, %v2885_v48  ;;  %v2799_v52 = vld [vmem:[#allocation2 + $0x8] sm:$0xf0]  ;;  %v616_v41 = vunpack.c.l.b16 %v4618_v25  ;;  %v4633_v48 = vor.u32 %v3327_v37, %v2793_v29 }
 0x16e   :  { %v3672_v53 = vpop.permute.xlu1 %3671  ;;  %v2798_v54 = vor.u32 %v3329_v50, %v2797_v43  ;;  %v2802_v55 = vor.u32 %v3328_v44, %v2799_v52  ;;  %v2877_v42 = vld [vmem:[#allocation2 + $0xa0] sm:$0xf]  ;;  %v2911_v50 = vld [vmem:[#allocation2 + $0xe8] sm:$0xf0] }
 0x16f   :  { %v3674_v57 = vunpack.i.h.bf16 %v3672_v53  ;;  %v3673_v58 = vunpack.i.l.bf16 %v3672_v53  ;;  %v3667_v59 = vpop.permute.xlu0 %3666  ;;  %858 = vmatpush.bf16.msra.mxu3 %v2886_v51  ;;  %v4256_v51 = vmov 0.0  }
 0x170   :  { %v3669_v62 = vunpack.i.h.bf16 %v3667_v59  ;;  %v3668_v63 = vunpack.i.l.bf16 %v3667_v59  ;;  %843 = vmatpush.bf16.msra.mxu2 %v2798_v54  ;;  %897 = vmatpush.bf16.msrb.mxu1 %v2802_v55  ;;  %v622_v55 = vpack.c.b16 %v616_v41, %v616_v41  ;;  %v2914_v59 = vor.u32 %v3356_v49, %v2911_v50  ;;  %v2871_v41 = vld [vmem:[#allocation2 + $0x98] sm:$0xf0] }
 0x171   :  { %v497_v3 = vsel %vm5481_vm13, %v3673_v58, %v3674_v57  ;;  %v498_v4 = vsel %vm5481_vm13, %v3674_v57, %v3673_v58  ;;  %vm149_vm13 = vcmp.eq.s32.totalorder %v4625_v30, 0 }
 0x172   :  { %v506_v5 = vpack.c.bf16 %v498_v4, %v497_v3  ;;  %v396_v6 = vsel %vm5479_vm4, %v3668_v63, %v3669_v62  ;;  %v397_v7 = vsel %vm5479_vm4, %v3669_v62, %v3668_v63  ;;  %vm5483_vm4 = vcmp.lt.s32.totalorder %v4409_v15, 1  ;;  %v3347_v62 = vld [vmem:[#allocation2 + $0x94] sm:$0xf0]  ;;  %v2903_v3 = vld [vmem:[#allocation2 + $0xd8] sm:$0xf0] }
 0x173   :  { %v399_v8 = vpack.c.bf16 %v397_v7, %v396_v6  ;;  %v3363_v10 = vld [vmem:[#allocation2 + $0x114] sm:$0xf0]  ;;  %v2935_v11 = vld [vmem:[#allocation2 + $0x118] sm:$0xf0]  ;;  %844 = vmatmul.bf16.vlgmr.msra.gmra.mxu2 %v2786_v60  ;;  %898 = vmatmul.bf16.vlgmr.msrb.gmra.mxu1 %v2786_v60  ;;  %v963_v6 = vpop.permute.xlu2 %962  ;;  %v3352_v7 = vld [vmem:[#allocation2 + $0xc4] sm:$0xf] }
 0x174   :  { %930 = vmatpush.bf16.msrb.mxu2 %v2954_v56  ;;  %508 = vst [vmem:[#allocation2 + $0x100] sm:$0xff] %v506_v5  ;;  %v2933_v13 = vld [vmem:[#allocation2 + $0x110] sm:$0xf]  ;;  %v3362_v14 = vld [vmem:[#allocation2 + $0x114] sm:$0xf]  ;;  %v4642_v56 = vsel %vm149_vm13, -inf, %v4256_v51  ;;  %v2906_v5 = vor.u32 %v3354_v61, %v2903_v3 }
 0x175   :  { %401 = vst [vmem:[#allocation2 + $0xa8] sm:$0xff] %v399_v8  ;;  %v2934_v16 = vor.u32 %v3363_v10, %v2933_v13  ;;  %v2938_v17 = vor.u32 %v3362_v14, %v2935_v11  ;;  %vm153_vm13 = vcmp.eq.s32.totalorder %v4625_v30, 63  ;;  %v164_v11 = vld [vmem:[#allocation5 + $0x20] sm:$0xf]  ;;  %v2895_v14 = vld [vmem:[#allocation2 + $0xc8] sm:$0xf0] }
 0x176   :  { %v3687_v18 = vpop.permute.xlu1 %3686  ;;  %v4655_v8 = vsel %vm153_vm13, -inf, %v4256_v51  ;;  %vm140_vm13 = vcmp.ge.s32.totalorder %v4616_v22, 0 }
 0x177   :  { %v3689_v19 = vunpack.i.h.bf16 %v3687_v18  ;;  %v3688_v20 = vunpack.i.l.bf16 %v3687_v18  ;;  %v3682_v21 = vpop.permute.xlu0 %3681  ;;  %878 = vmatpush.bf16.msrb.mxu0 %v2934_v16  ;;  %v3325_v16 = vld [vmem:[#allocation5 + $0x4] sm:$0xf] }
 0x178   :  { %931 = vmatpush.bf16.msrb.mxu2 %v2946_v9  ;;  %v3684_v23 = vunpack.i.h.bf16 %v3682_v21  ;;  %v3683_v24 = vunpack.i.l.bf16 %v3682_v21  ;;  %v2898_v21 = vor.u32 %v3352_v7, %v2895_v14 }
 0x179   :  { %v360_v26 = vsel %vm5480_vm15, %v3688_v20, %v3689_v19  ;;  %v361_v27 = vsel %vm5480_vm15, %v3689_v19, %v3688_v20  ;;  %vm150_vm15 = vcmp.eq.s32.totalorder %v4616_v22, 0  ;;  %v3345_v20 = vld [vmem:[#allocation2 + $0x84] sm:$0xf0] }
 0x17a   :  { %v369_v31 = vpack.c.bf16 %v360_v26, %v361_v27  ;;  %v378_v32 = vsel %vm5483_vm4, %v3683_v24, %v3684_v23  ;;  %v379_v33 = vsel %vm5483_vm4, %v3684_v23, %v3683_v24  ;;  %v4639_v52 = vsel %vm150_vm15, -inf, %v4256_v51 }
 0x17b   :  { %v380_v38 = vpack.c.bf16 %v378_v32, %v379_v33  ;;  %v2925_v39 = vld [vmem:[#allocation2 + $0x100] sm:$0xf]  ;;  %v3360_v40 = vld [vmem:[#allocation2 + $0x104] sm:$0xf]  ;;  %vm154_vm15 = vcmp.eq.s32.totalorder %v4616_v22, 63  ;;  %v618_v27 = vunpack.c.l.b16 %v164_v11 }
 0x17c   :  { %932 = vmatpush.bf16.msrb.mxu2 %v2938_v17  ;;  %371 = vst [vmem:[#allocation2 + $0x80] sm:$0xff] %v369_v31  ;;  %v3349_v43 = vld [vmem:[#allocation2 + $0xa4] sm:$0xf0]  ;;  %v2926_v44 = vor.u32 %v3361_v34, %v2925_v39  ;;  %v2930_v45 = vor.u32 %v3360_v40, %v2927_v35  ;;  %v4658_v9 = vsel %vm154_vm15, -inf, %v4256_v51  ;;  %v2787_v17 = vld [vmem:[#allocation5 + $0xc] sm:$0xf0] }
 0x17d   :  { %382 = vst [vmem:[#allocation2 + $0x90] sm:$0xff] %v380_v38  ;;  %v2878_v46 = vor.u32 %v3349_v43, %v2877_v42  ;;  %v2790_v29 = vor.u32 %v3325_v16, %v2787_v17  ;;  %v3350_v31 = vld [vmem:[#allocation2 + $0xb4] sm:$0xf]  ;;  %v2887_v33 = vld [vmem:[#allocation2 + $0xb8] sm:$0xf0]  ;;  %v624_v36 = vpack.c.b16 %v618_v27, %v618_v27  ;;  %vm142_vm15 = vcmp.lt.s32.totalorder %v4616_v22, 64 }
 0x17e   :  { %879 = vmatpush.bf16.msrb.mxu0 %v2926_v44  ;;  %v952_v53 = vpop.permute.xlu1 %951  ;;  %v2890_v35 = vor.u32 %v3350_v31, %v2887_v33  ;;  %v2879_v38 = vld [vmem:[#allocation2 + $0xa8] sm:$0xf0]  ;;  %v3348_v39 = vld [vmem:[#allocation2 + $0xa4] sm:$0xf]  ;;  %v617_v44 = vunpack.c.h.b16 %v4618_v25 }
 0x17f   :  { %859 = vmatpush.bf16.msra.mxu3 %v2878_v46  ;;  %v950_v54 = vpop.permute.xlu0 %949  ;;  %v2882_v40 = vor.u32 %v3348_v39, %v2879_v38 }
 0x180   :  { %933 = vmatpush.bf16.msrb.mxu2 %v2930_v45  ;;  %v953_v57 = vsel %vm5483_vm4, %v950_v54, %v952_v53  ;;  %v954_v58 = vsel %vm5483_vm4, %v952_v53, %v950_v54  ;;  %vm973_vm4 = vcmask 1043456   ;;  %v623_v54 = vpack.c.b16 %v617_v44, %v617_v44 }
 0x181   :  { %2955 = vmatmul.msk.bf16.vlgmr.msrb.gmra.mxu0 %vm829_vm14, %v4633_v48  ;;  %v956_v60 = vadd.f32 %v953_v57, %v4639_v52  ;;  %v955_v63 = vadd.f32 %v954_v58, %v4642_v56 }
 0x182   :  { %908 = vmatpush.bf16.msra.mxu0 %v2922_v47  ;;  %v2863_v47 = vld [vmem:[#allocation2 + $0x88] sm:$0xf0] }
 0x183   :  { %v972_v1 = vrot.slane %v956_v60, 4  ;;  %849 = vmatmul.bf16.gmra.mxu2 %v622_v55  ;;  %903 = vmatmul.bf16.gmra.mxu1 %v622_v55  ;;  %v2861_v10 = vld [vmem:[#allocation2 + $0x80] sm:$0xf]  ;;  %v3344_v43 = vld [vmem:[#allocation2 + $0x84] sm:$0xf] }
 0x184   :  { %v2869_v2 = vld [vmem:[#allocation2 + $0x90] sm:$0xf]  ;;  %v2862_v26 = vor.u32 %v3345_v20, %v2861_v10  ;;  %v2866_v53 = vor.u32 %v3344_v43, %v2863_v47 }
 0x185   :  { %v2870_v4 = vor.u32 %v3347_v62, %v2869_v2  ;;  %v974_v12 = vsel %vm973_vm4, %v955_v63, %v972_v1 }
 0x186   :  { %909 = vmatpush.bf16.msra.mxu0 %v2914_v59  ;;  %v976_v28 = vmax.f32 %v4333_v0, %v974_v12  ;;  %v3346_v0 = vld [vmem:[#allocation2 + $0x94] sm:$0xf] }
 0x187   :  { %860 = vmatpush.bf16.msra.mxu3 %v2870_v4  ;;  %v965_v13 = vpop.permute.xlu0 %964  ;;  %v2874_v42 = vor.u32 %v3346_v0, %v2871_v41 }
 0x188   :  { %v966_v18 = vsel %vm388_vm11, %v963_v6, %v965_v13  ;;  %v967_v19 = vsel %vm388_vm11, %v965_v13, %v963_v6 }
 0x189   :  { %v968_v23 = vadd.f32 %v966_v18, %v4655_v8  ;;  %v969_v24 = vadd.f32 %v967_v19, %v4658_v9 }
 0x18a   :  { %910 = vmatpush.bf16.msra.mxu0 %v2906_v5 }
 0x18b   :  { %v979_v32 = vrot.slane %v969_v24, 4  ;;  %861 = vmatpush.bf16.msra.mxu3 %v2862_v26 }
 0x18d   :  { %v980_v34 = vsel %vm973_vm4, %v968_v23, %v979_v32 }
 0x18e   :  { %911 = vmatpush.bf16.msra.mxu0 %v2898_v21  ;;  %v982_v37 = vmax.f32 %v976_v28, %v980_v34  ;;  %862 = vmatmul.bf16.vlgmr.msra.gmra.mxu3 %v2790_v29 }
 0x190   :  { %984 = vst [vmem:[#allocation1] ss:$2 sm:$0xff] %v982_v37 }
 0x191   :  { %2956 = vmatmul.msk.bf16.gmra.mxu0 %vm829_vm14, %v624_v36 }
 0x192   :  { %912 = vmatpush.bf16.msra.mxu0 %v2890_v35 }
 0x193   :  { %2957 = vmatmul.msk.bf16.vlgmr.msrb.gmra.mxu2 %vm829_vm14, %v4633_v48  ;;  %v165_v48 = vld [vmem:[#allocation7] sm:$0xf] }
 0x196   :  { %913 = vmatpush.bf16.msra.mxu0 %v2882_v40 }
 0x197   :  { %v985_v45 = vld.sshfl [vmem:[#allocation1] sm:$0xff pattern:$0x75316420]  ;;  %v986_v46 = vld.sshfl [vmem:[#allocation1 + $0x8] sm:$0xff pattern:$0x75316420] }
 0x198   :  { %v989_v49 = vpack.c.bf16 %v985_v45, %v985_v45  ;;  %v990_v50 = vpack.c.bf16 %v986_v46, %v986_v46 }
 0x19a   :  { %914 = vmatpush.bf16.msra.mxu0 %v2874_v42  ;;  %v995_v55 = vsel %vm178_vm0, %v989_v49, 0  ;;  %v998_v57 = vsel %vm178_vm0, %v990_v50, 0  ;;  %vm139_vm0 = vcmp.ge.s32.totalorder %v4625_v30, 0 }
 0x19b   :  { %1007 = vmatpush.bf16.msrb.mxu3 %v995_v55  ;;  %1020 = vmatpush.bf16.msra.mxu1 %v998_v57 }
 0x19e   :  { %915 = vmatpush.bf16.msra.mxu0 %v2866_v53  ;;  %867 = vmatmul.bf16.gmra.mxu3 %v623_v54 }
 0x19f   :  { %2960 = vmatmul.msk.bf16.vlgmr.msra.gmra.mxu1 %vm174_vm1, %v165_v48 }
 0x1a1   :  { %916 = vmatmul.bf16.vlgmr.msra.gmra.mxu0 %v2790_v29 }
 0x1a3   :  { %2958 = vmatmul.msk.bf16.gmra.mxu2 %vm829_vm14, %v624_v36 }
 0x1ae   :  { %2959 = vmatmul.msk.bf16.vlgmr.msrb.gmra.mxu3 %vm174_vm1, %v165_v48  ;;  %vm141_vm1 = vcmp.lt.s32.totalorder %v4625_v30, 64 }
 0x1af   :  { %vm143_vm4 = vmand %vm139_vm0, %vm141_vm1  ;;  %vm1054_vm1 = vcmask 261120  }
 0x1b0   :  { %v4681_v23 = vsel %vm143_vm4, 1.0, %v4256_v51  ;;  %vm144_vm0 = vmand %vm140_vm13, %vm142_vm15  ;;  %vm5520_vm4 = vcmp.lt.s32.totalorder %v4409_v15, 13  ;;  %vm5522_vm15 = vcmp.lt.s32.totalorder %v4409_v15, 17 }
 0x1b1   :  { %921 = vmatmul.bf16.gmra.mxu0 %v623_v54  ;;  %v4691_v41 = vsel %vm144_vm0, 1.0, %v4256_v51  ;;  %vm5521_vm13 = vmmov %vm5520_vm4 }
 0x1b2   :  { %vm5523_vm0 = vmmov %vm5522_vm15 }
 0x1f0   :  { %v899_v25 = vpop.f32.mrf.mxu1 }
 0x1f6   :  { %v845_v58 = vpop.f32.mrf.mxu2 }
 0x1f8   :  { %v901_v59 = vpop.f32.mrf.mxu1 }
 0x1fe   :  { %v881_v60 = vpop.f32.mrf.mxu0  ;;  %v847_v61 = vpop.f32.mrf.mxu2 }
 0x200   :  { %v904_v62 = vpop.f32.mrf.mxu1 }
 0x206   :  { %v883_v63 = vpop.f32.mrf.mxu0  ;;  %v850_v1 = vpop.f32.mrf.mxu2 }
 0x208   :  { %v906_v2 = vpop.f32.mrf.mxu1 }
 0x20e   :  { %v886_v3 = vpop.f32.mrf.mxu0  ;;  %v852_v4 = vpop.f32.mrf.mxu2 }
 0x211   :  { %v863_v5 = vpop.f32.mrf.mxu3 }
 0x212   :  { %v864_v28 = vadd.f32 %v863_v5, %v845_v58 }
 0x214   :  { %v882_v37 = vadd.f32 %v881_v60, %v864_v28  ;;  %v1042_v60 = vld [vmem:[%s5422_s4] sm:$0xf]  ;;  %s5505_s4 = smov 115  }
 0x216   :  { %v888_v6 = vpop.f32.mrf.mxu0  ;;  %v935_v7 = vpop.f32.mrf.mxu2  ;;  %v1026_v45 = vmax.f32 %v882_v37, 0.0 }
 0x218   :  { %v4717_v57 = vmul.f32 %v4681_v23, %v1026_v45 }
 0x219   :  { %v865_v10 = vpop.f32.mrf.mxu3 }
 0x21a   :  { %v866_v27 = vadd.f32 %v865_v10, %v847_v61 }
 0x21c   :  { %v1022_v11 = vpop.f32.mrf.mxu1  ;;  %v884_v31 = vadd.f32 %v883_v63, %v866_v27 }
 0x21d   :  { %v1033_v36 = vmax.f32 %v1022_v11, 0.0 }
 0x21e   :  { %v917_v12 = vpop.f32.mrf.mxu0  ;;  %v937_v13 = vpop.f32.mrf.mxu2  ;;  %v1028_v0 = vmax.f32 %v884_v31, 0.0 }
 0x21f   :  { %v918_v29 = vadd.f32 %v917_v12, %v899_v25  ;;  %v4694_v22 = vmul.f32 %v4691_v41, %v1033_v36 }
 0x220   :  { %v4703_v50 = vmul.f32 %v4681_v23, %v1028_v0 }
 0x221   :  { %v868_v14 = vpop.f32.mrf.mxu3  ;;  %v936_v38 = vadd.f32 %v935_v7, %v918_v29 }
 0x222   :  { %v869_v16 = vadd.f32 %v868_v14, %v850_v1  ;;  %v1050_v58 = vpack.c.bf16 %v4703_v50, %v4717_v57 }
 0x223   :  { %v1027_v47 = vmax.f32 %v936_v38, 0.0 }
 0x224   :  { %v887_v17 = vadd.f32 %v886_v3, %v869_v16  ;;  %v1024_v18 = vpop.f32.mrf.mxu1 }
 0x225   :  { %v4720_v48 = vmul.f32 %v4691_v41, %v1027_v47 }
 0x226   :  { %v1030_v19 = vmax.f32 %v887_v17, 0.0  ;;  %v919_v20 = vpop.f32.mrf.mxu0  ;;  %v940_v21 = vpop.f32.mrf.mxu2 }
 0x227   :  { %v920_v30 = vadd.f32 %v919_v20, %v901_v59 }
 0x228   :  { %v4684_v24 = vmul.f32 %v4681_v23, %v1030_v19 }
 0x229   :  { %v870_v26 = vpop.f32.mrf.mxu3  ;;  %v938_v34 = vadd.f32 %v937_v13, %v920_v30 }
 0x22a   :  { %1781 = vrot.lane.b32.xlu1 %v4684_v24, %s5484_s1 }
 0x22b   :  { %v1029_v43 = vmax.f32 %v938_v34, 0.0 }
 0x22d   :  { %v4710_v54 = vmul.f32 %v4691_v41, %v1029_v43 }
 0x22e   :  { %v922_v32 = vpop.f32.mrf.mxu0  ;;  %v942_v33 = vpop.f32.mrf.mxu2 }
 0x22f   :  { %v923_v35 = vadd.f32 %v922_v32, %v904_v62  ;;  %v1051_v59 = vpack.c.bf16 %v4710_v54, %v4720_v48 }
 0x231   :  { %v941_v39 = vadd.f32 %v940_v21, %v923_v35  ;;  %v1009_v40 = vpop.f32.mrf.mxu3 }
 0x232   :  { %v1032_v42 = vmax.f32 %v1009_v40, 0.0 }
 0x233   :  { %v1031_v44 = vmax.f32 %v941_v39, 0.0 }
 0x234   :  { %v4697_v46 = vmul.f32 %v4681_v23, %v1032_v42 }
 0x235   :  { %v4700_v49 = vmul.f32 %v4691_v41, %v1031_v44 }
 0x236   :  { %1783 = vrot.lane.b32.xlu2 %v4697_v46, %s5484_s1  ;;  %v924_v51 = vpop.f32.mrf.mxu0  ;;  %v1052_v53 = vpack.c.bf16 %v4697_v46, %v4684_v24 }
 0x237   :  { %1789 = vrot.lane.b32.xlu0 %v4700_v49, %s5484_s1  ;;  %v1053_v55 = vpack.c.bf16 %v4694_v22, %v4700_v49  ;;  %s5507_s1 = smov 119  }
 0x238   :  { %1064 = vmatpush.bf16.msra.mxu3 %v1052_v53 }
 0x239   :  { %v1011_v25 = vpop.f32.mrf.mxu3  ;;  %1077 = vmatpush.bf16.msrb.mxu0 %v1053_v55 }
 0x23c   :  { %1065 = vmatpush.bf16.msra.mxu3 %v1050_v58 }
 0x23d   :  { %1078 = vmatpush.bf16.msrb.mxu0 %v1051_v59 }
 0x23f   :  { %2961 = vmatmul.msk.bf16.vlgmr.msra.gmra.mxu3 %vm1054_vm1, %v1042_v60 }
 0x240   :  { %2962 = vmatmul.msk.bf16.vlgmr.msrb.gmra.mxu0 %vm1054_vm1, %v1042_v60 }
 0x290   :  { %v4764_v4 = vpop.permute.xlu2 %1783 }
 0x29c   :  { %v4788_v26 = vpop.permute.xlu1 %1781 }
 0x2a9   :  { %v4786_v20 = vpop.permute.xlu0 %1789 }
 0x2bd   :  { %v1080_v61 = vpop.f32.mrf.mxu0 }
 0x2c2   :  { %v1067_v62 = vpop.f32.mrf.mxu3 }
 0x2c3   :  { %v3705_v63 = vpack.i.bf16 %v1080_v61, %v1067_v62  ;;  %v1235_v3 = vpack.c.bf16 %v1080_v61, %v1067_v62 }
 0x2c5   :  { %3706 = vrot.lane.b32.xlu0 %v3705_v63, %s4219_s8  ;;  %3701 = vrot.lane.b32.xlu2 %v3705_v63, %s4223_s21  ;;  %v1082_v1 = vpop.f32.mrf.mxu0  ;;  %1237 = vst [vmem:[#allocation2 + $0x98] sm:$0xff] %v1235_v3 }
 0x2c6   :  { %3696 = vrot.lane.b32.xlu1 %v3705_v63, %s4220_s18 }
 0x2ca   :  { %v1069_v2 = vpop.f32.mrf.mxu3 }
 0x2cd   :  { %3721 = vrot.lane.b32.xlu0 %v3705_v63, %s4221_s19  ;;  %3716 = vrot.lane.b32.xlu2 %v3705_v63, %s4218_s0 }
 0x2ce   :  { %3711 = vrot.lane.b32.xlu1 %v3705_v63, %s4222_s20 }
 0x2d5   :  { %3736 = vrot.lane.b32.xlu0 %v3705_v63, %s4227_s26  ;;  %3731 = vrot.lane.b32.xlu2 %v3705_v63, %s5499_s24  ;;  %s5519_s24 = smov 1  }
 0x2d6   :  { %3726 = vrot.lane.b32.xlu1 %v3705_v63, %s4226_s25 }
 0x2dd   :  { %3751 = vrot.lane.b32.xlu0 %v3705_v63, %s5496_s13  ;;  %3746 = vrot.lane.b32.xlu2 %v3705_v63, %s5492_s14  ;;  %s5512_s14 = smov 118   ;;  %s5516_s13 = smov 126  }
 0x2de   :  { %3741 = vrot.lane.b32.xlu1 %v3705_v63, %s4213_s22 }
 0x2e5   :  { %3766 = vrot.lane.b32.xlu0 %v3705_v63, %s5488_s28  ;;  %3761 = vrot.lane.b32.xlu2 %v3705_v63, %s5498_s11  ;;  %s5508_s28 = smov 116   ;;  %s5518_s11 = smov 3  }
 0x2e6   :  { %3756 = vrot.lane.b32.xlu1 %v3705_v63, %s5497_s27  ;;  %s5517_s27 = smov 124  }
 0x2ed   :  { %3781 = vrot.lane.b32.xlu0 %v3705_v63, %s5489_s16  ;;  %3776 = vrot.lane.b32.xlu2 %v3705_v63, %s5490_s12  ;;  %s5509_s16 = smov 117   ;;  %s5510_s12 = smov 120  }
 0x2ee   :  { %3771 = vrot.lane.b32.xlu1 %v3705_v63, %s5491_s17  ;;  %s5511_s17 = smov 121  }
 0x2f5   :  { %3796 = vrot.lane.b32.xlu0 %v3705_v63, %s4241_s3  ;;  %3791 = vrot.lane.b32.xlu2 %v3705_v63, %s5493_s23  ;;  %s5513_s23 = smov 125  }
 0x2f6   :  { %3786 = vrot.lane.b32.xlu1 %v3705_v63, %s5494_s2  ;;  %s5514_s2 = smov 122  }
 0x2fd   :  { %3811 = vrot.lane.b32.xlu0 %v3705_v63, %s5495_s15  ;;  %3806 = vrot.lane.b32.xlu2 %v3705_v63, %s5505_s4  ;;  %s5515_s15 = smov 123  }
 0x2fe   :  { %3801 = vrot.lane.b32.xlu1 %v3705_v63, %s5506_s29 }
 0x305   :  { %3826 = vrot.lane.b32.xlu0 %v3705_v63, %s5507_s1  ;;  %3821 = vrot.lane.b32.xlu2 %v3705_v63, %s5508_s28 }
 0x306   :  { %3816 = vrot.lane.b32.xlu1 %v3705_v63, %s5509_s16 }
 0x30d   :  { %3841 = vrot.lane.b32.xlu0 %v3705_v63, %s5510_s12  ;;  %3836 = vrot.lane.b32.xlu2 %v3705_v63, %s5511_s17 }
 0x30e   :  { %3831 = vrot.lane.b32.xlu1 %v3705_v63, %s5512_s14 }
 0x315   :  { %3856 = vrot.lane.b32.xlu0 %v3705_v63, %s5513_s23  ;;  %3851 = vrot.lane.b32.xlu2 %v3705_v63, %s5514_s2 }
 0x316   :  { %3846 = vrot.lane.b32.xlu1 %v3705_v63, %s5515_s15 }
 0x31d   :  { %3871 = vrot.lane.b32.xlu0 %v3705_v63, %s5516_s13  ;;  %3866 = vrot.lane.b32.xlu2 %v3705_v63, %s5503_s5 }
 0x31e   :  { %3861 = vrot.lane.b32.xlu1 %v3705_v63, %s5517_s27 }
 0x31f   :  { %v3702_v5 = vpop.permute.xlu2 %3701 }
 0x320   :  { %v3704_v6 = vunpack.i.h.bf16 %v3702_v5  ;;  %v3703_v7 = vunpack.i.l.bf16 %v3702_v5 }
 0x322   :  { %v1206_v10 = vsel %vm348_vm10, %v3703_v7, %v3704_v6  ;;  %v1207_v11 = vsel %vm348_vm10, %v3704_v6, %v3703_v7 }
 0x323   :  { %v1209_v12 = vpack.c.bf16 %v1206_v10, %v1207_v11 }
 0x325   :  { %1211 = vst [vmem:[#allocation2 + $0x78] sm:$0xff] %v1209_v12  ;;  %3886 = vrot.lane.b32.xlu0 %v3705_v63, %s5502_s30  ;;  %3881 = vrot.lane.b32.xlu2 %v3705_v63, %s5518_s11  ;;  %s5596_s30 = smov 114  }
 0x326   :  { %3876 = vrot.lane.b32.xlu1 %v3705_v63, %s5519_s24 }
 0x327   :  { %v3717_v13 = vpop.permute.xlu2 %3716 }
 0x328   :  { %v3719_v14 = vunpack.i.h.bf16 %v3717_v13  ;;  %v3718_v16 = vunpack.i.l.bf16 %v3717_v13 }
 0x32a   :  { %v1168_v17 = vsel %vm305_vm2, %v3718_v16, %v3719_v14  ;;  %v1169_v18 = vsel %vm305_vm2, %v3719_v14, %v3718_v16 }
 0x32b   :  { %v1176_v19 = vpack.c.bf16 %v1168_v17, %v1169_v18 }
 0x32c   :  { %v3386_v16 = vld [vmem:[#allocation2 + $0x74] sm:$0xf0]  ;;  %v3035_v17 = vld [vmem:[#allocation2 + $0x78] sm:$0xf0] }
 0x32d   :  { %1178 = vst [vmem:[#allocation2 + $0x50] sm:$0xff] %v1176_v19  ;;  %1815 = vrot.lane.b32.xlu0 %v4697_v46, %s5503_s5  ;;  %1813 = vrot.lane.b32.xlu2 %v4684_v24, %s5503_s5 }
 0x32e   :  { %1791 = vrot.lane.b32.xlu1 %v4694_v22, %s5519_s24 }
 0x32f   :  { %v3732_v21 = vpop.permute.xlu2 %3731 }
 0x330   :  { %v3734_v27 = vunpack.i.h.bf16 %v3732_v21  ;;  %v3733_v30 = vunpack.i.l.bf16 %v3732_v21 }
 0x332   :  { %v1158_v28 = vsel %vm294_vm12, %v3733_v30, %v3734_v27  ;;  %v1159_v29 = vsel %vm294_vm12, %v3734_v27, %v3733_v30 }
 0x333   :  { %v1161_v31 = vpack.c.bf16 %v1158_v28, %v1159_v29 }
 0x335   :  { %1163 = vst [vmem:[#allocation2 + $0x48] sm:$0xff] %v1161_v31  ;;  %1777 = vrot.lane.b32.xlu0 %v4717_v57, %s5519_s24  ;;  %1823 = vrot.lane.b32.xlu2 %v4694_v22, %s5503_s5 }
 0x336   :  { %1821 = vrot.lane.b32.xlu1 %v4700_v49, %s5503_s5 }
 0x337   :  { %v3707_v32 = vpop.permute.xlu0 %3706  ;;  %v3747_v33 = vpop.permute.xlu2 %3746 }
 0x338   :  { %v3709_v34 = vunpack.i.h.bf16 %v3707_v32  ;;  %v3708_v35 = vunpack.i.l.bf16 %v3707_v32  ;;  %v3749_v36 = vunpack.i.h.bf16 %v3747_v33  ;;  %v3748_v37 = vunpack.i.l.bf16 %v3747_v33  ;;  %v3697_v38 = vpop.permute.xlu1 %3696 }
 0x339   :  { %v3699_v39 = vunpack.i.h.bf16 %v3697_v38  ;;  %v3698_v40 = vunpack.i.l.bf16 %v3697_v38 }
 0x33a   :  { %v1184_v0 = vsel %vm323_vm6, %v3708_v35, %v3709_v34  ;;  %v1185_v42 = vsel %vm323_vm6, %v3709_v34, %v3708_v35  ;;  %v1386_v43 = vsel %vm5500_vm5, %v3748_v37, %v3749_v36  ;;  %v1387_v44 = vsel %vm5500_vm5, %v3749_v36, %v3748_v37 }
 0x33b   :  { %v1192_v45 = vpack.c.bf16 %v1184_v0, %v1185_v42  ;;  %v1394_v47 = vpack.c.bf16 %v1387_v44, %v1386_v43  ;;  %v1200_v51 = vsel %vm341_vm7, %v3698_v40, %v3699_v39  ;;  %v1201_v53 = vsel %vm341_vm7, %v3699_v39, %v3698_v40 }
 0x33c   :  { %v1208_v55 = vpack.c.bf16 %v1200_v51, %v1201_v53  ;;  %vm5524_vm5 = vcmp.lt.s32.totalorder %v4409_v15, 11 }
 0x33d   :  { %1194 = vst [vmem:[#allocation2 + $0x60] sm:$0xff] %v1192_v45  ;;  %1787 = vrot.lane.b32.xlu0 %v4710_v54, %s5519_s24  ;;  %1785 = vrot.lane.b32.xlu2 %v4720_v48, %s5519_s24 }
 0x33e   :  { %1396 = vst [vmem:[#allocation2 + $0x130] sm:$0xff] %v1394_v47  ;;  %1779 = vrot.lane.b32.xlu1 %v4703_v50, %s5519_s24 }
 0x33f   :  { %1210 = vst [vmem:[#allocation2 + $0x70] sm:$0xff] %v1208_v55  ;;  %v3722_v25 = vpop.permute.xlu0 %3721  ;;  %v3762_v58 = vpop.permute.xlu2 %3761 }
 0x340   :  { %v3724_v59 = vunpack.i.h.bf16 %v3722_v25  ;;  %v3723_v60 = vunpack.i.l.bf16 %v3722_v25  ;;  %v3764_v61 = vunpack.i.h.bf16 %v3762_v58  ;;  %v3763_v62 = vunpack.i.l.bf16 %v3762_v58  ;;  %v3712_v63 = vpop.permute.xlu1 %3711 }
 0x341   :  { %v3714_v1 = vunpack.i.h.bf16 %v3712_v63  ;;  %v3713_v2 = vunpack.i.l.bf16 %v3712_v63 }
 0x342   :  { %v1174_v3 = vsel %vm312_vm3, %v3723_v60, %v3724_v59  ;;  %v1175_v5 = vsel %vm312_vm3, %v3724_v59, %v3723_v60  ;;  %v1126_v6 = vsel %vm5501_vm8, %v3763_v62, %v3764_v61  ;;  %v1127_v7 = vsel %vm5501_vm8, %v3764_v61, %v3763_v62  ;;  %vm5525_vm8 = vmmov %vm5524_vm5 }
 0x343   :  { %v1177_v10 = vpack.c.bf16 %v1174_v3, %v1175_v5  ;;  %v1129_v11 = vpack.c.bf16 %v1126_v6, %v1127_v7  ;;  %v1190_v12 = vsel %vm330_vm9, %v3713_v2, %v3714_v1  ;;  %v1191_v13 = vsel %vm330_vm9, %v3714_v1, %v3713_v2  ;;  %v3017_v6 = vld [vmem:[#allocation2 + $0x50] sm:$0xf]  ;;  %v3381_v7 = vld [vmem:[#allocation2 + $0x54] sm:$0xf] }
 0x344   :  { %v1193_v14 = vpack.c.bf16 %v1190_v12, %v1191_v13  ;;  %v3025_v47 = vld [vmem:[#allocation2 + $0x60] sm:$0xf]  ;;  %v3383_v51 = vld [vmem:[#allocation2 + $0x64] sm:$0xf] }
 0x345   :  { %1179 = vst [vmem:[#allocation2 + $0x58] sm:$0xff] %v1177_v10  ;;  %1817 = vrot.lane.b32.xlu0 %v4720_v48, %s5503_s5  ;;  %1811 = vrot.lane.b32.xlu2 %v4703_v50, %s5503_s5 }
 0x346   :  { %1131 = vst [vmem:[#allocation2 + $0x28] sm:$0xff] %v1129_v11  ;;  %1809 = vrot.lane.b32.xlu1 %v4717_v57, %s5503_s5  ;;  %v3033_v18 = vld [vmem:[#allocation2 + $0x70] sm:$0xf]  ;;  %v3385_v19 = vld [vmem:[#allocation2 + $0x74] sm:$0xf] }
 0x347   :  { %1195 = vst [vmem:[#allocation2 + $0x68] sm:$0xff] %v1193_v14  ;;  %v3737_v21 = vpop.permute.xlu0 %3736  ;;  %v3777_v27 = vpop.permute.xlu2 %3776  ;;  %v3034_v30 = vor.u32 %v3386_v16, %v3033_v18  ;;  %v3038_v28 = vor.u32 %v3385_v19, %v3035_v17 }
 0x348   :  { %v3739_v29 = vunpack.i.h.bf16 %v3737_v21  ;;  %v3738_v31 = vunpack.i.l.bf16 %v3737_v21  ;;  %v3779_v32 = vunpack.i.h.bf16 %v3777_v27  ;;  %v3778_v33 = vunpack.i.l.bf16 %v3777_v27  ;;  %v3727_v34 = vpop.permute.xlu1 %3726 }
 0x349   :  { %v3729_v35 = vunpack.i.h.bf16 %v3727_v34  ;;  %v3728_v36 = vunpack.i.l.bf16 %v3727_v34  ;;  %1669 = vmatpush.bf16.msra.mxu2 %v3034_v30  ;;  %1723 = vmatpush.bf16.msra.mxu0 %v3038_v28 }
 0x34a   :  { %v1136_v37 = vsel %vm5520_vm4, %v3738_v31, %v3739_v29  ;;  %v1137_v38 = vsel %vm5521_vm13, %v3739_v29, %v3738_v31  ;;  %v1104_v39 = vsel %vm5522_vm15, %v3778_v33, %v3779_v32  ;;  %v1105_v40 = vsel %vm5523_vm0, %v3779_v32, %v3778_v33  ;;  %v3380_v29 = vld [vmem:[#allocation2 + $0x44] sm:$0xf0]  ;;  %v3011_v31 = vld [vmem:[#allocation2 + $0x48] sm:$0xf0] }
 0x34b   :  { %v1144_v0 = vpack.c.bf16 %v1136_v37, %v1137_v38  ;;  %v1112_v42 = vpack.c.bf16 %v1104_v39, %v1105_v40  ;;  %v1152_v43 = vsel %vm5524_vm5, %v3728_v36, %v3729_v35  ;;  %v1153_v44 = vsel %vm5525_vm8, %v3729_v35, %v3728_v36 }
 0x34c   :  { %v1160_v45 = vpack.c.bf16 %v1152_v43, %v1153_v44  ;;  %v3382_v53 = vld [vmem:[#allocation2 + $0x54] sm:$0xf0]  ;;  %v3019_v55 = vld [vmem:[#allocation2 + $0x58] sm:$0xf0]  ;;  %vm5526_vm5 = vcmp.lt.s32.totalorder %v4409_v15, 108  ;;  %vm5528_vm4 = vcmp.lt.s32.totalorder %v4409_v15, 112 }
 0x34d   :  { %1146 = vst [vmem:[#allocation2 + $0x30] sm:$0xff] %v1144_v0  ;;  %v3018_v12 = vor.u32 %v3382_v53, %v3017_v6  ;;  %v3022_v13 = vor.u32 %v3381_v7, %v3019_v55  ;;  %vm5527_vm8 = vmmov %vm5526_vm5  ;;  %vm5530_vm15 = vcmp.lt.s32.totalorder %v4409_v15, 12 }
 0x34e   :  { %1114 = vst [vmem:[#allocation2 + $0x10] sm:$0xff] %v1112_v42  ;;  %1819 = vrot.lane.b32.xlu1 %v4710_v54, %s5503_s5  ;;  %v3384_v25 = vld [vmem:[#allocation2 + $0x64] sm:$0xf0]  ;;  %v3027_v58 = vld [vmem:[#allocation2 + $0x68] sm:$0xf0]  ;;  %vm5529_vm13 = vmmov %vm5528_vm4 }
 0x34f   :  { %1162 = vst [vmem:[#allocation2 + $0x40] sm:$0xff] %v1160_v45  ;;  %v3752_v59 = vpop.permute.xlu0 %3751  ;;  %v3792_v60 = vpop.permute.xlu2 %3791  ;;  %v3026_v61 = vor.u32 %v3384_v25, %v3025_v47  ;;  %v3030_v62 = vor.u32 %v3383_v51, %v3027_v58  ;;  %vm5531_vm0 = vmmov %vm5530_vm15 }
 0x350   :  { %v3754_v63 = vunpack.i.h.bf16 %v3752_v59  ;;  %v3753_v1 = vunpack.i.l.bf16 %v3752_v59  ;;  %v3794_v2 = vunpack.i.h.bf16 %v3792_v60  ;;  %v3793_v3 = vunpack.i.l.bf16 %v3792_v60  ;;  %v3742_v5 = vpop.permute.xlu1 %3741 }
 0x351   :  { %v3744_v10 = vunpack.i.h.bf16 %v3742_v5  ;;  %v3743_v11 = vunpack.i.l.bf16 %v3742_v5  ;;  %1670 = vmatpush.bf16.msra.mxu2 %v3026_v61  ;;  %1724 = vmatpush.bf16.msra.mxu0 %v3030_v62  ;;  %v3129_v61 = vld [vmem:[#allocation2 + $0x130] sm:$0xf] }
 0x352   :  { %v1392_v14 = vsel %vm5526_vm5, %v3753_v1, %v3754_v63  ;;  %v1393_v16 = vsel %vm5527_vm8, %v3754_v63, %v3753_v1  ;;  %v1360_v17 = vsel %vm5528_vm4, %v3793_v3, %v3794_v2  ;;  %v1361_v18 = vsel %vm5529_vm13, %v3794_v2, %v3793_v3 }
 0x353   :  { %v1395_v19 = vpack.c.bf16 %v1393_v16, %v1392_v14  ;;  %v1363_v21 = vpack.c.bf16 %v1361_v18, %v1360_v17  ;;  %v1142_v27 = vsel %vm5530_vm15, %v3743_v11, %v3744_v10  ;;  %v1143_v30 = vsel %vm5531_vm0, %v3744_v10, %v3743_v11 }
 0x354   :  { %v1145_v28 = vpack.c.bf16 %v1142_v27, %v1143_v30  ;;  %vm5532_vm5 = vcmp.lt.s32.totalorder %v4409_v15, 111  ;;  %vm5534_vm4 = vcmp.lt.s32.totalorder %v4409_v15, 115  ;;  %vm5536_vm15 = vcmp.lt.s32.totalorder %v4409_v15, 15  ;;  %v3001_v1 = vld [vmem:[#allocation2 + $0x30] sm:$0xf] }
 0x355   :  { %1397 = vst [vmem:[#allocation2 + $0x138] sm:$0xff] %v1395_v19  ;;  %1671 = vmatpush.bf16.msra.mxu2 %v3018_v12  ;;  %1725 = vmatpush.bf16.msra.mxu0 %v3022_v13  ;;  %vm5533_vm8 = vmmov %vm5532_vm5  ;;  %v3377_v2 = vld [vmem:[#allocation2 + $0x34] sm:$0xf] }
 0x356   :  { %1365 = vst [vmem:[#allocation2 + $0x118] sm:$0xff] %v1363_v21  ;;  %v3009_v32 = vld [vmem:[#allocation2 + $0x40] sm:$0xf]  ;;  %v3379_v33 = vld [vmem:[#allocation2 + $0x44] sm:$0xf]  ;;  %vm5535_vm13 = vmmov %vm5534_vm4 }
 0x357   :  { %1147 = vst [vmem:[#allocation2 + $0x38] sm:$0xff] %v1145_v28  ;;  %v3767_v34 = vpop.permute.xlu0 %3766  ;;  %v3807_v35 = vpop.permute.xlu2 %3806  ;;  %v3010_v36 = vor.u32 %v3380_v29, %v3009_v32  ;;  %v3014_v37 = vor.u32 %v3379_v33, %v3011_v31  ;;  %vm5537_vm0 = vmmov %vm5536_vm15 }
 0x358   :  { %v3769_v38 = vunpack.i.h.bf16 %v3767_v34  ;;  %v3768_v39 = vunpack.i.l.bf16 %v3767_v34  ;;  %v3809_v40 = vunpack.i.h.bf16 %v3807_v35  ;;  %v3808_v0 = vunpack.i.l.bf16 %v3807_v35  ;;  %v3757_v42 = vpop.permute.xlu1 %3756  ;;  %v3376_v35 = vld [vmem:[#allocation2 + $0x24] sm:$0xf0] }
 0x359   :  { %v3759_v43 = vunpack.i.h.bf16 %v3757_v42  ;;  %v3758_v44 = vunpack.i.l.bf16 %v3757_v42  ;;  %1672 = vmatpush.bf16.msra.mxu2 %v3010_v36  ;;  %1726 = vmatpush.bf16.msra.mxu0 %v3014_v37  ;;  %v2995_v36 = vld [vmem:[#allocation2 + $0x28] sm:$0xf0] }
 0x35a   :  { %v1370_v45 = vsel %vm5532_vm5, %v3768_v39, %v3769_v38  ;;  %v1371_v47 = vsel %vm5533_vm8, %v3769_v38, %v3768_v39  ;;  %v1338_v51 = vsel %vm5534_vm4, %v3808_v0, %v3809_v40  ;;  %v1339_v53 = vsel %vm5535_vm13, %v3809_v40, %v3808_v0 }
 0x35b   :  { %v1378_v55 = vpack.c.bf16 %v1371_v47, %v1370_v45  ;;  %v1346_v25 = vpack.c.bf16 %v1339_v53, %v1338_v51  ;;  %v1120_v58 = vsel %vm5536_vm15, %v3758_v44, %v3759_v43  ;;  %v1121_v59 = vsel %vm5537_vm0, %v3759_v43, %v3758_v44 }
 0x35c   :  { %v1128_v60 = vpack.c.bf16 %v1120_v58, %v1121_v59  ;;  %v3410_v62 = vld [vmem:[#allocation2 + $0x134] sm:$0xf0]  ;;  %vm5538_vm5 = vcmp.lt.s32.totalorder %v4409_v15, 16  ;;  %vm5540_vm4 = vcmp.lt.s32.totalorder %v4409_v15, 116  ;;  %vm5542_vm15 = vcmp.lt.s32.totalorder %v4409_v15, 110 }
 0x35d   :  { %1380 = vst [vmem:[#allocation2 + $0x120] sm:$0xff] %v1378_v55  ;;  %v3130_v63 = vor.u32 %v3410_v62, %v3129_v61  ;;  %vm5539_vm8 = vmmov %vm5538_vm5 }
 0x35e   :  { %1348 = vst [vmem:[#allocation2 + $0x100] sm:$0xff] %v1346_v25  ;;  %v3378_v3 = vld [vmem:[#allocation2 + $0x34] sm:$0xf0]  ;;  %v3003_v5 = vld [vmem:[#allocation2 + $0x38] sm:$0xf0]  ;;  %vm5541_vm13 = vmmov %vm5540_vm4 }
 0x35f   :  { %1130 = vst [vmem:[#allocation2 + $0x20] sm:$0xff] %v1128_v60  ;;  %v3782_v6 = vpop.permute.xlu0 %3781  ;;  %v3822_v7 = vpop.permute.xlu2 %3821  ;;  %1709 = vmatpush.bf16.msrb.mxu3 %v3130_v63  ;;  %v3002_v10 = vor.u32 %v3378_v3, %v3001_v1  ;;  %v3006_v11 = vor.u32 %v3377_v2, %v3003_v5  ;;  %vm5543_vm0 = vmmov %vm5542_vm15  ;;  %v2985_v2 = vld [vmem:[#allocation2 + $0x10] sm:$0xf] }
 0x360   :  { %v3784_v12 = vunpack.i.h.bf16 %v3782_v6  ;;  %v3783_v13 = vunpack.i.l.bf16 %v3782_v6  ;;  %v3824_v14 = vunpack.i.h.bf16 %v3822_v7  ;;  %v3823_v16 = vunpack.i.l.bf16 %v3822_v7  ;;  %v3772_v17 = vpop.permute.xlu1 %3771  ;;  %v3373_v6 = vld [vmem:[#allocation2 + $0x14] sm:$0xf] }
 0x361   :  { %v3774_v18 = vunpack.i.h.bf16 %v3772_v17  ;;  %v3773_v19 = vunpack.i.l.bf16 %v3772_v17  ;;  %1673 = vmatpush.bf16.msra.mxu2 %v3002_v10  ;;  %1727 = vmatpush.bf16.msra.mxu0 %v3006_v11 }
 0x362   :  { %v1110_v21 = vsel %vm5538_vm5, %v3783_v13, %v3784_v12  ;;  %v1111_v27 = vsel %vm5539_vm8, %v3784_v12, %v3783_v13  ;;  %v1328_v30 = vsel %vm5540_vm4, %v3823_v16, %v3824_v14  ;;  %v1329_v28 = vsel %vm5541_vm13, %v3824_v14, %v3823_v16 }
 0x363   :  { %v1113_v29 = vpack.c.bf16 %v1110_v21, %v1111_v27  ;;  %v1331_v31 = vpack.c.bf16 %v1329_v28, %v1328_v30  ;;  %v1376_v32 = vsel %vm5542_vm15, %v3773_v19, %v3774_v18  ;;  %v1377_v33 = vsel %vm5543_vm0, %v3774_v18, %v3773_v19 }
 0x364   :  { %v1379_v34 = vpack.c.bf16 %v1377_v33, %v1376_v32  ;;  %vm5544_vm5 = vcmp.lt.s32.totalorder %v4409_v15, 19  ;;  %vm5546_vm4 = vcmp.lt.s32.totalorder %v4409_v15, 121  ;;  %vm5548_vm15 = vcmp.lt.s32.totalorder %v4409_v15, 113  ;;  %v3121_v12 = vld [vmem:[#allocation2 + $0x120] sm:$0xf] }
 0x365   :  { %1115 = vst [vmem:[#allocation2 + $0x18] sm:$0xff] %v1113_v29  ;;  %vm5545_vm8 = vmmov %vm5544_vm5 }
 0x366   :  { %1333 = vst [vmem:[#allocation2 + $0xf8] sm:$0xff] %v1331_v31  ;;  %v2993_v37 = vld [vmem:[#allocation2 + $0x20] sm:$0xf]  ;;  %v3375_v38 = vld [vmem:[#allocation2 + $0x24] sm:$0xf]  ;;  %vm5547_vm13 = vmmov %vm5546_vm4 }
 0x367   :  { %1381 = vst [vmem:[#allocation2 + $0x128] sm:$0xff] %v1379_v34  ;;  %v3797_v39 = vpop.permute.xlu0 %3796  ;;  %v3837_v40 = vpop.permute.xlu2 %3836  ;;  %v2994_v0 = vor.u32 %v3376_v35, %v2993_v37  ;;  %v2998_v42 = vor.u32 %v3375_v38, %v2995_v36  ;;  %vm5549_vm0 = vmmov %vm5548_vm15 }
 0x368   :  { %v3799_v43 = vunpack.i.h.bf16 %v3797_v39  ;;  %v3798_v44 = vunpack.i.l.bf16 %v3797_v39  ;;  %v3839_v45 = vunpack.i.h.bf16 %v3837_v40  ;;  %v3838_v47 = vunpack.i.l.bf16 %v3837_v40  ;;  %v3787_v51 = vpop.permute.xlu1 %3786 }
 0x369   :  { %v3789_v53 = vunpack.i.h.bf16 %v3787_v51  ;;  %v3788_v55 = vunpack.i.l.bf16 %v3787_v51  ;;  %1674 = vmatpush.bf16.msra.mxu2 %v2994_v0  ;;  %1728 = vmatpush.bf16.msra.mxu0 %v2998_v42  ;;  %v3406_v0 = vld [vmem:[#allocation2 + $0x114] sm:$0xf0] }
 0x36a   :  { %v1088_v25 = vsel %vm5544_vm5, %v3798_v44, %v3799_v43  ;;  %v1089_v58 = vsel %vm5545_vm8, %v3799_v43, %v3798_v44  ;;  %v1290_v59 = vsel %vm5546_vm4, %v3838_v47, %v3839_v45  ;;  %v1291_v60 = vsel %vm5547_vm13, %v3839_v45, %v3838_v47 }
 0x36b   :  { %v1096_v61 = vpack.c.bf16 %v1088_v25, %v1089_v58  ;;  %v1298_v62 = vpack.c.bf16 %v1291_v60, %v1290_v59  ;;  %v1354_v63 = vsel %vm5548_vm15, %v3788_v55, %v3789_v53  ;;  %v1355_v1 = vsel %vm5549_vm0, %v3789_v53, %v3788_v55 }
 0x36c   :  { %v1362_v3 = vpack.c.bf16 %v1355_v1, %v1354_v63  ;;  %v3374_v5 = vld [vmem:[#allocation2 + $0x14] sm:$0xf0]  ;;  %v2987_v7 = vld [vmem:[#allocation2 + $0x18] sm:$0xf0]  ;;  %vm5550_vm5 = vcmp.lt.s32.totalorder %v4409_v15, 114  ;;  %vm5552_vm4 = vcmp.lt.s32.totalorder %v4409_v15, 122 }
 0x36d   :  { %1098 = vst [vmem:[#allocation2] sm:$0xff] %v1096_v61  ;;  %v2986_v10 = vor.u32 %v3374_v5, %v2985_v2  ;;  %v2990_v11 = vor.u32 %v3373_v6, %v2987_v7  ;;  %vm5551_vm8 = vmmov %vm5550_vm5  ;;  %vm5554_vm15 = vcmp.lt.s32.totalorder %v4409_v15, 18  ;;  %v3131_v63 = vld [vmem:[#allocation2 + $0x138] sm:$0xf0]  ;;  %v3105_v6 = vld [vmem:[#allocation2 + $0x100] sm:$0xf] }
 0x36e   :  { %1300 = vst [vmem:[#allocation2 + $0xd0] sm:$0xff] %v1298_v62  ;;  %v3408_v13 = vld [vmem:[#allocation2 + $0x124] sm:$0xf0]  ;;  %vm5553_vm13 = vmmov %vm5552_vm4  ;;  %v3409_v7 = vld [vmem:[#allocation2 + $0x134] sm:$0xf] }
 0x36f   :  { %1364 = vst [vmem:[#allocation2 + $0x110] sm:$0xff] %v1362_v3  ;;  %v3812_v14 = vpop.permute.xlu0 %3811  ;;  %v3852_v16 = vpop.permute.xlu2 %3851  ;;  %1675 = vmatpush.bf16.msra.mxu2 %v2986_v10  ;;  %v3122_v17 = vor.u32 %v3408_v13, %v3121_v12  ;;  %1729 = vmatpush.bf16.msra.mxu0 %v2990_v11  ;;  %vm5555_vm0 = vmmov %vm5554_vm15  ;;  %v2973_v10 = vld [vmem:[#allocation8 + $0x8] sm:$0xf]  ;;  %v3370_v11 = vld [vmem:[#allocation8 + $0x10] sm:$0xf0] }
 0x370   :  { %v3814_v18 = vunpack.i.h.bf16 %v3812_v14  ;;  %v3813_v19 = vunpack.i.l.bf16 %v3812_v14  ;;  %v3854_v21 = vunpack.i.h.bf16 %v3852_v16  ;;  %v3853_v27 = vunpack.i.l.bf16 %v3852_v16  ;;  %v3802_v30 = vpop.permute.xlu1 %3801  ;;  %v3123_v14 = vld [vmem:[#allocation2 + $0x128] sm:$0xf0] }
 0x371   :  { %v3804_v28 = vunpack.i.h.bf16 %v3802_v30  ;;  %v3803_v29 = vunpack.i.l.bf16 %v3802_v30  ;;  %1710 = vmatpush.bf16.msrb.mxu3 %v3122_v17  ;;  %v2965_v16 = vld [vmem:[#allocation8] sm:$0xf]  ;;  %v3369_v17 = vld [vmem:[#allocation8 + $0x8] sm:$0xf0] }
 0x372   :  { %v1344_v31 = vsel %vm5550_vm5, %v3813_v19, %v3814_v18  ;;  %v1345_v32 = vsel %vm5551_vm8, %v3814_v18, %v3813_v19  ;;  %v1280_v33 = vsel %vm5552_vm4, %v3853_v27, %v3854_v21  ;;  %v1281_v34 = vsel %vm5553_vm13, %v3854_v21, %v3853_v27 }
 0x373   :  { %v1347_v35 = vpack.c.bf16 %v1345_v32, %v1344_v31  ;;  %v1283_v36 = vpack.c.bf16 %v1281_v34, %v1280_v33  ;;  %v1094_v37 = vsel %vm5554_vm15, %v3803_v29, %v3804_v28  ;;  %v1095_v38 = vsel %vm5555_vm0, %v3804_v28, %v3803_v29 }
 0x374   :  { %v1097_v39 = vpack.c.bf16 %v1094_v37, %v1095_v38  ;;  %vm5556_vm5 = vcmp.lt.s32.totalorder %v4409_v15, 119  ;;  %vm5558_vm4 = vcmp.lt.s32.totalorder %v4409_v15, 117  ;;  %v2977_v18 = vld [vmem:[#allocation2] sm:$0xf]  ;;  %v3371_v21 = vld [vmem:[#allocation2 + $0x4] sm:$0xf]  ;;  %v3134_v28 = vor.u32 %v3409_v7, %v3131_v63 }
 0x375   :  { %1349 = vst [vmem:[#allocation2 + $0x108] sm:$0xff] %v1347_v35  ;;  %vm5557_vm8 = vmmov %vm5556_vm5  ;;  %v4922_v29 = vor.u32 %v3370_v11, %v2973_v10  ;;  %v2966_v35 = vor.u32 %v3369_v17, %v2965_v16  ;;  %vm5560_vm15 = vcmp.lt.s32.totalorder %v4409_v15, 120  ;;  %v3402_v63 = vld [vmem:[#allocation2 + $0xf4] sm:$0xf0] }
 0x376   :  { %1285 = vst [vmem:[#allocation2 + $0xc8] sm:$0xff] %v1283_v36  ;;  %v3113_v40 = vld [vmem:[#allocation2 + $0x110] sm:$0xf]  ;;  %vm5559_vm13 = vmmov %vm5558_vm4 }
 0x377   :  { %1099 = vst [vmem:[#allocation2 + $0x8] sm:$0xff] %v1097_v39  ;;  %v3827_v42 = vpop.permute.xlu0 %3826  ;;  %v3867_v43 = vpop.permute.xlu2 %3866  ;;  %v3114_v44 = vor.u32 %v3406_v0, %v3113_v40  ;;  %v3407_v0 = vld [vmem:[#allocation2 + $0x124] sm:$0xf]  ;;  %vm5561_vm0 = vmmov %vm5560_vm15 }
 0x378   :  { %v3829_v45 = vunpack.i.h.bf16 %v3827_v42  ;;  %v3828_v47 = vunpack.i.l.bf16 %v3827_v42  ;;  %v3869_v51 = vunpack.i.h.bf16 %v3867_v43  ;;  %v3868_v53 = vunpack.i.l.bf16 %v3867_v43  ;;  %v3817_v55 = vpop.permute.xlu1 %3816 }
 0x379   :  { %v3819_v25 = vunpack.i.h.bf16 %v3817_v55  ;;  %v3818_v58 = vunpack.i.l.bf16 %v3817_v55  ;;  %1711 = vmatpush.bf16.msrb.mxu3 %v3114_v44  ;;  %v3126_v44 = vor.u32 %v3407_v0, %v3123_v14 }
 0x37a   :  { %v1306_v59 = vsel %vm5556_vm5, %v3828_v47, %v3829_v45  ;;  %v1307_v60 = vsel %vm5557_vm8, %v3829_v45, %v3828_v47  ;;  %v1242_v61 = vsel %vm388_vm11, %v3868_v53, %v3869_v51  ;;  %v1243_v62 = vsel %vm388_vm11, %v3869_v51, %v3868_v53 }
 0x37b   :  { %v1314_v1 = vpack.c.bf16 %v1307_v60, %v1306_v59  ;;  %v1250_v2 = vpack.c.bf16 %v1243_v62, %v1242_v61  ;;  %v1322_v3 = vsel %vm5558_vm4, %v3818_v58, %v3819_v25  ;;  %v1323_v5 = vsel %vm5559_vm13, %v3819_v25, %v3818_v58  ;;  %v3405_v60 = vld [vmem:[#allocation2 + $0x114] sm:$0xf]  ;;  %v3115_v62 = vld [vmem:[#allocation2 + $0x118] sm:$0xf0] }
 0x37c   :  { %v1330_v12 = vpack.c.bf16 %v1323_v5, %v1322_v3  ;;  %v3404_v13 = vld [vmem:[#allocation2 + $0x104] sm:$0xf0]  ;;  %vm5562_vm5 = vcmp.lt.s32.totalorder %v4409_v15, 3  ;;  %vm5564_vm4 = vcmp.lt.s32.totalorder %v4409_v15, 118  ;;  %v3118_v5 = vor.u32 %v3405_v60, %v3115_v62  ;;  %v3107_v11 = vld [vmem:[#allocation2 + $0x108] sm:$0xf0] }
 0x37d   :  { %1316 = vst [vmem:[#allocation2 + $0xe0] sm:$0xff] %v1314_v1  ;;  %v3106_v19 = vor.u32 %v3404_v13, %v3105_v6  ;;  %vm5563_vm8 = vmmov %vm5562_vm5  ;;  %v3099_v1 = vld [vmem:[#allocation2 + $0xf8] sm:$0xf0]  ;;  %v3081_v60 = vld [vmem:[#allocation2 + $0xd0] sm:$0xf] }
 0x37e   :  { %1252 = vst [vmem:[#allocation2 + $0xa0] sm:$0xff] %v1250_v2  ;;  %v3372_v27 = vld [vmem:[#allocation2 + $0x4] sm:$0xf0]  ;;  %v2979_v30 = vld [vmem:[#allocation2 + $0x8] sm:$0xf0]  ;;  %vm5565_vm13 = vmmov %vm5564_vm4 }
 0x37f   :  { %1332 = vst [vmem:[#allocation2 + $0xf0] sm:$0xff] %v1330_v12  ;;  %v3842_v31 = vpop.permute.xlu0 %3841  ;;  %v3882_v32 = vpop.permute.xlu2 %3881  ;;  %v2978_v33 = vor.u32 %v3372_v27, %v2977_v18  ;;  %1712 = vmatpush.bf16.msrb.mxu3 %v3106_v19  ;;  %v2982_v34 = vor.u32 %v3371_v21, %v2979_v30  ;;  %v1048_v12 = vld [vmem:[#allocation8 + $0x20] sm:$0xf]  ;;  %v3403_v19 = vld [vmem:[#allocation2 + $0x104] sm:$0xf] }
 0x380   :  { %v3844_v36 = vunpack.i.h.bf16 %v3842_v31  ;;  %v3843_v37 = vunpack.i.l.bf16 %v3842_v31  ;;  %v3884_v38 = vunpack.i.h.bf16 %v3882_v32  ;;  %v3883_v39 = vunpack.i.l.bf16 %v3882_v32  ;;  %v3832_v40 = vpop.permute.xlu1 %3831  ;;  %v4938_v21 = vld [vmem:[#allocation8 + $0x18] sm:$0xff] }
 0x381   :  { %v3834_v42 = vunpack.i.h.bf16 %v3832_v40  ;;  %v3833_v43 = vunpack.i.l.bf16 %v3832_v40  ;;  %1676 = vmatpush.bf16.msra.mxu2 %v2978_v33  ;;  %1730 = vmatpush.bf16.msra.mxu0 %v2982_v34  ;;  %v1452_v31 = vunpack.c.l.b16 %v1048_v12 }
 0x382   :  { %v1296_v45 = vsel %vm5560_vm15, %v3843_v37, %v3844_v36  ;;  %v1297_v47 = vsel %vm5561_vm0, %v3844_v36, %v3843_v37  ;;  %v1216_v51 = vsel %vm5562_vm5, %v3883_v39, %v3884_v38  ;;  %v1217_v53 = vsel %vm5563_vm8, %v3884_v38, %v3883_v39  ;;  %3135 = vmatmul.msk.bf16.vlgmr.msrb.gmra.mxu3 %vm829_vm14, %v4922_v29 }
 0x383   :  { %1763 = vmatpush.bf16.msra.mxu3 %v3134_v28  ;;  %v1299_v55 = vpack.c.bf16 %v1297_v47, %v1296_v45  ;;  %v1224_v25 = vpack.c.bf16 %v1216_v51, %v1217_v53  ;;  %v1312_v58 = vsel %vm5564_vm4, %v3833_v43, %v3834_v42  ;;  %v1313_v59 = vsel %vm5565_vm13, %v3834_v42, %v3833_v43 }
 0x384   :  { %v1315_v61 = vpack.c.bf16 %v1313_v59, %v1312_v58  ;;  %1677 = vmatmul.bf16.vlgmr.msra.gmra.mxu2 %v2966_v35  ;;  %1731 = vmatmul.bf16.vlgmr.msra.gmra.mxu0 %v2966_v35  ;;  %vm5566_vm15 = vcmp.lt.s32.totalorder %v4409_v15, 125  ;;  %v3110_v28 = vor.u32 %v3403_v19, %v3107_v11  ;;  %vm5568_vm5 = vcmp.lt.s32.totalorder %v4409_v15, 123  ;;  %v3089_v37 = vld [vmem:[#allocation2 + $0xe0] sm:$0xf]  ;;  %v3399_v38 = vld [vmem:[#allocation2 + $0xe4] sm:$0xf] }
 0x385   :  { %1301 = vst [vmem:[#allocation2 + $0xd8] sm:$0xff] %v1299_v55  ;;  %vm5567_vm0 = vmmov %vm5566_vm15  ;;  %v1450_v36 = vunpack.c.l.b16 %v4938_v21  ;;  %v4949_v0 = vpack.c.b16 %v1452_v31, %v1452_v31  ;;  %vm5570_vm4 = vcmp.lt.s32.totalorder %v4409_v15, 126  ;;  %v3075_v11 = vld [vmem:[#allocation2 + $0xc8] sm:$0xf0] }
 0x386   :  { %1226 = vst [vmem:[#allocation2 + $0x80] sm:$0xff] %v1224_v25  ;;  %v3097_v2 = vld [vmem:[#allocation2 + $0xf0] sm:$0xf]  ;;  %v3401_v3 = vld [vmem:[#allocation2 + $0xf4] sm:$0xf]  ;;  %vm5569_vm8 = vmmov %vm5568_vm5 }
 0x387   :  { %1764 = vmatpush.bf16.msra.mxu3 %v3126_v44  ;;  %1317 = vst [vmem:[#allocation2 + $0xe8] sm:$0xff] %v1315_v61  ;;  %v3857_v6 = vpop.permute.xlu0 %3856  ;;  %v3098_v7 = vor.u32 %v3402_v63, %v3097_v2  ;;  %v3102_v10 = vor.u32 %v3401_v3, %v3099_v1  ;;  %v1456_v25 = vpack.c.b16 %v1450_v36, %v1450_v36  ;;  %vm5571_vm13 = vmmov %vm5570_vm4  ;;  %v3397_v1 = vld [vmem:[#allocation2 + $0xd4] sm:$0xf] }
 0x388   :  { %v3859_v13 = vunpack.i.h.bf16 %v3857_v6  ;;  %v3858_v14 = vunpack.i.l.bf16 %v3857_v6  ;;  %v3847_v16 = vpop.permute.xlu1 %3846 }
 0x389   :  { %v3849_v17 = vunpack.i.h.bf16 %v3847_v16  ;;  %v3848_v18 = vunpack.i.l.bf16 %v3847_v16  ;;  %1687 = vmatpush.bf16.msrb.mxu1 %v3098_v7  ;;  %1741 = vmatpush.bf16.msrb.mxu2 %v3102_v10  ;;  %v3396_v10 = vld [vmem:[#allocation2 + $0xc4] sm:$0xf0] }
 0x38a   :  { %v1258_v27 = vsel %vm5566_vm15, %v3858_v14, %v3859_v13  ;;  %v1259_v30 = vsel %vm5567_vm0, %v3859_v13, %v3858_v14  ;;  %vm5572_vm15 = vcmp.lt.s32.totalorder %v4409_v15, 124 }
 0x38b   :  { %1765 = vmatpush.bf16.msra.mxu3 %v3118_v5  ;;  %v1266_v32 = vpack.c.bf16 %v1259_v30, %v1258_v27  ;;  %v1274_v33 = vsel %vm5568_vm5, %v3848_v18, %v3849_v17  ;;  %v1275_v34 = vsel %vm5569_vm8, %v3849_v17, %v3848_v18  ;;  %vm5573_vm0 = vmmov %vm5572_vm15  ;;  %vm5574_vm5 = vcmp.lt.s32.totalorder %v4409_v15, 2 }
 0x38c   :  { %v1282_v35 = vpack.c.bf16 %v1275_v34, %v1274_v33  ;;  %v3398_v45 = vld [vmem:[#allocation2 + $0xd4] sm:$0xf0]  ;;  %v3083_v55 = vld [vmem:[#allocation2 + $0xd8] sm:$0xf0]  ;;  %vm5575_vm8 = vmmov %vm5574_vm5  ;;  %v1814_v33 = vpop.permute.xlu2 %1813 }
 0x38d   :  { %1268 = vst [vmem:[#allocation2 + $0xb0] sm:$0xff] %v1266_v32  ;;  %v3082_v63 = vor.u32 %v3398_v45, %v3081_v60  ;;  %v3086_v6 = vor.u32 %v3397_v1, %v3083_v55  ;;  %v3057_v60 = vld [vmem:[#allocation2 + $0xa0] sm:$0xf] }
 0x38e   :  { %1284 = vst [vmem:[#allocation2 + $0xc0] sm:$0xff] %v1282_v35  ;;  %v3400_v39 = vld [vmem:[#allocation2 + $0xe4] sm:$0xf0]  ;;  %v3091_v40 = vld [vmem:[#allocation2 + $0xe8] sm:$0xf0] }
 0x38f   :  { %1766 = vmatpush.bf16.msra.mxu3 %v3110_v28  ;;  %v3872_v42 = vpop.permute.xlu0 %3871  ;;  %v3090_v43 = vor.u32 %v3400_v39, %v3089_v37  ;;  %v3094_v44 = vor.u32 %v3399_v38, %v3091_v40 }
 0x390   :  { %v3874_v47 = vunpack.i.h.bf16 %v3872_v42  ;;  %v3873_v51 = vunpack.i.l.bf16 %v3872_v42  ;;  %v3862_v53 = vpop.permute.xlu1 %3861 }
 0x391   :  { %v3864_v58 = vunpack.i.h.bf16 %v3862_v53  ;;  %v3863_v59 = vunpack.i.l.bf16 %v3862_v53  ;;  %1688 = vmatpush.bf16.msrb.mxu1 %v3090_v43  ;;  %1742 = vmatpush.bf16.msrb.mxu2 %v3094_v44 }
 0x392   :  { %v1248_v61 = vsel %vm5570_vm4, %v3873_v51, %v3874_v47  ;;  %v1249_v62 = vsel %vm5571_vm13, %v3874_v47, %v3873_v51  ;;  %3136 = vmatmul.msk.bf16.gmra.mxu3 %vm829_vm14, %v4949_v0  ;;  %vm5576_vm4 = vcmp.lt.s32.totalorder %v4409_v15, 1 }
 0x393   :  { %v1251_v2 = vpack.c.bf16 %v1249_v62, %v1248_v61  ;;  %v1264_v3 = vsel %vm5572_vm15, %v3863_v59, %v3864_v58  ;;  %v1265_v5 = vsel %vm5573_vm0, %v3864_v58, %v3863_v59  ;;  %vm5577_vm13 = vmmov %vm5576_vm4  ;;  %v3391_v61 = vld [vmem:[#allocation2 + $0xa4] sm:$0xf] }
 0x394   :  { %v1267_v7 = vpack.c.bf16 %v1265_v5, %v1264_v3  ;;  %1682 = vmatmul.bf16.gmra.mxu2 %v1456_v25  ;;  %1736 = vmatmul.bf16.gmra.mxu0 %v1456_v25  ;;  %v3065_v38 = vld [vmem:[#allocation2 + $0xb0] sm:$0xf]  ;;  %v3393_v39 = vld [vmem:[#allocation2 + $0xb4] sm:$0xf]  ;;  %vm5578_vm15 = vmmov %vm5576_vm4  ;;  %v1824_v5 = vpop.permute.xlu2 %1823 }
 0x395   :  { %1253 = vst [vmem:[#allocation2 + $0xa8] sm:$0xff] %v1251_v2  ;;  %1689 = vmatpush.bf16.msrb.mxu1 %v3082_v63  ;;  %1743 = vmatpush.bf16.msrb.mxu2 %v3086_v6  ;;  %v3073_v12 = vld [vmem:[#allocation2 + $0xc0] sm:$0xf]  ;;  %v3395_v13 = vld [vmem:[#allocation2 + $0xc4] sm:$0xf]  ;;  %v1795_v55 = vsel %vm5578_vm15, %v4788_v26, %v4786_v20  ;;  %vm5579_vm0 = vmmov %vm5576_vm4 }
 0x396   :  { %1269 = vst [vmem:[#allocation2 + $0xb8] sm:$0xff] %v1267_v7  ;;  %v3074_v14 = vor.u32 %v3396_v10, %v3073_v12  ;;  %v3078_v16 = vor.u32 %v3395_v13, %v3075_v11  ;;  %v1799_v25 = vsel %vm5579_vm0, %v4786_v20, %v4788_v26  ;;  %v1806_v20 = vadd.f32 %v1795_v55, %v4639_v52  ;;  %v3390_v3 = vld [vmem:[#allocation2 + $0x94] sm:$0xf0]  ;;  %v3051_v7 = vld [vmem:[#allocation2 + $0x98] sm:$0xf0]  ;;  %vm5584_vm15 = vmmov %vm5579_vm0 }
 0x397   :  { %v3887_v17 = vpop.permute.xlu0 %3886  ;;  %v1805_v2 = vadd.f32 %v1799_v25, %v4642_v56  ;;  %v1451_v55 = vunpack.c.h.b16 %v4938_v21 }
 0x398   :  { %v3889_v18 = vunpack.i.h.bf16 %v3887_v17  ;;  %v3888_v19 = vunpack.i.l.bf16 %v3887_v17  ;;  %v3877_v27 = vpop.permute.xlu1 %3876 }
 0x399   :  { %v3879_v30 = vunpack.i.h.bf16 %v3877_v27  ;;  %v3878_v28 = vunpack.i.l.bf16 %v3877_v27  ;;  %1690 = vmatpush.bf16.msrb.mxu1 %v3074_v14  ;;  %1744 = vmatpush.bf16.msrb.mxu2 %v3078_v16 }
 0x39a   :  { %v1222_v31 = vsel %vm5574_vm5, %v3888_v19, %v3889_v18  ;;  %v1223_v32 = vsel %vm5575_vm8, %v3889_v18, %v3888_v19  ;;  %vm5580_vm5 = vmmov %vm5579_vm0  ;;  %v1845_v18 = vmax.f32 %v4684_v24, %v1805_v2  ;;  %v1846_v19 = vmax.f32 %v4700_v49, %v1806_v20  ;;  %v3041_v24 = vld [vmem:[#allocation2 + $0x80] sm:$0xf] }
 0x39b   :  { %v1225_v34 = vpack.c.bf16 %v1222_v31, %v1223_v32  ;;  %v1232_v35 = vsel %vm5576_vm4, %v3878_v28, %v3879_v30  ;;  %v1233_v36 = vsel %vm5577_vm13, %v3879_v30, %v3878_v28  ;;  %vm5581_vm8 = vmmov %vm5579_vm0  ;;  %v3368_v28 = vld [vmem:[#allocation8 + $0x4] sm:$0xf]  ;;  %v2967_v31 = vld [vmem:[#allocation8 + $0xc] sm:$0xf0] }
 0x39c   :  { %v1234_v37 = vpack.c.bf16 %v1232_v35, %v1233_v36  ;;  %v3392_v47 = vld [vmem:[#allocation2 + $0xa4] sm:$0xf0]  ;;  %v3059_v51 = vld [vmem:[#allocation2 + $0xa8] sm:$0xf0]  ;;  %v3387_v36 = vld [vmem:[#allocation2 + $0x84] sm:$0xf] }
 0x39d   :  { %1227 = vst [vmem:[#allocation2 + $0x88] sm:$0xff] %v1225_v34  ;;  %v3394_v40 = vld [vmem:[#allocation2 + $0xb4] sm:$0xf0]  ;;  %v3067_v42 = vld [vmem:[#allocation2 + $0xb8] sm:$0xf0]  ;;  %v3058_v62 = vor.u32 %v3392_v47, %v3057_v60  ;;  %v3062_v63 = vor.u32 %v3391_v61, %v3059_v51  ;;  %vm5582_vm4 = vmmov %vm5579_vm0 }
 0x39e   :  { %1236 = vst [vmem:[#allocation2 + $0x90] sm:$0xff] %v1234_v37  ;;  %v3066_v43 = vor.u32 %v3394_v40, %v3065_v38  ;;  %v3070_v44 = vor.u32 %v3393_v39, %v3067_v42  ;;  %v2970_v40 = vor.u32 %v3368_v28, %v2967_v31  ;;  %vm5583_vm13 = vmmov %vm5579_vm0 }
 0x39f   :  { %v1816_v45 = vpop.permute.xlu0 %1815 }
 0x3a0   :  { %v1792_v53 = vpop.permute.xlu1 %1791  ;;  %1691 = vmatpush.bf16.msrb.mxu1 %v3066_v43  ;;  %1745 = vmatpush.bf16.msrb.mxu2 %v3070_v44  ;;  %v1828_v10 = vsel %vm388_vm11, %v1816_v45, %v1824_v5 }
 0x3a1   :  { %v1796_v58 = vsel %vm5580_vm5, %v4764_v4, %v1792_v53  ;;  %v1800_v59 = vsel %vm5581_vm8, %v1792_v53, %v4764_v4  ;;  %v1839_v32 = vadd.f32 %v1828_v10, %v4655_v8  ;;  %v1786_v53 = vpop.permute.xlu2 %1785  ;;  %vm5598_vm5 = vcmp.lt.s32.totalorder %v4409_v15, 19 }
 0x3a2   :  { %3137 = vmatmul.msk.bf16.vlgmr.msra.gmra.mxu3 %vm829_vm14, %v4922_v29  ;;  %v1807_v1 = vadd.f32 %v1800_v59, %v4642_v56  ;;  %v1808_v26 = vadd.f32 %v1796_v58, %v4639_v52  ;;  %v1832_v29 = vsel %vm388_vm11, %v1824_v5, %v1816_v45  ;;  %vm5599_vm8 = vmmov %vm5598_vm5 }
 0x3a3   :  { %v1840_v34 = vadd.f32 %v1832_v29, %v4658_v9 }
 0x3a4   :  { %1692 = vmatpush.bf16.msrb.mxu1 %v3058_v62  ;;  %1746 = vmatpush.bf16.msrb.mxu2 %v3062_v63  ;;  %v1847_v13 = vmax.f32 %v4697_v46, %v1807_v1  ;;  %v3388_v16 = vld [vmem:[#allocation2 + $0x84] sm:$0xf0]  ;;  %v3043_v17 = vld [vmem:[#allocation2 + $0x88] sm:$0xf0]  ;;  %v1848_v27 = vmax.f32 %v4694_v22, %v1808_v26  ;;  %v1457_v63 = vpack.c.b16 %v1451_v55, %v1451_v55 }
 0x3a5   :  { %v3049_v4 = vld [vmem:[#allocation2 + $0x90] sm:$0xf]  ;;  %v3389_v6 = vld [vmem:[#allocation2 + $0x94] sm:$0xf]  ;;  %v3042_v37 = vor.u32 %v3388_v16, %v3041_v24  ;;  %v3046_v38 = vor.u32 %v3387_v36, %v3043_v17 }
 0x3a6   :  { %v3050_v11 = vor.u32 %v3390_v3, %v3049_v4  ;;  %v3054_v12 = vor.u32 %v3389_v6, %v3051_v7  ;;  %v1855_v39 = vmax.f32 %v1847_v13, %v1839_v32  ;;  %v1856_v42 = vmax.f32 %v1848_v27, %v1840_v34 }
 0x3a7   :  { %v1778_v14 = vpop.permute.xlu0 %1777 }
 0x3a8   :  { %v1822_v30 = vpop.permute.xlu1 %1821  ;;  %1693 = vmatpush.bf16.msrb.mxu1 %v3050_v11  ;;  %1747 = vmatpush.bf16.msrb.mxu2 %v3054_v12  ;;  %v1793_v58 = vsel %vm5582_vm4, %v1778_v14, %v1786_v53  ;;  %v1797_v59 = vsel %vm5583_vm13, %v1786_v53, %v1778_v14  ;;  %vm5607_vm4 = vcmp.lt.s32.totalorder %v4409_v15, 116 }
 0x3a9   :  { %v1827_v46 = vsel %vm388_vm11, %v1814_v33, %v1822_v30  ;;  %v1831_v35 = vsel %vm388_vm11, %v1822_v30, %v1814_v33  ;;  %v1802_v1 = vadd.f32 %v1793_v58, %v4639_v52  ;;  %v1812_v3 = vpop.permute.xlu2 %1811  ;;  %v1049_v30 = vld [vmem:[%s5424_s6] sm:$0xf]  ;;  %vm5608_vm13 = vmmov %vm5607_vm4 }
 0x3aa   :  { %v1837_v49 = vadd.f32 %v1827_v46, %v4655_v8  ;;  %v1838_v22 = vadd.f32 %v1831_v35, %v4658_v9 }
 0x3ab   :  { %v1842_v10 = vmax.f32 %v4720_v48, %v1802_v1 }
 0x3ac   :  { %v1853_v43 = vmax.f32 %v1845_v18, %v1837_v49  ;;  %v1854_v44 = vmax.f32 %v1846_v19, %v1838_v22  ;;  %1694 = vmatpush.bf16.msrb.mxu1 %v3042_v37  ;;  %1748 = vmatpush.bf16.msrb.mxu2 %v3046_v38 }
 0x3ae   :  { %v1859_v45 = vpack.c.bf16 %v1855_v39, %v1853_v43  ;;  %v1860_v47 = vpack.c.bf16 %v1856_v42, %v1854_v44 }
 0x3af   :  { %1695 = vmatmul.bf16.vlgmr.msrb.gmra.mxu1 %v2970_v40  ;;  %1749 = vmatmul.bf16.vlgmr.msrb.gmra.mxu2 %v2970_v40  ;;  %v1788_v33 = vpop.permute.xlu0 %1787 }
 0x3b0   :  { %v1780_v51 = vpop.permute.xlu1 %1779  ;;  %1870 = vmatpush.bf16.msra.mxu1 %v1859_v45  ;;  %1883 = vmatpush.bf16.msrb.mxu0 %v1860_v47 }
 0x3b1   :  { %v1794_v61 = vsel %vm5584_vm15, %v1780_v51, %v1788_v33  ;;  %v1798_v62 = vsel %vm5579_vm0, %v1788_v33, %v1780_v51  ;;  %vm5611_vm0 = vcmp.lt.s32.totalorder %v4409_v15, 13 }
 0x3b2   :  { %3138 = vmatmul.msk.bf16.gmra.mxu3 %vm829_vm14, %v4949_v0  ;;  %v1801_v0 = vadd.f32 %v1797_v59, %v4642_v56  ;;  %v1803_v20 = vadd.f32 %v1798_v62, %v4642_v56  ;;  %v1804_v26 = vadd.f32 %v1794_v61, %v4639_v52 }
 0x3b4   :  { %v1841_v7 = vmax.f32 %v4717_v57, %v1801_v0  ;;  %v1843_v12 = vmax.f32 %v4703_v50, %v1803_v20  ;;  %v1844_v13 = vmax.f32 %v4710_v54, %v1804_v26 }
 0x3b7   :  { %v1818_v60 = vpop.permute.xlu0 %1817 }
 0x3b8   :  { %v1810_v25 = vpop.permute.xlu1 %1809 }
 0x3b9   :  { %v1825_v21 = vsel %vm388_vm11, %v1810_v25, %v1818_v60  ;;  %v1829_v2 = vsel %vm388_vm11, %v1818_v60, %v1810_v25 }
 0x3ba   :  { %v1833_v5 = vadd.f32 %v1825_v21, %v4655_v8  ;;  %v1834_v4 = vadd.f32 %v1829_v2, %v4658_v9 }
 0x3bc   :  { %v1849_v17 = vmax.f32 %v1841_v7, %v1833_v5  ;;  %v1850_v18 = vmax.f32 %v1842_v10, %v1834_v4 }
 0x3bf   :  { %1700 = vmatmul.bf16.gmra.mxu1 %v1457_v63  ;;  %1754 = vmatmul.bf16.gmra.mxu2 %v1457_v63 }
 0x3c0   :  { %v1820_v6 = vpop.permute.xlu1 %1819 }
 0x3c1   :  { %v1826_v29 = vsel %vm388_vm11, %v1812_v3, %v1820_v6  ;;  %v1830_v11 = vsel %vm388_vm11, %v1820_v6, %v1812_v3 }
 0x3c2   :  { %v1835_v14 = vadd.f32 %v1826_v29, %v4655_v8  ;;  %v1836_v16 = vadd.f32 %v1830_v11, %v4658_v9 }
 0x3c4   :  { %v1851_v19 = vmax.f32 %v1843_v12, %v1835_v14  ;;  %v1852_v57 = vmax.f32 %v1844_v13, %v1836_v16 }
 0x3c6   :  { %v1857_v27 = vpack.c.bf16 %v1851_v19, %v1849_v17  ;;  %v1858_v48 = vpack.c.bf16 %v1852_v57, %v1850_v18 }
 0x3c8   :  { %1871 = vmatpush.bf16.msra.mxu1 %v1857_v27  ;;  %1884 = vmatpush.bf16.msrb.mxu0 %v1858_v48 }
 0x3cb   :  { %3140 = vmatmul.msk.bf16.vlgmr.msrb.gmra.mxu0 %vm1054_vm1, %v1049_v30 }
 0x3cf   :  { %3139 = vmatmul.msk.bf16.vlgmr.msra.gmra.mxu1 %vm1054_vm1, %v1049_v30 }
 0x401   :  { %v1732_v50 = vpop.f32.mrf.mxu0 }
 0x405   :  { %v1714_v54 = vpop.f32.mrf.mxu3 }
 0x407   :  { %v1678_v28 = vpop.f32.mrf.mxu2 }
 0x409   :  { %v1734_v31 = vpop.f32.mrf.mxu0 }
 0x40d   :  { %v1716_v32 = vpop.f32.mrf.mxu3 }
 0x40f   :  { %v1680_v34 = vpop.f32.mrf.mxu2 }
 0x411   :  { %v1737_v46 = vpop.f32.mrf.mxu0 }
 0x415   :  { %v1719_v35 = vpop.f32.mrf.mxu3 }
 0x417   :  { %v1683_v24 = vpop.f32.mrf.mxu2 }
 0x419   :  { %v1739_v36 = vpop.f32.mrf.mxu0 }
 0x41d   :  { %v1721_v49 = vpop.f32.mrf.mxu3 }
 0x41f   :  { %v1685_v22 = vpop.f32.mrf.mxu2 }
 0x425   :  { %v1768_v37 = vpop.f32.mrf.mxu3 }
 0x42c   :  { %v1696_v38 = vpop.f32.mrf.mxu1 }
 0x42d   :  { %v1697_v39 = vadd.f32 %v1696_v38, %v1678_v28  ;;  %v1770_v40 = vpop.f32.mrf.mxu3 }
 0x42f   :  { %v1715_v42 = vadd.f32 %v1714_v54, %v1697_v39 }
 0x431   :  { %v1890_v17 = vmax.f32 %v1715_v42, 0.0 }
 0x432   :  { %v1750_v43 = vpop.f32.mrf.mxu2 }
 0x433   :  { %v1751_v60 = vadd.f32 %v1750_v43, %v1732_v50  ;;  %v1906_v50 = vld [vmem:[%s5425_s7] sm:$0xf]  ;;  %s5585_s7 = smov 10  }
 0x434   :  { %v1698_v44 = vpop.f32.mrf.mxu1 }
 0x435   :  { %v1773_v45 = vpop.f32.mrf.mxu3  ;;  %v1699_v0 = vadd.f32 %v1698_v44, %v1680_v34  ;;  %v1769_v2 = vadd.f32 %v1768_v37, %v1751_v60 }
 0x437   :  { %v1717_v3 = vadd.f32 %v1716_v32, %v1699_v0  ;;  %v1891_v10 = vmax.f32 %v1769_v2, 0.0 }
 0x439   :  { %v1892_v12 = vmax.f32 %v1717_v3, 0.0  ;;  %v5060_v18 = vmul.f32 %v4691_v41, %v1891_v10 }
 0x43a   :  { %v1752_v47 = vpop.f32.mrf.mxu2 }
 0x43b   :  { %v1753_v25 = vadd.f32 %v1752_v47, %v1734_v31  ;;  %v5066_v27 = vmul.f32 %v4681_v23, %v1892_v12 }
 0x43c   :  { %v1701_v33 = vpop.f32.mrf.mxu1 }
 0x43d   :  { %v1702_v51 = vadd.f32 %v1701_v33, %v1683_v24  ;;  %v1775_v53 = vpop.f32.mrf.mxu3  ;;  %v1771_v1 = vadd.f32 %v1770_v40, %v1753_v25 }
 0x43f   :  { %v1720_v55 = vadd.f32 %v1719_v35, %v1702_v51  ;;  %v1893_v5 = vmax.f32 %v1771_v1, 0.0 }
 0x441   :  { %v1894_v58 = vmax.f32 %v1720_v55, 0.0  ;;  %v5055_v13 = vmul.f32 %v4691_v41, %v1893_v5 }
 0x442   :  { %v1755_v59 = vpop.f32.mrf.mxu2 }
 0x443   :  { %v5042_v61 = vmul.f32 %v4681_v23, %v1894_v58  ;;  %v1756_v62 = vadd.f32 %v1755_v59, %v1737_v46  ;;  %v1915_v30 = vpack.c.bf16 %v5055_v13, %v5060_v18 }
 0x444   :  { %v1703_v63 = vpop.f32.mrf.mxu1 }
 0x445   :  { %v1774_v21 = vadd.f32 %v1773_v45, %v1756_v62  ;;  %2644 = vrot.lane.b32.xlu2 %v5042_v61, %s5519_s24 }
 0x447   :  { %v1895_v20 = vmax.f32 %v1774_v21, 0.0 }
 0x448   :  { %v1886_v26 = vpop.f32.mrf.mxu0 }
 0x449   :  { %v5047_v4 = vmul.f32 %v4691_v41, %v1895_v20  ;;  %v1897_v6 = vmax.f32 %v1886_v26, 0.0 }
 0x44a   :  { %v1757_v7 = vpop.f32.mrf.mxu2 }
 0x44b   :  { %v5050_v29 = vmul.f32 %v4691_v41, %v1897_v6  ;;  %2652 = vrot.lane.b32.xlu1 %v5047_v4, %s5519_s24  ;;  %v5075_v41 = vmul.f32 %v4681_v23, %v1890_v17 }
 0x44c   :  { %v1873_v11 = vpop.f32.mrf.mxu1 }
 0x44d   :  { %v1896_v14 = vmax.f32 %v1873_v11, 0.0  ;;  %v1917_v16 = vpack.c.bf16 %v5050_v29, %v5047_v4  ;;  %v1914_v28 = vpack.c.bf16 %v5066_v27, %v5075_v41 }
 0x44f   :  { %v5063_v19 = vmul.f32 %v4681_v23, %v1896_v14  ;;  %1940 = vmatpush.bf16.msra.mxu2 %v1917_v16 }
 0x450   :  { %v1888_v57 = vpop.f32.mrf.mxu0 }
 0x451   :  { %v1916_v48 = vpack.c.bf16 %v5063_v19, %v5042_v61  ;;  %2646 = vrot.lane.b32.xlu0 %v5063_v19, %s5519_s24 }
 0x453   :  { %1927 = vmatpush.bf16.msrb.mxu1 %v1916_v48  ;;  %1941 = vmatpush.bf16.msra.mxu2 %v1915_v30 }
 0x454   :  { %v1875_v54 = vpop.f32.mrf.mxu1 }
 0x456   :  { %3142 = vmatmul.msk.bf16.vlgmr.msra.gmra.mxu2 %vm1054_vm1, %v1906_v50 }
 0x457   :  { %1928 = vmatpush.bf16.msrb.mxu1 %v1914_v28 }
 0x45a   :  { %3141 = vmatmul.msk.bf16.vlgmr.msrb.gmra.mxu1 %vm1054_vm1, %v1906_v50 }
 0x49f   :  { %v5117_v24 = vpop.permute.xlu2 %2644 }
 0x4bd   :  { %v5139_v33 = vpop.permute.xlu1 %2652 }
 0x4c3   :  { %v5141_v51 = vpop.permute.xlu0 %2646 }
 0x4d7   :  { %v1930_v31 = vpop.f32.mrf.mxu1 }
 0x4d9   :  { %v1943_v32 = vpop.f32.mrf.mxu2 }
 0x4da   :  { %v3900_v34 = vpack.i.bf16 %v1943_v32, %v1930_v31  ;;  %v2098_v35 = vpack.c.bf16 %v1943_v32, %v1930_v31 }
 0x4dc   :  { %3901 = vrot.lane.b32.xlu1 %v3900_v34, %s4220_s18  ;;  %3896 = vrot.lane.b32.xlu0 %v3900_v34, %s5506_s29  ;;  %2100 = vst [vmem:[#allocation2 + $0x98] sm:$0xff] %v2098_v35  ;;  %s5586_s18 = smov 14  }
 0x4dd   :  { %3891 = vrot.lane.b32.xlu2 %v3900_v34, %s4241_s3 }
 0x4df   :  { %v1932_v23 = vpop.f32.mrf.mxu1 }
 0x4e1   :  { %v1945_v46 = vpop.f32.mrf.mxu2 }
 0x4e4   :  { %3916 = vrot.lane.b32.xlu1 %v3900_v34, %s4222_s20  ;;  %3911 = vrot.lane.b32.xlu0 %v3900_v34, %s4219_s8  ;;  %s5587_s8 = smov 15   ;;  %s5588_s20 = smov 108  }
 0x4e5   :  { %3906 = vrot.lane.b32.xlu2 %v3900_v34, %s4223_s21  ;;  %s5589_s21 = smov 109  }
 0x4ec   :  { %3931 = vrot.lane.b32.xlu1 %v3900_v34, %s4226_s25  ;;  %3926 = vrot.lane.b32.xlu0 %v3900_v34, %s4221_s19  ;;  %s5592_s19 = smov 110   ;;  %s5593_s25 = smov 111  }
 0x4ed   :  { %3921 = vrot.lane.b32.xlu2 %v3900_v34, %s4218_s0  ;;  %s5590_s0 = smov 16  }
 0x4f4   :  { %3946 = vrot.lane.b32.xlu1 %v3900_v34, %s4213_s22  ;;  %3941 = vrot.lane.b32.xlu0 %v3900_v34, %s4227_s26  ;;  %s5591_s22 = smov 17   ;;  %s5594_s26 = smov 113  }
 0x4f5   :  { %3936 = vrot.lane.b32.xlu2 %v3900_v34, %s5585_s7 }
 0x4fc   :  { %3961 = vrot.lane.b32.xlu1 %v3900_v34, %s5509_s16  ;;  %3956 = vrot.lane.b32.xlu0 %v3900_v34, %s5586_s18 }
 0x4fd   :  { %3951 = vrot.lane.b32.xlu2 %v3900_v34, %s5587_s8 }
 0x504   :  { %3976 = vrot.lane.b32.xlu1 %v3900_v34, %s5588_s20  ;;  %3971 = vrot.lane.b32.xlu0 %v3900_v34, %s5589_s21 }
 0x505   :  { %3966 = vrot.lane.b32.xlu2 %v3900_v34, %s5508_s28  ;;  %s5595_s28 = smov 112  }
 0x50c   :  { %3991 = vrot.lane.b32.xlu1 %v3900_v34, %s5507_s1  ;;  %3986 = vrot.lane.b32.xlu0 %v3900_v34, %s5590_s0 }
 0x50d   :  { %3981 = vrot.lane.b32.xlu2 %v3900_v34, %s5591_s22 }
 0x514   :  { %4006 = vrot.lane.b32.xlu1 %v3900_v34, %s5592_s19  ;;  %4001 = vrot.lane.b32.xlu0 %v3900_v34, %s5593_s25 }
 0x515   :  { %3996 = vrot.lane.b32.xlu2 %v3900_v34, %s5512_s14  ;;  %s5597_s14 = smov 127  }
 0x51c   :  { %4021 = vrot.lane.b32.xlu1 %v3900_v34, %s5594_s26  ;;  %4016 = vrot.lane.b32.xlu0 %v3900_v34, %s5510_s12 }
 0x51d   :  { %4011 = vrot.lane.b32.xlu2 %v3900_v34, %s5511_s17 }
 0x524   :  { %4036 = vrot.lane.b32.xlu1 %v3900_v34, %s5514_s2  ;;  %4031 = vrot.lane.b32.xlu0 %v3900_v34, %s5515_s15 }
 0x525   :  { %4026 = vrot.lane.b32.xlu2 %v3900_v34, %s5595_s28 }
 0x52c   :  { %4051 = vrot.lane.b32.xlu1 %v3900_v34, %s5513_s23  ;;  %4046 = vrot.lane.b32.xlu0 %v3900_v34, %s5596_s30  ;;  %s5600_s23 = smov 2  }
 0x52d   :  { %4041 = vrot.lane.b32.xlu2 %v3900_v34, %s5505_s4 }
 0x534   :  { %4066 = vrot.lane.b32.xlu1 %v3900_v34, %s5516_s13  ;;  %4061 = vrot.lane.b32.xlu0 %v3900_v34, %s5597_s14 }
 0x535   :  { %4056 = vrot.lane.b32.xlu2 %v3900_v34, %s5517_s27 }
 0x537   :  { %v3892_v36 = vpop.permute.xlu2 %3891 }
 0x538   :  { %v3894_v49 = vunpack.i.h.bf16 %v3892_v36  ;;  %v3893_v22 = vunpack.i.l.bf16 %v3892_v36 }
 0x53a   :  { %v1951_v37 = vsel %vm5598_vm5, %v3893_v22, %v3894_v49  ;;  %v1952_v38 = vsel %vm5599_vm8, %v3894_v49, %v3893_v22  ;;  %vm5612_vm5 = vmmov %vm5611_vm0  ;;  %vm5613_vm8 = vcmp.lt.s32.totalorder %v4409_v15, 17 }
 0x53b   :  { %v1959_v39 = vpack.c.bf16 %v1951_v37, %v1952_v38 }
 0x53c   :  { %4081 = vrot.lane.b32.xlu1 %v3900_v34, %s5600_s23  ;;  %4076 = vrot.lane.b32.xlu0 %v3900_v34, %s5518_s11 }
 0x53d   :  { %1961 = vst [vmem:[#allocation2] sm:$0xff] %v1959_v39  ;;  %4071 = vrot.lane.b32.xlu2 %v3900_v34, %s5519_s24 }
 0x53f   :  { %v3907_v40 = vpop.permute.xlu2 %3906 }
 0x540   :  { %v3909_v42 = vunpack.i.h.bf16 %v3907_v40  ;;  %v3908_v43 = vunpack.i.l.bf16 %v3907_v40 }
 0x542   :  { %v2069_v44 = vsel %vm348_vm10, %v3908_v43, %v3909_v42  ;;  %v2070_v45 = vsel %vm348_vm10, %v3909_v42, %v3908_v43 }
 0x543   :  { %v2072_v47 = vpack.c.bf16 %v2069_v44, %v2070_v45 }
 0x544   :  { %2678 = vrot.lane.b32.xlu1 %v5063_v19, %s5597_s14  ;;  %2676 = vrot.lane.b32.xlu0 %v5042_v61, %s5597_s14 }
 0x545   :  { %2074 = vst [vmem:[#allocation2 + $0x78] sm:$0xff] %v2072_v47  ;;  %2654 = vrot.lane.b32.xlu2 %v5050_v29, %s5519_s24 }
 0x547   :  { %v3922_v53 = vpop.permute.xlu2 %3921 }
 0x548   :  { %v3924_v55 = vunpack.i.h.bf16 %v3922_v53  ;;  %v3923_v25 = vunpack.i.l.bf16 %v3922_v53 }
 0x54a   :  { %v2031_v58 = vsel %vm305_vm2, %v3923_v25, %v3924_v55  ;;  %v2032_v59 = vsel %vm305_vm2, %v3924_v55, %v3923_v25  ;;  %vm5601_vm2 = vcmp.lt.s32.totalorder %v4409_v15, 18 }
 0x54b   :  { %v2039_v60 = vpack.c.bf16 %v2031_v58, %v2032_v59  ;;  %vm5602_vm10 = vmmov %vm5601_vm2 }
 0x54c   :  { %2640 = vrot.lane.b32.xlu1 %v5075_v41, %s5519_s24  ;;  %2686 = vrot.lane.b32.xlu0 %v5050_v29, %s5597_s14  ;;  %v3429_v39 = vld [vmem:[#allocation2 + $0x74] sm:$0xf0]  ;;  %v3215_v44 = vld [vmem:[#allocation2 + $0x78] sm:$0xf0] }
 0x54d   :  { %2041 = vst [vmem:[#allocation2 + $0x50] sm:$0xff] %v2039_v60  ;;  %2684 = vrot.lane.b32.xlu2 %v5047_v4, %s5597_s14 }
 0x54e   :  { %v3902_v62 = vpop.permute.xlu1 %3901  ;;  %v3897_v63 = vpop.permute.xlu0 %3896 }
 0x54f   :  { %v3904_v0 = vunpack.i.h.bf16 %v3902_v62  ;;  %v3903_v1 = vunpack.i.l.bf16 %v3902_v62  ;;  %v3899_v21 = vunpack.i.h.bf16 %v3897_v63  ;;  %v3898_v2 = vunpack.i.l.bf16 %v3897_v63  ;;  %v3937_v20 = vpop.permute.xlu2 %3936 }
 0x550   :  { %v3939_v26 = vunpack.i.h.bf16 %v3937_v20  ;;  %v3938_v3 = vunpack.i.l.bf16 %v3937_v20 }
 0x551   :  { %v2063_v5 = vsel %vm341_vm7, %v3903_v1, %v3904_v0  ;;  %v2064_v6 = vsel %vm341_vm7, %v3904_v0, %v3903_v1  ;;  %v1957_v7 = vsel %vm5601_vm2, %v3898_v2, %v3899_v21  ;;  %v1958_v10 = vsel %vm5602_vm10, %v3899_v21, %v3898_v2  ;;  %vm5614_vm2 = vmmov %vm5613_vm8 }
 0x552   :  { %v2071_v11 = vpack.c.bf16 %v2063_v5, %v2064_v6  ;;  %v1960_v12 = vpack.c.bf16 %v1957_v7, %v1958_v10  ;;  %v2021_v14 = vsel %vm294_vm12, %v3938_v3, %v3939_v26  ;;  %v2022_v16 = vsel %vm294_vm12, %v3939_v26, %v3938_v3 }
 0x553   :  { %v2024_v17 = vpack.c.bf16 %v2021_v14, %v2022_v16  ;;  %vm5603_vm7 = vcmp.lt.s32.totalorder %v4409_v15, 15  ;;  %vm5615_vm10 = vcmp.lt.s32.totalorder %v4409_v15, 117 }
 0x554   :  { %2073 = vst [vmem:[#allocation2 + $0x70] sm:$0xff] %v2071_v11  ;;  %2650 = vrot.lane.b32.xlu1 %v5055_v13, %s5519_s24  ;;  %2648 = vrot.lane.b32.xlu0 %v5060_v18, %s5519_s24  ;;  %vm5604_vm12 = vmmov %vm5603_vm7 }
 0x555   :  { %1962 = vst [vmem:[#allocation2 + $0x8] sm:$0xff] %v1960_v12  ;;  %2642 = vrot.lane.b32.xlu2 %v5066_v27, %s5519_s24 }
 0x556   :  { %2026 = vst [vmem:[#allocation2 + $0x48] sm:$0xff] %v2024_v17  ;;  %v3917_v57 = vpop.permute.xlu1 %3916  ;;  %v3912_v48 = vpop.permute.xlu0 %3911 }
 0x557   :  { %v3919_v30 = vunpack.i.h.bf16 %v3917_v57  ;;  %v3918_v50 = vunpack.i.l.bf16 %v3917_v57  ;;  %v3914_v54 = vunpack.i.h.bf16 %v3912_v48  ;;  %v3913_v28 = vunpack.i.l.bf16 %v3912_v48  ;;  %v3952_v31 = vpop.permute.xlu2 %3951 }
 0x558   :  { %v3954_v32 = vunpack.i.h.bf16 %v3952_v31  ;;  %v3953_v34 = vunpack.i.l.bf16 %v3952_v31 }
 0x559   :  { %v2053_v23 = vsel %vm330_vm9, %v3918_v50, %v3919_v30  ;;  %v2054_v46 = vsel %vm330_vm9, %v3919_v30, %v3918_v50  ;;  %v2047_v35 = vsel %vm323_vm6, %v3913_v28, %v3914_v54  ;;  %v2048_v36 = vsel %vm323_vm6, %v3914_v54, %v3913_v28 }
 0x55a   :  { %v2056_v49 = vpack.c.bf16 %v2053_v23, %v2054_v46  ;;  %v2055_v22 = vpack.c.bf16 %v2047_v35, %v2048_v36  ;;  %v1983_v37 = vsel %vm5603_vm7, %v3953_v34, %v3954_v32  ;;  %v1984_v38 = vsel %vm5604_vm12, %v3954_v32, %v3953_v34  ;;  %vm5616_vm7 = vmmov %vm5615_vm10 }
 0x55b   :  { %v1991_v40 = vpack.c.bf16 %v1983_v37, %v1984_v38  ;;  %v3213_v42 = vld [vmem:[#allocation2 + $0x70] sm:$0xf]  ;;  %v3428_v43 = vld [vmem:[#allocation2 + $0x74] sm:$0xf]  ;;  %vm5605_vm6 = vcmp.lt.s32.totalorder %v4409_v15, 11  ;;  %vm5617_vm12 = vcmp.lt.s32.totalorder %v4409_v15, 14 }
 0x55c   :  { %2058 = vst [vmem:[#allocation2 + $0x68] sm:$0xff] %v2056_v49  ;;  %2680 = vrot.lane.b32.xlu1 %v5060_v18, %s5597_s14  ;;  %2674 = vrot.lane.b32.xlu0 %v5066_v27, %s5597_s14  ;;  %v3214_v45 = vor.u32 %v3429_v39, %v3213_v42  ;;  %v3218_v47 = vor.u32 %v3428_v43, %v3215_v44  ;;  %vm5606_vm9 = vmmov %vm5605_vm6  ;;  %v3424_v42 = vld [vmem:[#allocation2 + $0x54] sm:$0xf] }
 0x55d   :  { %2057 = vst [vmem:[#allocation2 + $0x60] sm:$0xff] %v2055_v22  ;;  %2672 = vrot.lane.b32.xlu2 %v5075_v41, %s5597_s14 }
 0x55e   :  { %1993 = vst [vmem:[#allocation2 + $0x20] sm:$0xff] %v1991_v40  ;;  %v3932_v53 = vpop.permute.xlu1 %3931  ;;  %v3927_v55 = vpop.permute.xlu0 %3926  ;;  %2532 = vmatpush.bf16.msrb.mxu3 %v3214_v45  ;;  %2586 = vmatpush.bf16.msrb.mxu2 %v3218_v47  ;;  %v3197_v40 = vld [vmem:[#allocation2 + $0x50] sm:$0xf] }
 0x55f   :  { %v3934_v25 = vunpack.i.h.bf16 %v3932_v53  ;;  %v3933_v58 = vunpack.i.l.bf16 %v3932_v53  ;;  %v3929_v59 = vunpack.i.h.bf16 %v3927_v55  ;;  %v3928_v60 = vunpack.i.l.bf16 %v3927_v55  ;;  %v3967_v62 = vpop.permute.xlu2 %3966 }
 0x560   :  { %v3969_v63 = vunpack.i.h.bf16 %v3967_v62  ;;  %v3968_v0 = vunpack.i.l.bf16 %v3967_v62 }
 0x561   :  { %v2015_v1 = vsel %vm5605_vm6, %v3933_v58, %v3934_v25  ;;  %v2016_v21 = vsel %vm5606_vm9, %v3934_v25, %v3933_v58  ;;  %v2037_v2 = vsel %vm312_vm3, %v3928_v60, %v3929_v59  ;;  %v2038_v20 = vsel %vm312_vm3, %v3929_v59, %v3928_v60  ;;  %vm5618_vm6 = vmmov %vm5617_vm12 }
 0x562   :  { %v2023_v26 = vpack.c.bf16 %v2015_v1, %v2016_v21  ;;  %v2040_v3 = vpack.c.bf16 %v2037_v2, %v2038_v20  ;;  %v2191_v5 = vsel %vm5607_vm4, %v3968_v0, %v3969_v63  ;;  %v2192_v6 = vsel %vm5608_vm13, %v3969_v63, %v3968_v0  ;;  %v3423_v1 = vld [vmem:[#allocation2 + $0x44] sm:$0xf0]  ;;  %v3191_v21 = vld [vmem:[#allocation2 + $0x48] sm:$0xf0] }
 0x563   :  { %v2194_v7 = vpack.c.bf16 %v2192_v6, %v2191_v5  ;;  %v3427_v10 = vld [vmem:[#allocation2 + $0x64] sm:$0xf0]  ;;  %v3207_v11 = vld [vmem:[#allocation2 + $0x68] sm:$0xf0]  ;;  %vm5609_vm3 = vcmp.lt.s32.totalorder %v4409_v15, 12  ;;  %vm5619_vm9 = vcmp.lt.s32.totalorder %v4409_v15, 118 }
 0x564   :  { %2025 = vst [vmem:[#allocation2 + $0x40] sm:$0xff] %v2023_v26  ;;  %v3205_v12 = vld [vmem:[#allocation2 + $0x60] sm:$0xf]  ;;  %v3426_v14 = vld [vmem:[#allocation2 + $0x64] sm:$0xf]  ;;  %vm5610_vm15 = vmmov %vm5609_vm3  ;;  %vm5621_vm13 = vcmp.lt.s32.totalorder %v4409_v15, 108 }
 0x565   :  { %2042 = vst [vmem:[#allocation2 + $0x58] sm:$0xff] %v2040_v3  ;;  %2682 = vrot.lane.b32.xlu2 %v5055_v13, %s5597_s14  ;;  %v3206_v16 = vor.u32 %v3427_v10, %v3205_v12  ;;  %v3210_v17 = vor.u32 %v3426_v14, %v3207_v11  ;;  %vm5620_vm4 = vmmov %vm5619_vm9 }
 0x566   :  { %2196 = vst [vmem:[#allocation2 + $0xf8] sm:$0xff] %v2194_v7  ;;  %v3947_v57 = vpop.permute.xlu1 %3946  ;;  %v3942_v48 = vpop.permute.xlu0 %3941 }
 0x567   :  { %v3949_v30 = vunpack.i.h.bf16 %v3947_v57  ;;  %v3948_v50 = vunpack.i.l.bf16 %v3947_v57  ;;  %v3944_v54 = vunpack.i.h.bf16 %v3942_v48  ;;  %v3943_v28 = vunpack.i.l.bf16 %v3942_v48  ;;  %v3982_v31 = vpop.permute.xlu2 %3981  ;;  %2533 = vmatpush.bf16.msrb.mxu3 %v3206_v16  ;;  %2587 = vmatpush.bf16.msrb.mxu2 %v3210_v17 }
 0x568   :  { %v3984_v32 = vunpack.i.h.bf16 %v3982_v31  ;;  %v3983_v34 = vunpack.i.l.bf16 %v3982_v31 }
 0x569   :  { %v2005_v23 = vsel %vm5609_vm3, %v3948_v50, %v3949_v30  ;;  %v2006_v46 = vsel %vm5610_vm15, %v3949_v30, %v3948_v50  ;;  %v1999_v35 = vsel %vm5611_vm0, %v3943_v28, %v3944_v54  ;;  %v2000_v36 = vsel %vm5612_vm5, %v3944_v54, %v3943_v28  ;;  %vm5622_vm3 = vmmov %vm5621_vm13 }
 0x56a   :  { %v2008_v49 = vpack.c.bf16 %v2005_v23, %v2006_v46  ;;  %v2007_v22 = vpack.c.bf16 %v1999_v35, %v2000_v36  ;;  %v1967_v37 = vsel %vm5613_vm8, %v3983_v34, %v3984_v32  ;;  %v1968_v38 = vsel %vm5614_vm2, %v3984_v32, %v3983_v34 }
 0x56b   :  { %v1975_v39 = vpack.c.bf16 %v1967_v37, %v1968_v38  ;;  %v3189_v53 = vld [vmem:[#allocation2 + $0x40] sm:$0xf]  ;;  %v3422_v55 = vld [vmem:[#allocation2 + $0x44] sm:$0xf]  ;;  %vm5623_vm15 = vcmp.lt.s32.totalorder %v4409_v15, 109  ;;  %vm5625_vm5 = vcmp.lt.s32.totalorder %v4409_v15, 121 }
 0x56c   :  { %2010 = vst [vmem:[#allocation2 + $0x38] sm:$0xff] %v2008_v49  ;;  %v3425_v43 = vld [vmem:[#allocation2 + $0x54] sm:$0xf0]  ;;  %v3199_v44 = vld [vmem:[#allocation2 + $0x58] sm:$0xf0]  ;;  %v3190_v26 = vor.u32 %v3423_v1, %v3189_v53  ;;  %v3194_v3 = vor.u32 %v3422_v55, %v3191_v21  ;;  %vm5624_vm0 = vmmov %vm5623_vm15  ;;  %vm5627_vm2 = vcmp.lt.s32.totalorder %v4409_v15, 119 }
 0x56d   :  { %2009 = vst [vmem:[#allocation2 + $0x30] sm:$0xff] %v2007_v22  ;;  %v3198_v45 = vor.u32 %v3425_v43, %v3197_v40  ;;  %v3202_v47 = vor.u32 %v3424_v42, %v3199_v44  ;;  %vm5626_vm8 = vmmov %vm5625_vm5 }
 0x56e   :  { %1977 = vst [vmem:[#allocation2 + $0x10] sm:$0xff] %v1975_v39  ;;  %v3962_v25 = vpop.permute.xlu1 %3961  ;;  %v3957_v58 = vpop.permute.xlu0 %3956 }
 0x56f   :  { %v3964_v59 = vunpack.i.h.bf16 %v3962_v25  ;;  %v3963_v60 = vunpack.i.l.bf16 %v3962_v25  ;;  %v3959_v62 = vunpack.i.h.bf16 %v3957_v58  ;;  %v3958_v63 = vunpack.i.l.bf16 %v3957_v58  ;;  %v3997_v0 = vpop.permute.xlu2 %3996  ;;  %2534 = vmatpush.bf16.msrb.mxu3 %v3198_v45  ;;  %2588 = vmatpush.bf16.msrb.mxu2 %v3202_v47  ;;  %v3173_v47 = vld [vmem:[#allocation2 + $0x20] sm:$0xf]  ;;  %v3445_v25 = vld [vmem:[#allocation2 + $0xf4] sm:$0xf0]  ;;  %v3418_v58 = vld [vmem:[#allocation2 + $0x24] sm:$0xf] }
 0x570   :  { %v3999_v2 = vunpack.i.h.bf16 %v3997_v0  ;;  %v3998_v20 = vunpack.i.l.bf16 %v3997_v0 }
 0x571   :  { %v2185_v5 = vsel %vm5615_vm10, %v3963_v60, %v3964_v59  ;;  %v2186_v6 = vsel %vm5616_vm7, %v3964_v59, %v3963_v60  ;;  %v1989_v7 = vsel %vm5617_vm12, %v3958_v63, %v3959_v62  ;;  %v1990_v10 = vsel %vm5618_vm6, %v3959_v62, %v3958_v63  ;;  %vm5628_vm10 = vmmov %vm5627_vm2 }
 0x572   :  { %v2193_v11 = vpack.c.bf16 %v2186_v6, %v2185_v5  ;;  %v1992_v12 = vpack.c.bf16 %v1989_v7, %v1990_v10  ;;  %v2175_v14 = vsel %vm5619_vm9, %v3998_v20, %v3999_v2  ;;  %v2176_v16 = vsel %vm5620_vm4, %v3999_v2, %v3998_v20 }
 0x573   :  { %v2178_v17 = vpack.c.bf16 %v2176_v16, %v2175_v14  ;;  %2535 = vmatpush.bf16.msrb.mxu3 %v3190_v26  ;;  %2589 = vmatpush.bf16.msrb.mxu2 %v3194_v3  ;;  %v3421_v57 = vld [vmem:[#allocation2 + $0x34] sm:$0xf0]  ;;  %v3183_v48 = vld [vmem:[#allocation2 + $0x38] sm:$0xf0]  ;;  %vm5629_vm7 = vcmp.lt.s32.totalorder %v4409_v15, 16  ;;  %vm5631_vm6 = vcmp.lt.s32.totalorder %v4409_v15, 112 }
 0x574   :  { %2195 = vst [vmem:[#allocation2 + $0xf0] sm:$0xff] %v2193_v11  ;;  %v3181_v30 = vld [vmem:[#allocation2 + $0x30] sm:$0xf]  ;;  %v3420_v50 = vld [vmem:[#allocation2 + $0x34] sm:$0xf]  ;;  %vm5630_vm12 = vmmov %vm5629_vm7  ;;  %vm5633_vm4 = vcmp.lt.s32.totalorder %v4409_v15, 110 }
 0x575   :  { %1994 = vst [vmem:[#allocation2 + $0x28] sm:$0xff] %v1992_v12  ;;  %v3182_v54 = vor.u32 %v3421_v57, %v3181_v30  ;;  %v3186_v28 = vor.u32 %v3420_v50, %v3183_v48  ;;  %vm5632_vm9 = vmmov %vm5631_vm6 }
 0x576   :  { %2180 = vst [vmem:[#allocation2 + $0xe8] sm:$0xff] %v2178_v17  ;;  %v3977_v31 = vpop.permute.xlu1 %3976  ;;  %v3972_v32 = vpop.permute.xlu0 %3971 }
 0x577   :  { %v3979_v34 = vunpack.i.h.bf16 %v3977_v31  ;;  %v3978_v23 = vunpack.i.l.bf16 %v3977_v31  ;;  %v3974_v46 = vunpack.i.h.bf16 %v3972_v32  ;;  %v3973_v35 = vunpack.i.l.bf16 %v3972_v32  ;;  %v4012_v36 = vpop.permute.xlu2 %4011  ;;  %2536 = vmatpush.bf16.msrb.mxu3 %v3182_v54  ;;  %2590 = vmatpush.bf16.msrb.mxu2 %v3186_v28 }
 0x578   :  { %v4014_v49 = vunpack.i.h.bf16 %v4012_v36  ;;  %v4013_v22 = vunpack.i.l.bf16 %v4012_v36 }
 0x579   :  { %v2255_v37 = vsel %vm5621_vm13, %v3978_v23, %v3979_v34  ;;  %v2256_v38 = vsel %vm5622_vm3, %v3979_v34, %v3978_v23  ;;  %v2249_v39 = vsel %vm5623_vm15, %v3973_v35, %v3974_v46  ;;  %v2250_v40 = vsel %vm5624_vm0, %v3974_v46, %v3973_v35  ;;  %vm5634_vm13 = vmmov %vm5633_vm4 }
 0x57a   :  { %v2258_v42 = vpack.c.bf16 %v2256_v38, %v2255_v37  ;;  %v2257_v43 = vpack.c.bf16 %v2250_v40, %v2249_v39  ;;  %v2153_v44 = vsel %vm5625_vm5, %v4013_v22, %v4014_v49  ;;  %v2154_v45 = vsel %vm5626_vm8, %v4014_v49, %v4013_v22 }
 0x57b   :  { %v2161_v53 = vpack.c.bf16 %v2154_v45, %v2153_v44  ;;  %v3277_v55 = vld [vmem:[#allocation2 + $0xf0] sm:$0xf]  ;;  %vm5635_vm3 = vcmp.lt.s32.totalorder %v4409_v15, 111  ;;  %vm5637_vm0 = vcmp.lt.s32.totalorder %v4409_v15, 115  ;;  %vm5639_vm8 = vcmp.lt.s32.totalorder %v4409_v15, 113 }
 0x57c   :  { %2260 = vst [vmem:[#allocation2 + $0x138] sm:$0xff] %v2258_v42  ;;  %v3419_v59 = vld [vmem:[#allocation2 + $0x24] sm:$0xf0]  ;;  %v3278_v60 = vor.u32 %v3445_v25, %v3277_v55  ;;  %v3175_v62 = vld [vmem:[#allocation2 + $0x28] sm:$0xf0]  ;;  %vm5636_vm15 = vmmov %vm5635_vm3 }
 0x57d   :  { %2259 = vst [vmem:[#allocation2 + $0x130] sm:$0xff] %v2257_v43  ;;  %v3174_v63 = vor.u32 %v3419_v59, %v3173_v47  ;;  %v3178_v0 = vor.u32 %v3418_v58, %v3175_v62  ;;  %v3415_v42 = vld [vmem:[#allocation2 + $0x4] sm:$0xf0]  ;;  %vm5638_vm5 = vmmov %vm5637_vm0  ;;  %v3416_v55 = vld [vmem:[#allocation2 + $0x14] sm:$0xf] }
 0x57e   :  { %2163 = vst [vmem:[#allocation2 + $0xd0] sm:$0xff] %v2161_v53  ;;  %v3992_v1 = vpop.permute.xlu1 %3991  ;;  %v3987_v21 = vpop.permute.xlu0 %3986  ;;  %2550 = vmatpush.bf16.msra.mxu0 %v3278_v60  ;;  %v3165_v53 = vld [vmem:[#allocation2 + $0x10] sm:$0xf]  ;;  %v3159_v25 = vld [vmem:[#allocation2 + $0x8] sm:$0xf0] }
 0x57f   :  { %v3994_v2 = vunpack.i.h.bf16 %v3992_v1  ;;  %v3993_v20 = vunpack.i.l.bf16 %v3992_v1  ;;  %v3989_v26 = vunpack.i.h.bf16 %v3987_v21  ;;  %v3988_v3 = vunpack.i.l.bf16 %v3987_v21  ;;  %v4027_v5 = vpop.permute.xlu2 %4026  ;;  %2537 = vmatpush.bf16.msrb.mxu3 %v3174_v63  ;;  %2591 = vmatpush.bf16.msrb.mxu2 %v3178_v0  ;;  %v3443_v60 = vld [vmem:[#allocation2 + $0xe4] sm:$0xf0]  ;;  %v3157_v62 = vld [vmem:[#allocation2] sm:$0xf]  ;;  %v3414_v63 = vld [vmem:[#allocation2 + $0x4] sm:$0xf] }
 0x580   :  { %v4029_v6 = vunpack.i.h.bf16 %v4027_v5  ;;  %v4028_v7 = vunpack.i.l.bf16 %v4027_v5  ;;  %v3444_v0 = vld [vmem:[#allocation2 + $0xf4] sm:$0xf]  ;;  %v3412_v5 = vld [vmem:[#allocation10 + $0x8] sm:$0xf0] }
 0x581   :  { %v2169_v10 = vsel %vm5627_vm2, %v3993_v20, %v3994_v2  ;;  %v2170_v11 = vsel %vm5628_vm10, %v3994_v2, %v3993_v20  ;;  %v1973_v12 = vsel %vm5629_vm7, %v3988_v3, %v3989_v26  ;;  %v1974_v14 = vsel %vm5630_vm12, %v3989_v26, %v3988_v3  ;;  %v3145_v3 = vld [vmem:[#allocation10] sm:$0xf]  ;;  %vm5640_vm2 = vmmov %vm5639_vm8 }
 0x582   :  { %v2177_v16 = vpack.c.bf16 %v2170_v11, %v2169_v10  ;;  %v1976_v17 = vpack.c.bf16 %v1973_v12, %v1974_v14  ;;  %v2223_v57 = vsel %vm5631_vm6, %v4028_v7, %v4029_v6  ;;  %v2224_v48 = vsel %vm5632_vm9, %v4029_v6, %v4028_v7 }
 0x583   :  { %v2226_v30 = vpack.c.bf16 %v2224_v48, %v2223_v57  ;;  %v3453_v50 = vld [vmem:[#allocation2 + $0x134] sm:$0xf0]  ;;  %v3158_v10 = vor.u32 %v3415_v42, %v3157_v62  ;;  %v3162_v11 = vor.u32 %v3414_v63, %v3159_v25  ;;  %v3279_v48 = vld [vmem:[#allocation2 + $0xf8] sm:$0xf0]  ;;  %vm5641_vm10 = vcmp.lt.s32.totalorder %v4409_v15, 120 }
 0x584   :  { %2179 = vst [vmem:[#allocation2 + $0xe0] sm:$0xff] %v2177_v16  ;;  %v3309_v54 = vld [vmem:[#allocation2 + $0x130] sm:$0xf]  ;;  %vm5642_vm7 = vmmov %vm5641_vm10  ;;  %vm5643_vm12 = vcmp.lt.s32.totalorder %v4409_v15, 124  ;;  %v3271_v42 = vld [vmem:[#allocation2 + $0xe8] sm:$0xf0] }
 0x585   :  { %1978 = vst [vmem:[#allocation2 + $0x18] sm:$0xff] %v1976_v17  ;;  %v3310_v28 = vor.u32 %v3453_v50, %v3309_v54  ;;  %v3282_v54 = vor.u32 %v3444_v0, %v3279_v48  ;;  %vm5644_vm6 = vmmov %vm5643_vm12  ;;  %vm5645_vm9 = vcmp.lt.s32.totalorder %v4409_v15, 122 }
 0x586   :  { %2228 = vst [vmem:[#allocation2 + $0x118] sm:$0xff] %v2226_v30  ;;  %v4007_v31 = vpop.permute.xlu1 %4006  ;;  %v4002_v32 = vpop.permute.xlu0 %4001 }
 0x587   :  { %v4009_v34 = vunpack.i.h.bf16 %v4007_v31  ;;  %v4008_v23 = vunpack.i.l.bf16 %v4007_v31  ;;  %v4004_v46 = vunpack.i.h.bf16 %v4002_v32  ;;  %v4003_v35 = vunpack.i.l.bf16 %v4002_v32  ;;  %2572 = vmatpush.bf16.msra.mxu1 %v3310_v28  ;;  %v4042_v36 = vpop.permute.xlu2 %4041 }
 0x588   :  { %v4044_v49 = vunpack.i.h.bf16 %v4042_v36  ;;  %v4043_v22 = vunpack.i.l.bf16 %v4042_v36  ;;  %v3146_v28 = vor.u32 %v3412_v5, %v3145_v3  ;;  %v3261_v3 = vld [vmem:[#allocation2 + $0xd0] sm:$0xf]  ;;  %v3440_v5 = vld [vmem:[#allocation2 + $0xd4] sm:$0xf] }
 0x589   :  { %v2239_v37 = vsel %vm5633_vm4, %v4008_v23, %v4009_v34  ;;  %v2240_v38 = vsel %vm5634_vm13, %v4009_v34, %v4008_v23  ;;  %v2233_v39 = vsel %vm5635_vm3, %v4003_v35, %v4004_v46  ;;  %v2234_v40 = vsel %vm5636_vm15, %v4004_v46, %v4003_v35  ;;  %vm5646_vm4 = vmmov %vm5645_vm9 }
 0x58a   :  { %v2242_v43 = vpack.c.bf16 %v2240_v38, %v2239_v37  ;;  %v2241_v44 = vpack.c.bf16 %v2234_v40, %v2233_v39  ;;  %v2201_v45 = vsel %vm5637_vm0, %v4043_v22, %v4044_v49  ;;  %v2202_v47 = vsel %vm5638_vm5, %v4044_v49, %v4043_v22 }
 0x58b   :  { %v2209_v58 = vpack.c.bf16 %v2202_v47, %v2201_v45  ;;  %v3269_v59 = vld [vmem:[#allocation2 + $0xe0] sm:$0xf]  ;;  %v3442_v38 = vld [vmem:[#allocation2 + $0xe4] sm:$0xf]  ;;  %vm5647_vm13 = vcmp.lt.s32.totalorder %v4409_v15, 123  ;;  %vm5649_vm15 = vcmp.lt.s32.totalorder %v4409_v15, 1 }
 0x58c   :  { %2244 = vst [vmem:[#allocation2 + $0x128] sm:$0xff] %v2242_v43  ;;  %v3417_v1 = vld [vmem:[#allocation2 + $0x14] sm:$0xf0]  ;;  %v3270_v21 = vor.u32 %v3443_v60, %v3269_v59  ;;  %v3167_v2 = vld [vmem:[#allocation2 + $0x18] sm:$0xf0]  ;;  %v3274_v45 = vor.u32 %v3442_v38, %v3271_v42  ;;  %vm5648_vm3 = vmmov %vm5647_vm13  ;;  %vm5651_vm5 = vcmp.lt.s32.totalorder %v4409_v15, 125 }
 0x58d   :  { %2243 = vst [vmem:[#allocation2 + $0x120] sm:$0xff] %v2241_v44  ;;  %v3166_v20 = vor.u32 %v3417_v1, %v3165_v53  ;;  %v3170_v26 = vor.u32 %v3416_v55, %v3167_v2  ;;  %vm5650_vm0 = vmmov %vm5649_vm15 }
 0x58e   :  { %2211 = vst [vmem:[#allocation2 + $0x100] sm:$0xff] %v2209_v58  ;;  %v4022_v6 = vpop.permute.xlu1 %4021  ;;  %v4017_v7 = vpop.permute.xlu0 %4016  ;;  %2551 = vmatpush.bf16.msra.mxu0 %v3270_v21 }
 0x58f   :  { %v4024_v12 = vunpack.i.h.bf16 %v4022_v6  ;;  %v4023_v14 = vunpack.i.l.bf16 %v4022_v6  ;;  %v4019_v16 = vunpack.i.h.bf16 %v4017_v7  ;;  %v4018_v17 = vunpack.i.l.bf16 %v4017_v7  ;;  %v4057_v57 = vpop.permute.xlu2 %4056  ;;  %2538 = vmatpush.bf16.msrb.mxu3 %v3166_v20  ;;  %2592 = vmatpush.bf16.msrb.mxu2 %v3170_v26 }
 0x590   :  { %v4059_v30 = vunpack.i.h.bf16 %v4057_v57  ;;  %v4058_v50 = vunpack.i.l.bf16 %v4057_v57 }
 0x591   :  { %v2217_v31 = vsel %vm5639_vm8, %v4023_v14, %v4024_v12  ;;  %v2218_v32 = vsel %vm5640_vm2, %v4024_v12, %v4023_v14  ;;  %v2159_v34 = vsel %vm5641_vm10, %v4018_v17, %v4019_v16  ;;  %v2160_v23 = vsel %vm5642_vm7, %v4019_v16, %v4018_v17  ;;  %vm5652_vm8 = vmmov %vm5651_vm5 }
 0x592   :  { %v2225_v46 = vpack.c.bf16 %v2218_v32, %v2217_v31  ;;  %v2162_v35 = vpack.c.bf16 %v2160_v23, %v2159_v34  ;;  %v2127_v36 = vsel %vm5643_vm12, %v4058_v50, %v4059_v30  ;;  %v2128_v49 = vsel %vm5644_vm6, %v4059_v30, %v4058_v50 }
 0x593   :  { %v2130_v22 = vpack.c.bf16 %v2128_v49, %v2127_v36  ;;  %2539 = vmatpush.bf16.msrb.mxu3 %v3158_v10  ;;  %2593 = vmatpush.bf16.msrb.mxu2 %v3162_v11  ;;  %v3451_v37 = vld [vmem:[#allocation2 + $0x124] sm:$0xf0]  ;;  %v3449_v10 = vld [vmem:[#allocation2 + $0x114] sm:$0xf0]  ;;  %vm5653_vm2 = vcmp.lt.s32.totalorder %v4409_v15, 114  ;;  %vm5655_vm7 = vcmp.lt.s32.totalorder %v4409_v15, 126 }
 0x594   :  { %2227 = vst [vmem:[#allocation2 + $0x110] sm:$0xff] %v2225_v46  ;;  %v3301_v39 = vld [vmem:[#allocation2 + $0x120] sm:$0xf]  ;;  %v5287_v11 = vld [vmem:[#allocation10 + $0x18] sm:$0xff]  ;;  %vm5654_vm10 = vmmov %vm5653_vm2  ;;  %vm5657_vm6 = vcmp.lt.s32.totalorder %v4409_v15, 2 }
 0x595   :  { %2164 = vst [vmem:[#allocation2 + $0xd8] sm:$0xff] %v2162_v35  ;;  %v3302_v40 = vor.u32 %v3451_v37, %v3301_v39  ;;  %v2313_v50 = vunpack.c.l.b16 %v5287_v11  ;;  %vm5656_vm12 = vmmov %vm5655_vm7 }
 0x596   :  { %2132 = vst [vmem:[#allocation2 + $0xb8] sm:$0xff] %v2130_v22  ;;  %v4037_v43 = vpop.permute.xlu1 %4036  ;;  %v4032_v44 = vpop.permute.xlu0 %4031  ;;  %2540 = vmatmul.bf16.vlgmr.msrb.gmra.mxu3 %v3146_v28  ;;  %2594 = vmatmul.bf16.vlgmr.msrb.gmra.mxu2 %v3146_v28 }
 0x597   :  { %2604 = vmatpush.bf16.msra.mxu3 %v3282_v54  ;;  %v4039_v47 = vunpack.i.h.bf16 %v4037_v43  ;;  %v4038_v53 = vunpack.i.l.bf16 %v4037_v43  ;;  %v4034_v55 = vunpack.i.h.bf16 %v4032_v44  ;;  %v4033_v25 = vunpack.i.l.bf16 %v4032_v44  ;;  %2573 = vmatpush.bf16.msra.mxu1 %v3302_v40  ;;  %v4072_v58 = vpop.permute.xlu2 %4071 }
 0x598   :  { %v4074_v59 = vunpack.i.h.bf16 %v4072_v58  ;;  %v4073_v60 = vunpack.i.l.bf16 %v4072_v58  ;;  %v2319_v22 = vpack.c.b16 %v2313_v50, %v2313_v50 }
 0x599   :  { %v2143_v62 = vsel %vm5645_vm9, %v4038_v53, %v4039_v47  ;;  %v2144_v63 = vsel %vm5646_vm4, %v4039_v47, %v4038_v53  ;;  %v2137_v0 = vsel %vm5647_vm13, %v4033_v25, %v4034_v55  ;;  %v2138_v1 = vsel %vm5648_vm3, %v4034_v55, %v4033_v25  ;;  %vm5658_vm9 = vmmov %vm5657_vm6 }
 0x59a   :  { %v2146_v21 = vpack.c.bf16 %v2144_v63, %v2143_v62  ;;  %v2145_v2 = vpack.c.bf16 %v2138_v1, %v2137_v0  ;;  %v2095_v20 = vsel %vm5649_vm15, %v4073_v60, %v4074_v59  ;;  %v2096_v26 = vsel %vm5650_vm0, %v4074_v59, %v4073_v60  ;;  %v3452_v0 = vld [vmem:[#allocation2 + $0x134] sm:$0xf]  ;;  %v3311_v1 = vld [vmem:[#allocation2 + $0x138] sm:$0xf0]  ;;  %vm5661_vm3 = vmmov %vm5650_vm0 }
 0x59b   :  { %2605 = vmatpush.bf16.msra.mxu3 %v3274_v45  ;;  %v2097_v6 = vpack.c.bf16 %v2095_v20, %v2096_v26  ;;  %v3293_v7 = vld [vmem:[#allocation2 + $0x110] sm:$0xf]  ;;  %v3153_v26 = vld [vmem:[#allocation10 + $0x8] sm:$0xf]  ;;  %vm5659_vm4 = vcmp.lt.s32.totalorder %v4409_v15, 3  ;;  %vm5662_vm15 = vmmov %vm5650_vm0 }
 0x59c   :  { %2148 = vst [vmem:[#allocation2 + $0xc8] sm:$0xff] %v2146_v21  ;;  %v3441_v12 = vld [vmem:[#allocation2 + $0xd4] sm:$0xf0]  ;;  %v3294_v14 = vor.u32 %v3449_v10, %v3293_v7  ;;  %v3263_v16 = vld [vmem:[#allocation2 + $0xd8] sm:$0xf0]  ;;  %vm5660_vm13 = vmmov %vm5659_vm4 }
 0x59d   :  { %2147 = vst [vmem:[#allocation2 + $0xc0] sm:$0xff] %v2145_v2  ;;  %v3262_v17 = vor.u32 %v3441_v12, %v3261_v3  ;;  %v3266_v57 = vor.u32 %v3440_v5, %v3263_v16  ;;  %v3437_v20 = vld [vmem:[#allocation2 + $0xb4] sm:$0xf0]  ;;  %v3413_v3 = vld [vmem:[#allocation10 + $0x10] sm:$0xf0] }
 0x59e   :  { %2099 = vst [vmem:[#allocation2 + $0x90] sm:$0xff] %v2097_v6  ;;  %v4052_v48 = vpop.permute.xlu1 %4051  ;;  %v4047_v30 = vpop.permute.xlu0 %4046  ;;  %2574 = vmatpush.bf16.msra.mxu1 %v3294_v14  ;;  %v3247_v7 = vld [vmem:[#allocation2 + $0xb8] sm:$0xf0]  ;;  %v3285_v12 = vld [vmem:[#allocation2 + $0x100] sm:$0xf]  ;;  %v5308_v50 = vor.u32 %v3413_v3, %v3153_v26 }
 0x59f   :  { %v4054_v54 = vunpack.i.h.bf16 %v4052_v48  ;;  %v4053_v28 = vunpack.i.l.bf16 %v4052_v48  ;;  %v4049_v31 = vunpack.i.h.bf16 %v4047_v30  ;;  %v4048_v32 = vunpack.i.l.bf16 %v4047_v30  ;;  %2552 = vmatpush.bf16.msra.mxu0 %v3262_v17  ;;  %2606 = vmatpush.bf16.msra.mxu3 %v3266_v57  ;;  %v5298_v42 = vpop.permute.xlu2 %2654  ;;  %v3231_v26 = vld [vmem:[#allocation2 + $0x98] sm:$0xf0] }
 0x5a0   :  { %v3314_v30 = vor.u32 %v3452_v0, %v3311_v1  ;;  %v2662_v0 = vsel %vm5661_vm3, %v5139_v33, %v5117_v24  ;;  %v2659_v3 = vsel %vm5650_vm0, %v5141_v51, %v5298_v42 }
 0x5a1   :  { %v2121_v34 = vsel %vm5651_vm5, %v4053_v28, %v4054_v54  ;;  %v2122_v23 = vsel %vm5652_vm8, %v4054_v54, %v4053_v28  ;;  %v2207_v46 = vsel %vm5653_vm2, %v4048_v32, %v4049_v31  ;;  %v2208_v35 = vsel %vm5654_vm10, %v4049_v31, %v4048_v32  ;;  %vm5663_vm5 = vmmov %vm5650_vm0 }
 0x5a2   :  { %v2129_v36 = vpack.c.bf16 %v2122_v23, %v2121_v34  ;;  %v2210_v49 = vpack.c.bf16 %v2208_v35, %v2207_v46  ;;  %v3450_v23 = vld [vmem:[#allocation2 + $0x124] sm:$0xf]  ;;  %v3303_v46 = vld [vmem:[#allocation2 + $0x128] sm:$0xf0]  ;;  %vm5664_vm8 = vmmov %vm5650_vm0 }
 0x5a3   :  { %v3439_v37 = vld [vmem:[#allocation2 + $0xc4] sm:$0xf0]  ;;  %v3255_v38 = vld [vmem:[#allocation2 + $0xc8] sm:$0xf0]  ;;  %vm5665_vm2 = vmmov %vm5650_vm0 }
 0x5a4   :  { %2131 = vst [vmem:[#allocation2 + $0xb0] sm:$0xff] %v2129_v36  ;;  %v3253_v39 = vld [vmem:[#allocation2 + $0xc0] sm:$0xf]  ;;  %v3438_v40 = vld [vmem:[#allocation2 + $0xc4] sm:$0xf]  ;;  %vm5666_vm10 = vmmov %vm5650_vm0 }
 0x5a5   :  { %2212 = vst [vmem:[#allocation2 + $0x108] sm:$0xff] %v2210_v49  ;;  %v3254_v43 = vor.u32 %v3439_v37, %v3253_v39  ;;  %v3258_v44 = vor.u32 %v3438_v40, %v3255_v38  ;;  %v3306_v39 = vor.u32 %v3450_v23, %v3303_v46 }
 0x5a6   :  { %v4067_v45 = vpop.permute.xlu1 %4066  ;;  %v4062_v47 = vpop.permute.xlu0 %4061  ;;  %2545 = vmatmul.bf16.gmra.mxu3 %v2319_v22  ;;  %2599 = vmatmul.bf16.gmra.mxu2 %v2319_v22 }
 0x5a7   :  { %v4069_v53 = vunpack.i.h.bf16 %v4067_v45  ;;  %v4068_v55 = vunpack.i.l.bf16 %v4067_v45  ;;  %v4064_v25 = vunpack.i.h.bf16 %v4062_v47  ;;  %v4063_v58 = vunpack.i.l.bf16 %v4062_v47  ;;  %2553 = vmatpush.bf16.msra.mxu0 %v3254_v43  ;;  %2607 = vmatpush.bf16.msra.mxu3 %v3258_v44  ;;  %v2685_v54 = vpop.permute.xlu2 %2684  ;;  %v3448_v44 = vld [vmem:[#allocation2 + $0x114] sm:$0xf] }
 0x5a9   :  { %v2111_v59 = vsel %vm5655_vm7, %v4068_v55, %v4069_v53  ;;  %v2112_v60 = vsel %vm5656_vm12, %v4069_v53, %v4068_v55  ;;  %v2105_v62 = vsel %vm388_vm11, %v4063_v58, %v4064_v25  ;;  %v2106_v63 = vsel %vm388_vm11, %v4064_v25, %v4063_v58  ;;  %v3295_v25 = vld [vmem:[#allocation2 + $0x118] sm:$0xf0]  ;;  %vm5667_vm7 = vmmov %vm5650_vm0 }
 0x5aa   :  { %v2114_v21 = vpack.c.bf16 %v2112_v60, %v2111_v59  ;;  %v2113_v2 = vpack.c.bf16 %v2106_v63, %v2105_v62  ;;  %v3298_v60 = vor.u32 %v3448_v44, %v3295_v25  ;;  %v3229_v62 = vld [vmem:[#allocation2 + $0x90] sm:$0xf]  ;;  %v3432_v63 = vld [vmem:[#allocation2 + $0x94] sm:$0xf] }
 0x5ab   :  { %v3245_v5 = vld [vmem:[#allocation2 + $0xb0] sm:$0xf]  ;;  %v3436_v6 = vld [vmem:[#allocation2 + $0xb4] sm:$0xf] }
 0x5ac   :  { %2116 = vst [vmem:[#allocation2 + $0xa8] sm:$0xff] %v2114_v21  ;;  %v3246_v10 = vor.u32 %v3437_v20, %v3245_v5  ;;  %v3447_v14 = vld [vmem:[#allocation2 + $0x104] sm:$0xf0]  ;;  %v3250_v16 = vor.u32 %v3436_v6, %v3247_v7  ;;  %v3287_v1 = vld [vmem:[#allocation2 + $0x108] sm:$0xf0]  ;;  %v2663_v5 = vsel %vm5663_vm5, %v5298_v42, %v5141_v51 }
 0x5ad   :  { %2115 = vst [vmem:[#allocation2 + $0xa0] sm:$0xff] %v2113_v2  ;;  %v3286_v17 = vor.u32 %v3447_v14, %v3285_v12  ;;  %v1912_v21 = vld [vmem:[#allocation10 + $0x20] sm:$0xf]  ;;  %v2658_v2 = vsel %vm5662_vm15, %v5117_v24, %v5139_v33  ;;  %v3433_v20 = vld [vmem:[#allocation2 + $0x94] sm:$0xf0]  ;;  %v2668_v14 = vadd.f32 %v2662_v0, %v4642_v56 }
 0x5ae   :  { %v4082_v57 = vpop.permute.xlu1 %4081  ;;  %v4077_v48 = vpop.permute.xlu0 %4076  ;;  %2554 = vmatpush.bf16.msra.mxu0 %v3246_v10  ;;  %2608 = vmatpush.bf16.msra.mxu3 %v3250_v16  ;;  %v3230_v7 = vor.u32 %v3433_v20, %v3229_v62  ;;  %v3234_v10 = vor.u32 %v3432_v63, %v3231_v26  ;;  %v3446_v12 = vld [vmem:[#allocation2 + $0x104] sm:$0xf]  ;;  %v3411_v16 = vld [vmem:[#allocation10 + $0x4] sm:$0xf] }
 0x5af   :  { %v4084_v28 = vunpack.i.h.bf16 %v4082_v57  ;;  %v4083_v31 = vunpack.i.l.bf16 %v4082_v57  ;;  %v4079_v32 = vunpack.i.h.bf16 %v4077_v48  ;;  %v4078_v34 = vunpack.i.l.bf16 %v4077_v48  ;;  %2575 = vmatpush.bf16.msra.mxu1 %v3286_v17  ;;  %v2643_v6 = vpop.permute.xlu2 %2642 }
 0x5b0   :  { %v3290_v33 = vor.u32 %v3446_v12, %v3287_v1  ;;  %v2315_v17 = vunpack.c.l.b16 %v1912_v21  ;;  %v2669_v57 = vadd.f32 %v2658_v2, %v4639_v52  ;;  %v2314_v21 = vunpack.c.h.b16 %v5287_v11 }
 0x5b1   :  { %v2085_v35 = vsel %vm5657_vm6, %v4083_v31, %v4084_v28  ;;  %v2086_v36 = vsel %vm5658_vm9, %v4084_v28, %v4083_v31  ;;  %v2079_v49 = vsel %vm5659_vm4, %v4078_v34, %v4079_v32  ;;  %v2080_v22 = vsel %vm5660_vm13, %v4079_v32, %v4078_v34 }
 0x5b2   :  { %v2088_v37 = vpack.c.bf16 %v2085_v35, %v2086_v36  ;;  %v2087_v38 = vpack.c.bf16 %v2079_v49, %v2080_v22  ;;  %3315 = vmatmul.msk.bf16.vlgmr.msra.gmra.mxu1 %vm829_vm14, %v5308_v50  ;;  %v2670_v28 = vadd.f32 %v2663_v5, %v4642_v56  ;;  %v2671_v31 = vadd.f32 %v2659_v3, %v4639_v52 }
 0x5b3   :  { %2626 = vmatpush.bf16.msrb.mxu1 %v3314_v30  ;;  %v3435_v40 = vld [vmem:[#allocation2 + $0xa4] sm:$0xf0]  ;;  %v3239_v43 = vld [vmem:[#allocation2 + $0xa8] sm:$0xf0]  ;;  %v3147_v30 = vld [vmem:[#allocation10 + $0xc] sm:$0xf0]  ;;  %v2708_v36 = vmax.f32 %v5042_v61, %v2668_v14 }
 0x5b4   :  { %2090 = vst [vmem:[#allocation2 + $0x88] sm:$0xff] %v2088_v37  ;;  %v3237_v45 = vld [vmem:[#allocation2 + $0xa0] sm:$0xf]  ;;  %v3434_v47 = vld [vmem:[#allocation2 + $0xa4] sm:$0xf]  ;;  %v3150_v37 = vor.u32 %v3411_v16, %v3147_v30  ;;  %v2710_v44 = vmax.f32 %v5063_v19, %v2670_v28  ;;  %v2711_v61 = vmax.f32 %v5050_v29, %v2671_v31 }
 0x5b5   :  { %2089 = vst [vmem:[#allocation2 + $0x80] sm:$0xff] %v2087_v38  ;;  %v3238_v53 = vor.u32 %v3435_v40, %v3237_v45  ;;  %v3242_v55 = vor.u32 %v3434_v47, %v3239_v43  ;;  %v2321_v38 = vpack.c.b16 %v2315_v17, %v2315_v17  ;;  %v1913_v30 = vld [vmem:[%s5427_s9] sm:$0xf] }
 0x5b6   :  { %v2679_v58 = vpop.permute.xlu1 %2678  ;;  %v2677_v59 = vpop.permute.xlu0 %2676 }
 0x5b7   :  { %2627 = vmatpush.bf16.msrb.mxu1 %v3306_v39  ;;  %2555 = vmatpush.bf16.msra.mxu0 %v3238_v53  ;;  %v2690_v24 = vsel %vm388_vm11, %v2677_v59, %v2685_v54  ;;  %v2694_v48 = vsel %vm388_vm11, %v2685_v54, %v2677_v59  ;;  %v2709_v39 = vmax.f32 %v5047_v4, %v2669_v57  ;;  %v2673_v59 = vpop.permute.xlu2 %2672 }
 0x5b8   :  { %2609 = vmatpush.bf16.msra.mxu3 %v3242_v55  ;;  %v2700_v23 = vadd.f32 %v2690_v24, %v4655_v8  ;;  %v2701_v54 = vadd.f32 %v2694_v48, %v4658_v9 }
 0x5ba   :  { %v2716_v53 = vmax.f32 %v2708_v36, %v2700_v23  ;;  %v2717_v55 = vmax.f32 %v2709_v39, %v2701_v54 }
 0x5bb   :  { %2628 = vmatpush.bf16.msrb.mxu1 %v3298_v60  ;;  %2556 = vmatpush.bf16.msra.mxu0 %v3230_v7  ;;  %v3431_v51 = vld [vmem:[#allocation2 + $0x84] sm:$0xf0]  ;;  %v3223_v42 = vld [vmem:[#allocation2 + $0x88] sm:$0xf0]  ;;  %v2320_v7 = vpack.c.b16 %v2314_v21, %v2314_v21 }
 0x5bc   :  { %2610 = vmatpush.bf16.msra.mxu3 %v3234_v10  ;;  %v3221_v32 = vld [vmem:[#allocation2 + $0x80] sm:$0xf]  ;;  %v3430_v34 = vld [vmem:[#allocation2 + $0x84] sm:$0xf] }
 0x5bd   :  { %v3222_v46 = vor.u32 %v3431_v51, %v3221_v32  ;;  %v3226_v35 = vor.u32 %v3430_v34, %v3223_v42 }
 0x5be   :  { %v2641_v49 = vpop.permute.xlu1 %2640  ;;  %v2687_v22 = vpop.permute.xlu0 %2686 }
 0x5bf   :  { %2629 = vmatpush.bf16.msrb.mxu1 %v3290_v33  ;;  %v2691_v40 = vsel %vm388_vm11, %v2679_v58, %v2687_v22  ;;  %v2695_v43 = vsel %vm388_vm11, %v2687_v22, %v2679_v58  ;;  %2557 = vmatpush.bf16.msra.mxu0 %v3222_v46  ;;  %v2683_v5 = vpop.permute.xlu2 %2682 }
 0x5c0   :  { %2611 = vmatpush.bf16.msra.mxu3 %v3226_v35  ;;  %v2702_v45 = vadd.f32 %v2691_v40, %v4655_v8  ;;  %v2703_v47 = vadd.f32 %v2695_v43, %v4658_v9 }
 0x5c2   :  { %v2718_v25 = vmax.f32 %v2710_v44, %v2702_v45  ;;  %v2719_v4 = vmax.f32 %v2711_v61, %v2703_v47  ;;  %2558 = vmatmul.bf16.vlgmr.msra.gmra.mxu0 %v3150_v37  ;;  %3316 = vmatmul.msk.bf16.gmra.mxu1 %vm829_vm14, %v2321_v38 }
 0x5c3   :  { %2612 = vmatmul.bf16.vlgmr.msra.gmra.mxu3 %v3150_v37 }
 0x5c4   :  { %v2722_v58 = vpack.c.bf16 %v2718_v25, %v2716_v53  ;;  %v2723_v60 = vpack.c.bf16 %v2719_v4, %v2717_v55 }
 0x5c6   :  { %v2651_v62 = vpop.permute.xlu1 %2650  ;;  %v2649_v63 = vpop.permute.xlu0 %2648  ;;  %2733 = vmatpush.bf16.msrb.mxu0 %v2722_v58  ;;  %2746 = vmatpush.bf16.msra.mxu2 %v2723_v60 }
 0x5c7   :  { %v2657_v29 = vsel %vm5664_vm8, %v2643_v6, %v2651_v62  ;;  %v2661_v19 = vsel %vm5665_vm2, %v2651_v62, %v2643_v6  ;;  %v2656_v0 = vsel %vm5666_vm10, %v2641_v49, %v2649_v63  ;;  %v2660_v1 = vsel %vm5667_vm7, %v2649_v63, %v2641_v49 }
 0x5c8   :  { %v2666_v2 = vadd.f32 %v2661_v19, %v4642_v56  ;;  %v2667_v20 = vadd.f32 %v2657_v29, %v4639_v52  ;;  %v2664_v26 = vadd.f32 %v2660_v1, %v4642_v56  ;;  %v2665_v3 = vadd.f32 %v2656_v0, %v4639_v52 }
 0x5ca   :  { %v2706_v6 = vmax.f32 %v5066_v27, %v2666_v2  ;;  %v2707_v10 = vmax.f32 %v5055_v13, %v2667_v20  ;;  %v2704_v12 = vmax.f32 %v5075_v41, %v2664_v26  ;;  %v2705_v14 = vmax.f32 %v5060_v18, %v2665_v3 }
 0x5ce   :  { %v2681_v24 = vpop.permute.xlu1 %2680  ;;  %v2675_v11 = vpop.permute.xlu0 %2674 }
 0x5cf   :  { %v2688_v33 = vsel %vm388_vm11, %v2673_v59, %v2681_v24  ;;  %v2692_v56 = vsel %vm388_vm11, %v2681_v24, %v2673_v59  ;;  %v2689_v52 = vsel %vm388_vm11, %v2675_v11, %v2683_v5  ;;  %v2693_v27 = vsel %vm388_vm11, %v2683_v5, %v2675_v11 }
 0x5d0   :  { %v2696_v13 = vadd.f32 %v2688_v33, %v4655_v8  ;;  %v2697_v41 = vadd.f32 %v2692_v56, %v4658_v9  ;;  %v2698_v18 = vadd.f32 %v2689_v52, %v4655_v8  ;;  %v2699_v16 = vadd.f32 %v2693_v27, %v4658_v9 }
 0x5d2   :  { %v2712_v17 = vmax.f32 %v2704_v12, %v2696_v13  ;;  %v2713_v57 = vmax.f32 %v2705_v14, %v2697_v41  ;;  %v2714_v48 = vmax.f32 %v2706_v6, %v2698_v18  ;;  %v2715_v51 = vmax.f32 %v2707_v10, %v2699_v16  ;;  %3317 = vmatmul.msk.bf16.vlgmr.msrb.gmra.mxu1 %vm829_vm14, %v5308_v50 }
 0x5d3   :  { %2563 = vmatmul.bf16.gmra.mxu0 %v2320_v7  ;;  %2617 = vmatmul.bf16.gmra.mxu3 %v2320_v7 }
 0x5d4   :  { %v2720_v42 = vpack.c.bf16 %v2714_v48, %v2712_v17  ;;  %v2721_v15 = vpack.c.bf16 %v2715_v51, %v2713_v57 }
 0x5d6   :  { %2734 = vmatpush.bf16.msrb.mxu0 %v2720_v42  ;;  %2747 = vmatpush.bf16.msra.mxu2 %v2721_v15 }
 0x5d9   :  { %3320 = vmatmul.msk.bf16.vlgmr.msra.gmra.mxu2 %vm1054_vm1, %v1913_v30 }
 0x5e2   :  { %3318 = vmatmul.msk.bf16.gmra.mxu1 %vm829_vm14, %v2321_v38 }
 0x5e3   :  { %3319 = vmatmul.msk.bf16.vlgmr.msrb.gmra.mxu0 %vm1054_vm1, %v1913_v30 }
 0x619   :  { %v2541_v8 = vpop.f32.mrf.mxu3  ;;  %v2595_v9 = vpop.f32.mrf.mxu2 }
 0x621   :  { %v2543_v28 = vpop.f32.mrf.mxu3  ;;  %v2597_v50 = vpop.f32.mrf.mxu2 }
 0x629   :  { %v2546_v31 = vpop.f32.mrf.mxu3  ;;  %v2600_v34 = vpop.f32.mrf.mxu2 }
 0x62f   :  { %v2577_v32 = vpop.f32.mrf.mxu1 }
 0x631   :  { %v2548_v23 = vpop.f32.mrf.mxu3  ;;  %v2602_v35 = vpop.f32.mrf.mxu2 }
 0x637   :  { %v2579_v46 = vpop.f32.mrf.mxu1 }
 0x63f   :  { %v2559_v36 = vpop.f32.mrf.mxu0  ;;  %v2582_v54 = vpop.f32.mrf.mxu1 }
 0x640   :  { %v2560_v49 = vadd.f32 %v2559_v36, %v2541_v8 }
 0x642   :  { %v2578_v22 = vadd.f32 %v2577_v32, %v2560_v49 }
 0x644   :  { %v2753_v37 = vmax.f32 %v2578_v22, 0.0 }
 0x646   :  { %2761 = vst [vmem:[%s5428_s10] sm:$0xff] %v2753_v37  ;;  %v2613_v38 = vpop.f32.mrf.mxu3 }
 0x647   :  { %v2561_v39 = vpop.f32.mrf.mxu0  ;;  %v2584_v40 = vpop.f32.mrf.mxu1  ;;  %v2614_v45 = vadd.f32 %v2613_v38, %v2595_v9 }
 0x648   :  { %v2562_v43 = vadd.f32 %v2561_v39, %v2543_v28 }
 0x64a   :  { %v2580_v44 = vadd.f32 %v2579_v46, %v2562_v43 }
 0x64c   :  { %v2755_v61 = vmax.f32 %v2580_v44, 0.0 }
 0x64e   :  { %2762 = vst [vmem:[%s5428_s10 + $0x8] sm:$0xff] %v2755_v61  ;;  %v2615_v47 = vpop.f32.mrf.mxu3 }
 0x64f   :  { %v2631_v53 = vpop.f32.mrf.mxu1  ;;  %v2616_v62 = vadd.f32 %v2615_v47, %v2597_v50 }
 0x650   :  { %v2632_v55 = vadd.f32 %v2631_v53, %v2614_v45  ;;  %v2564_v25 = vpop.f32.mrf.mxu0 }
 0x651   :  { %v2565_v4 = vadd.f32 %v2564_v25, %v2546_v31 }
 0x652   :  { %v2754_v59 = vmax.f32 %v2632_v55, 0.0 }
 0x653   :  { %v2583_v58 = vadd.f32 %v2582_v54, %v2565_v4 }
 0x654   :  { %3321 = vst [vmem:[%s5428_s10 + $0x20] sm:$0xff] %v2754_v59 }
 0x655   :  { %v2757_v60 = vmax.f32 %v2583_v58, 0.0 }
 0x656   :  { %v2618_v63 = vpop.f32.mrf.mxu3 }
 0x657   :  { %2763 = vst [vmem:[%s5428_s10 + $0x10] sm:$0xff] %v2757_v60  ;;  %v2633_v29 = vpop.f32.mrf.mxu1  ;;  %v2619_v20 = vadd.f32 %v2618_v63, %v2600_v34 }
 0x658   :  { %v2634_v19 = vadd.f32 %v2633_v29, %v2616_v62  ;;  %v2566_v0 = vpop.f32.mrf.mxu0 }
 0x65a   :  { %v2756_v1 = vmax.f32 %v2634_v19, 0.0 }
 0x65c   :  { %3322 = vst [vmem:[%s5428_s10 + $0x28] sm:$0xff] %v2756_v1  ;;  %v2749_v21 = vpop.f32.mrf.mxu2 }
 0x65d   :  { %v2760_v2 = vmax.f32 %v2749_v21, 0.0 }
 0x65e   :  { %v2620_v26 = vpop.f32.mrf.mxu3 }
 0x65f   :  { %v2636_v3 = vpop.f32.mrf.mxu1  ;;  %3324 = vst [vmem:[%s5428_s10 + $0x38] sm:$0xff] %v2760_v2 }
 0x660   :  { %v2637_v5 = vadd.f32 %v2636_v3, %v2619_v20  ;;  %v2736_v7 = vpop.f32.mrf.mxu0 }
 0x661   :  { %v2759_v6 = vmax.f32 %v2736_v7, 0.0 }
 0x662   :  { %v2758_v10 = vmax.f32 %v2637_v5, 0.0 }
 0x663   :  { %2764 = vst [vmem:[%s5428_s10 + $0x18] sm:$0xff] %v2759_v6 }
 0x664   :  { %3323 = vst [vmem:[%s5428_s10 + $0x30] sm:$0xff] %v2758_v10  ;;  %v2751_v12 = vpop.f32.mrf.mxu2 }
 0x667   :  { %v2638_v14 = vpop.f32.mrf.mxu1 }
 0x668   :  { %v2738_v24 = vpop.f32.mrf.mxu0 }
 0x669   :  { %2774 = vsyncpa [#allocation4], 1 }
 0x66a   :  { %2775 = vsyncpa [#allocation6], 1 }
 0x66b   :  { %2776 = vsyncpa [#allocation9], 1 }

</bundles_post_ra>
